<compile_context>
chip_gen: v7x
topology: tpu7x:2x2x1
jax: 0.10.0
libtpu: 0.0.40
codegen_flags: <defaults>
</compile_context>

<pallas_src>
import functools

import jax
import jax.numpy as jnp
import numpy as np
from jax.experimental import pallas as pl
from jax.experimental.pallas import tpu as pltpu

VMEM_LIMIT = 48 * 1024 * 1024   # leave headroom below v7x's 64 MiB physical VMEM


# --------------------------------------------------------------------------- #
# Kernels
# --------------------------------------------------------------------------- #
def mlp_kernel(fg_ref, w1_ref, b1_ref, w2_ref, b2_ref, w3_ref, b3_ref, out_ref):
    """coarse MLP: Linear -> ReLU -> Linear -> ReLU -> Linear (all B rows at once).

    Bandwidth-bound plumbing (M = B is tiny); weights arrive pre-cast to bf16.
    """
    bf = jnp.bfloat16
    x = fg_ref[...]                                                     # (B, latent) f32
    h = jnp.dot(x.astype(bf), w1_ref[...], preferred_element_type=jnp.float32) + b1_ref[...]
    h = jnp.maximum(h, 0.0)
    h = jnp.dot(h.astype(bf), w2_ref[...], preferred_element_type=jnp.float32) + b2_ref[...]
    h = jnp.maximum(h, 0.0)
    out_ref[...] = (jnp.dot(h.astype(bf), w3_ref[...],
                            preferred_element_type=jnp.float32) + b3_ref[...])  # (B, 3*Nc)


def final_conv_kernel(gt_ref, ex_ref,
                      w1x_ref, s1_ref,
                      w2_ref, s2_ref, b2_ref,
                      w3_ref, b3_ref,
                      fine_ref):
    """final_conv on a tile of nt dense points, channel-major (lane-dense).

    Conv1d(k=1) == per-point matmul.  The concat over input channels is done
    algebraically:
        layer1(feat) = fg @ W1[:latent] + [point_feat, seed, 0-pad] @ W1x + b1
    The fg part (identical for every point of a batch) is precomputed per batch
    in the wrapper, already folded with b1 and BN1 into gt = (fg@W1g + b1)*s1+t1.
    Only the cheap K=8 part runs per tile.  All intermediates are (C, nt):
    lane axis = points -> unmasked vector loads/stores.
    """
    bf = jnp.bfloat16
    ex = ex_ref[0]                 # (8, nt) f32, rows = [point_feat(3), seed(2), pad(3)]
    gt = gt_ref[0]                 # (C, 1)  f32, per-batch folded global contribution

    # layer 1 (x-part only) + BN1 + ReLU
    xc = jnp.dot(w1x_ref[...], ex.astype(bf), preferred_element_type=jnp.float32)  # (C, nt)
    h = jnp.maximum(xc * s1_ref[...] + gt, 0.0)

    # layer 2 + BN2 + ReLU
    h = jnp.dot(w2_ref[...], h.astype(bf), preferred_element_type=jnp.float32)     # (C, nt)
    h = jnp.maximum(h * s2_ref[...] + b2_ref[...], 0.0)

    # layer 3
    o = jnp.dot(w3_ref[...], h.astype(bf), preferred_element_type=jnp.float32) + b3_ref[...]

    # residual add of point_feat (exact f32, first 3 rows of the streamed tile)
    fine_ref[0] = o + ex[:3, :]                                          # (3, nt)


# --------------------------------------------------------------------------- #
# One-time parameter preparation (bf16 cast, channel-major transpose, BN fold)
# --------------------------------------------------------------------------- #
def prepare_decoder_params(params):
    """Call ONCE outside the forward.  Returns kernel-ready tensors so no
    per-call f32->bf16 casts or transposes are needed."""
    bf16, f32 = jnp.bfloat16, jnp.float32
    C = params["wc2"].shape[0]
    # first-layer weights for the 8 extra channels, rows ordered like the
    # streamed tensor: [point_feat(3), seed(2), zero-pad(3)]
    w1x = jnp.concatenate([params["wc1_p"], params["wc1_s"],
                           jnp.zeros((3, C), f32)], axis=0)              # (8, C)
    prep = {
        # coarse MLP
        "wm1": params["wm1"].astype(bf16), "bm1": params["bm1"],
        "wm2": params["wm2"].astype(bf16), "bm2": params["bm2"],
        "wm3": params["wm3"].astype(bf16), "bm3": params["bm3"],
        # global-feature part of conv layer 1 (used once per batch in wrapper)
        "wc1_g": params["wc1_g"].astype(bf16),                           # (latent, C)
        "bc1": params["bc1"], "s1": params["s1"], "t1": params["t1"],    # (1, C) each
        # channel-major conv weights / folded BN for the tile kernel
        "w1x_cm": jnp.transpose(w1x).astype(bf16),                       # (C, 8)
        "s1_cm": jnp.transpose(params["s1"]),                            # (C, 1)
        "w2_cm": jnp.transpose(params["wc2"]).astype(bf16),              # (C, C)
        "s2_cm": jnp.transpose(params["s2"]),                            # (C, 1)
        "b2t_cm": jnp.transpose(params["bc2"] * params["s2"] + params["t2"]),  # (C, 1)
        "w3_cm": jnp.transpose(params["wc3"]).astype(bf16),              # (3, C)
        "b3_cm": jnp.transpose(params["bc3"]),                           # (3, 1)
    }
    return prep


# --------------------------------------------------------------------------- #
# Wrapper
# --------------------------------------------------------------------------- #
def _full_spec(shape):
    zeros = (0,) * len(shape)
    return pl.BlockSpec(shape, lambda *_: zeros)


def pcn_decoder(feature_global, prep, *, num_dense, grid_size, tile_n=2048):
    """feature_global: (B, latent) f32.  prep: prepare_decoder_params() output.
    Returns (coarse (B, Nc, 3), fine (B, Nd, 3))."""
    f32, bf16 = jnp.float32, jnp.bfloat16
    B, latent = feature_global.shape
    g2 = grid_size * grid_size
    assert num_dense % g2 == 0
    num_coarse = num_dense // g2
    C = prep["w2_cm"].shape[0]
    nc3 = prep["wm3"].shape[1]
    assert nc3 == 3 * num_coarse

    # ---------------- stage 1: coarse MLP ----------------
    mlp_args = (feature_global,
                prep["wm1"], prep["bm1"],
                prep["wm2"], prep["bm2"],
                prep["wm3"], prep["bm3"])
    coarse_flat = pl.pallas_call(
        mlp_kernel,
        out_shape=jax.ShapeDtypeStruct((B, nc3), f32),
        grid_spec=pltpu.PrefetchScalarGridSpec(
            num_scalar_prefetch=0,
            grid=(1,),
            in_specs=[_full_spec(a.shape) for a in mlp_args],
            out_specs=pl.BlockSpec((B, nc3), lambda i: (0, 0)),
        ),
        compiler_params=pltpu.CompilerParams(
            dimension_semantics=("arbitrary",), vmem_limit_bytes=VMEM_LIMIT),
    )(*mlp_args)
    coarse = coarse_flat.reshape(B, num_coarse, 3)                       # (B, Nc, 3)

    # ------ per-batch global contribution of conv layer 1, folded with b1/BN1 ------
    # Hoisted out of the tile kernel: identical for every point of a batch.
    gc = jnp.dot(feature_global.astype(bf16), prep["wc1_g"],
                 preferred_element_type=f32)                             # (B, C)
    gt = (gc + prep["bc1"]) * prep["s1"] + prep["t1"]                    # (B, C)
    gt_cm = gt[:, :, None]                                               # (B, C, 1)

    # ------ channel-major per-point extras: [point_feat(3), seed(2), zero-pad(3)] ------
    coarse_cm = jnp.transpose(coarse, (0, 2, 1))                         # (B, 3, Nc)
    point_feat_cm = jnp.repeat(coarse_cm, g2, axis=2)                    # (B, 3, Nd)
    lin = jnp.linspace(-0.05, 0.05, grid_size, dtype=f32)
    seed_g2 = jnp.stack([jnp.tile(lin, grid_size),                       # a[s] = lin[s %  g]
                         jnp.repeat(lin, grid_size)], axis=0)            # b[s] = lin[s // g]
    seed_cm = jnp.broadcast_to(jnp.tile(seed_g2, (1, num_coarse))[None],
                               (B, 2, num_dense))                        # (B, 2, Nd)
    ex_cm = jnp.concatenate([point_feat_cm, seed_cm,
                             jnp.zeros((B, 3, num_dense), f32)], axis=1)  # (B, 8, Nd)

    # ---------------- stage 2: final_conv, tiled over dense points ----------------
    nt = min(tile_n, num_dense)
    assert num_dense % nt == 0 and nt % 128 == 0
    n_tiles = num_dense // nt          # keep B * n_tiles >= 2 so v7x megacore can shard

    conv_args = (gt_cm, ex_cm,
                 prep["w1x_cm"], prep["s1_cm"],
                 prep["w2_cm"], prep["s2_cm"], prep["b2t_cm"],
                 prep["w3_cm"], prep["b3_cm"])
    in_specs = ([pl.BlockSpec((1, C, 1), lambda b, j: (b, 0, 0)),
                 pl.BlockSpec((1, 8, nt), lambda b, j: (b, 0, j))]
                + [_full_spec(a.shape) for a in conv_args[2:]])

    fine_cm = pl.pallas_call(
        final_conv_kernel,
        out_shape=jax.ShapeDtypeStruct((B, 3, num_dense), f32),
        grid_spec=pltpu.PrefetchScalarGridSpec(
            num_scalar_prefetch=0,
            grid=(B, n_tiles),
            in_specs=in_specs,
            out_specs=pl.BlockSpec((1, 3, nt), lambda b, j: (b, 0, j)),
        ),
        compiler_params=pltpu.CompilerParams(
            dimension_semantics=("parallel", "parallel"),
            vmem_limit_bytes=VMEM_LIMIT),
    )(*conv_args)

    fine = jnp.transpose(fine_cm, (0, 2, 1))                             # (B, Nd, 3)
    return coarse, fine


# --------------------------------------------------------------------------- #
# Parameters (deterministic, PCNDecoder-shaped; conv weights stored (C_in, C_out),
# BatchNorm folded into per-channel scale/bias from inference running stats)
# --------------------------------------------------------------------------- #
def make_params(key, latent_dim, mlp_hidden, conv_hidden, num_coarse):
    f32 = jnp.float32
    eps = 1e-5
    ks = jax.random.split(key, 16)

    def w(k, cin, cout, scale=None):
        scale = (1.0 / np.sqrt(cin)) if scale is None else scale
        return scale * jax.random.normal(k, (cin, cout), f32)

    def bias(k, c):
        return 0.05 * jax.random.normal(k, (1, c), f32)

    def bn_fold(k, c):
        kg, kb, km, kv = jax.random.split(k, 4)
        gamma = 1.0 + 0.1 * jax.random.normal(kg, (1, c), f32)
        beta = 0.1 * jax.random.normal(kb, (1, c), f32)
        mean = 0.1 * jax.random.normal(km, (1, c), f32)
        var = jnp.abs(jax.random.normal(kv, (1, c), f32)) + 0.5
        scale = gamma / jnp.sqrt(var + eps)
        return scale, beta - mean * scale

    cin1 = latent_dim + 2 + 3
    s1 = 1.0 / np.sqrt(cin1)
    p = {
        # mlp: Linear(latent,H) -> ReLU -> Linear(H,H) -> ReLU -> Linear(H, 3*Nc)
        "wm1": w(ks[0], latent_dim, mlp_hidden), "bm1": bias(ks[1], mlp_hidden),
        "wm2": w(ks[2], mlp_hidden, mlp_hidden), "bm2": bias(ks[3], mlp_hidden),
        "wm3": w(ks[4], mlp_hidden, 3 * num_coarse), "bm3": bias(ks[5], 3 * num_coarse),
        # final_conv: Conv1d(latent+5, C, 1) split by concat order [global | seed | point]
        "wc1_g": w(ks[6], latent_dim, conv_hidden, s1),
        "wc1_s": w(ks[7], 2, conv_hidden, s1),
        "wc1_p": w(ks[8], 3, conv_hidden, s1),
        "bc1": bias(ks[9], conv_hidden),
        "wc2": w(ks[11], conv_hidden, conv_hidden), "bc2": bias(ks[12], conv_hidden),
        "wc3": w(ks[14], conv_hidden, 3), "bc3": bias(ks[15], 3),
    }
    p["s1"], p["t1"] = bn_fold(ks[10], conv_hidden)
    p["s2"], p["t2"] = bn_fold(ks[13], conv_hidden)
    return p


# --------------------------------------------------------------------------- #
# Pure-JAX reference (mirrors the module forward; bf16 matmul operands + f32
# accumulation to match the kernel's precision, BN folded the same way)
# --------------------------------------------------------------------------- #
def pcn_decoder_ref(feature_global, params, *, num_dense, grid_size):
    f32, bf = jnp.float32, jnp.bfloat16
    B, latent = feature_global.shape
    g2 = grid_size * grid_size
    num_coarse = num_dense // g2

    def dot_bf(x, w):
        return jnp.dot(x.astype(bf), w.astype(bf), preferred_element_type=f32)

    # mlp
    h = jnp.maximum(dot_bf(feature_global, params["wm1"]) + params["bm1"], 0.0)
    h = jnp.maximum(dot_bf(h, params["wm2"]) + params["bm2"], 0.0)
    coarse = (dot_bf(h, params["wm3"]) + params["bm3"]).reshape(B, num_coarse, 3)

    # build concat([fg_expand, seed, point_feat]) exactly like the PyTorch module
    point_feat = jnp.repeat(coarse, g2, axis=1)                        # (B, Nd, 3)
    lin = jnp.linspace(-0.05, 0.05, grid_size, dtype=f32)
    seed_cell = jnp.stack([jnp.tile(lin, grid_size),
                           jnp.repeat(lin, grid_size)], axis=1)        # (g2, 2)
    seed = jnp.broadcast_to(jnp.tile(seed_cell, (num_coarse, 1))[None],
                            (B, num_dense, 2))
    fg_exp = jnp.broadcast_to(feature_global[:, None, :], (B, num_dense, latent))
    feat = jnp.concatenate([fg_exp, seed, point_feat], axis=-1)        # (B, Nd, latent+5)
    w1_full = jnp.concatenate([params["wc1_g"], params["wc1_s"], params["wc1_p"]], axis=0)

    h = dot_bf(feat, w1_full) + params["bc1"]
    h = jnp.maximum(h * params["s1"] + params["t1"], 0.0)
    h = dot_bf(h, params["wc2"]) + params["bc2"]
    h = jnp.maximum(h * params["s2"] + params["t2"], 0.0)
    fine = dot_bf(h, params["wc3"]) + params["bc3"] + point_feat
    return coarse, fine


# --------------------------------------------------------------------------- #
if __name__ == "__main__":
    # Small shapes consistent with PCNDecoder (module defaults are latent=1024,
    # num_dense=16384, hidden=1024, conv=512; scaled down here for a fast test).
    B = 2
    latent_dim = 256
    grid_size = 4            # g^2 = 16
    num_dense = 1024         # num_coarse = 64
    mlp_hidden = 256
    conv_hidden = 256

    key = jax.random.PRNGKey(0)
    k_x, k_p = jax.random.split(key)
    feature_global = jax.random.normal(k_x, (B, latent_dim), jnp.float32)
    params = make_params(k_p, latent_dim, mlp_hidden, conv_hidden,
                         num_dense // grid_size ** 2)

    # one-time weight preparation (bf16 cast, transpose, BN fold) outside the forward
    prep = prepare_decoder_params(params)
    prep = jax.tree_util.tree_map(jax.block_until_ready, prep)

    decoder = jax.jit(functools.partial(pcn_decoder, num_dense=num_dense,
                                        grid_size=grid_size, tile_n=2048))
    coarse, fine = decoder(feature_global, prep)
    coarse = jax.block_until_ready(coarse)
    fine = jax.block_until_ready(fine)

    coarse_ref, fine_ref = pcn_decoder_ref(feature_global, params,
                                           num_dense=num_dense, grid_size=grid_size)
    coarse_ref = jax.block_until_ready(coarse_ref)
    fine_ref = jax.block_until_ready(fine_ref)

    # bf16 operands / f32 accumulation on both sides -> modest tolerance
    np.testing.assert_allclose(np.asarray(coarse), np.asarray(coarse_ref),
                               rtol=1e-2, atol=1e-2)
    np.testing.assert_allclose(np.asarray(fine), np.asarray(fine_ref),
                               rtol=1e-2, atol=1e-2)
    print("KERNEL_OK")
</pallas_src>

<mosaic_0001>
module attributes {stable_mosaic.version = 11 : i64} {
  func.func @mlp_kernel(%arg0: i32, %arg1: memref<2x256xf32, #tpu.memory_space<vmem>>, %arg2: memref<256x256xbf16, #tpu.memory_space<vmem>>, %arg3: memref<1x256xf32, #tpu.memory_space<vmem>>, %arg4: memref<256x256xbf16, #tpu.memory_space<vmem>>, %arg5: memref<1x256xf32, #tpu.memory_space<vmem>>, %arg6: memref<256x192xbf16, #tpu.memory_space<vmem>>, %arg7: memref<1x192xf32, #tpu.memory_space<vmem>>, %arg8: memref<2x192xf32, #tpu.memory_space<vmem>>) attributes {dimension_semantics = [#tpu.dimension_semantics<arbitrary>], iteration_bounds = array<i64: 1>, scalar_prefetch = 0 : i64, scratch_operands = 0 : i64, tpu.core_type = #tpu.core_type<tc>, window_params = [{pipeline_mode = #tpu.pipeline_mode<synchronous>, transform_indices = @transform_0, window_bounds = array<i64: 2, 256>}, {pipeline_mode = #tpu.pipeline_mode<synchronous>, transform_indices = @transform_1, window_bounds = array<i64: 256, 256>}, {pipeline_mode = #tpu.pipeline_mode<synchronous>, transform_indices = @transform_2, window_bounds = array<i64: 1, 256>}, {pipeline_mode = #tpu.pipeline_mode<synchronous>, transform_indices = @transform_3, window_bounds = array<i64: 256, 256>}, {pipeline_mode = #tpu.pipeline_mode<synchronous>, transform_indices = @transform_4, window_bounds = array<i64: 1, 256>}, {pipeline_mode = #tpu.pipeline_mode<synchronous>, transform_indices = @transform_5, window_bounds = array<i64: 256, 192>}, {pipeline_mode = #tpu.pipeline_mode<synchronous>, transform_indices = @transform_6, window_bounds = array<i64: 1, 192>}, {pipeline_mode = #tpu.pipeline_mode<synchronous>, transform_indices = @transform_7, window_bounds = array<i64: 2, 192>}]} {
    %c0 = arith.constant 0 : index
    %c0_0 = arith.constant 0 : index
    %0 = vector.load %arg1[%c0, %c0_0] : memref<2x256xf32, #tpu.memory_space<vmem>>, vector<2x256xf32>
    %1 = arith.truncf %0 : vector<2x256xf32> to vector<2x256xbf16>
    %c0_1 = arith.constant 0 : index
    %c0_2 = arith.constant 0 : index
    %2 = vector.load %arg2[%c0_1, %c0_2] : memref<256x256xbf16, #tpu.memory_space<vmem>>, vector<256x256xbf16>
    %cst = arith.constant dense<0.000000e+00> : vector<2x256xf32>
    %3 = tpu.matmul %1, %2, %cst {dimension_numbers = #tpu.dot_dimension_numbers<[1], [0], [0], [1], [0, 0, 1, 1], [], []>} : vector<2x256xbf16>, vector<256x256xbf16>, vector<2x256xf32> -> vector<2x256xf32>
    %c0_3 = arith.constant 0 : index
    %c0_4 = arith.constant 0 : index
    %4 = vector.load %arg3[%c0_3, %c0_4] : memref<1x256xf32, #tpu.memory_space<vmem>>, vector<1x256xf32>
    %5 = vector.broadcast %4 : vector<1x256xf32> to vector<2x256xf32>
    %6 = arith.addf %3, %5 : vector<2x256xf32>
    %cst_5 = arith.constant 0.000000e+00 : f32
    %7 = vector.broadcast %cst_5 : f32 to vector<2x256xf32>
    %8 = arith.maximumf %6, %7 : vector<2x256xf32>
    %9 = arith.truncf %8 : vector<2x256xf32> to vector<2x256xbf16>
    %c0_6 = arith.constant 0 : index
    %c0_7 = arith.constant 0 : index
    %10 = vector.load %arg4[%c0_6, %c0_7] : memref<256x256xbf16, #tpu.memory_space<vmem>>, vector<256x256xbf16>
    %cst_8 = arith.constant dense<0.000000e+00> : vector<2x256xf32>
    %11 = tpu.matmul %9, %10, %cst_8 {dimension_numbers = #tpu.dot_dimension_numbers<[1], [0], [0], [1], [0, 0, 1, 1], [], []>} : vector<2x256xbf16>, vector<256x256xbf16>, vector<2x256xf32> -> vector<2x256xf32>
    %c0_9 = arith.constant 0 : index
    %c0_10 = arith.constant 0 : index
    %12 = vector.load %arg5[%c0_9, %c0_10] : memref<1x256xf32, #tpu.memory_space<vmem>>, vector<1x256xf32>
    %13 = vector.broadcast %12 : vector<1x256xf32> to vector<2x256xf32>
    %14 = arith.addf %11, %13 : vector<2x256xf32>
    %cst_11 = arith.constant 0.000000e+00 : f32
    %15 = vector.broadcast %cst_11 : f32 to vector<2x256xf32>
    %16 = arith.maximumf %14, %15 : vector<2x256xf32>
    %17 = arith.truncf %16 : vector<2x256xf32> to vector<2x256xbf16>
    %c0_12 = arith.constant 0 : index
    %c0_13 = arith.constant 0 : index
    %18 = vector.load %arg6[%c0_12, %c0_13] : memref<256x192xbf16, #tpu.memory_space<vmem>>, vector<256x192xbf16>
    %cst_14 = arith.constant dense<0.000000e+00> : vector<2x192xf32>
    %19 = tpu.matmul %17, %18, %cst_14 {dimension_numbers = #tpu.dot_dimension_numbers<[1], [0], [0], [1], [0, 0, 1, 1], [], []>} : vector<2x256xbf16>, vector<256x192xbf16>, vector<2x192xf32> -> vector<2x192xf32>
    %c0_15 = arith.constant 0 : index
    %c0_16 = arith.constant 0 : index
    %20 = vector.load %arg7[%c0_15, %c0_16] : memref<1x192xf32, #tpu.memory_space<vmem>>, vector<1x192xf32>
    %21 = vector.broadcast %20 : vector<1x192xf32> to vector<2x192xf32>
    %22 = arith.addf %19, %21 : vector<2x192xf32>
    %c0_17 = arith.constant 0 : index
    %c0_18 = arith.constant 0 : index
    %23 = vector.load %arg8[%c0_17, %c0_18] : memref<2x192xf32, #tpu.memory_space<vmem>>, vector<2x192xf32>
    tpu.vector_store %arg8[%c0_17, %c0_18], %22 {strides = array<i32>} : memref<2x192xf32, #tpu.memory_space<vmem>>, vector<2x192xf32>,
    return
  }
  func.func @transform_0(%arg0: i32) -> (i32, i32) {
    %c0_i32 = arith.constant 0 : i32
    %c0_i32_0 = arith.constant 0 : i32
    %c0_i32_1 = arith.constant 0 : i32
    return %c0_i32, %c0_i32_0 : i32, i32
  }
  func.func @transform_1(%arg0: i32) -> (i32, i32) {
    %c0_i32 = arith.constant 0 : i32
    %c0_i32_0 = arith.constant 0 : i32
    %c0_i32_1 = arith.constant 0 : i32
    return %c0_i32, %c0_i32_0 : i32, i32
  }
  func.func @transform_2(%arg0: i32) -> (i32, i32) {
    %c0_i32 = arith.constant 0 : i32
    %c0_i32_0 = arith.constant 0 : i32
    %c0_i32_1 = arith.constant 0 : i32
    return %c0_i32, %c0_i32_0 : i32, i32
  }
  func.func @transform_3(%arg0: i32) -> (i32, i32) {
    %c0_i32 = arith.constant 0 : i32
    %c0_i32_0 = arith.constant 0 : i32
    %c0_i32_1 = arith.constant 0 : i32
    return %c0_i32, %c0_i32_0 : i32, i32
  }
  func.func @transform_4(%arg0: i32) -> (i32, i32) {
    %c0_i32 = arith.constant 0 : i32
    %c0_i32_0 = arith.constant 0 : i32
    %c0_i32_1 = arith.constant 0 : i32
    return %c0_i32, %c0_i32_0 : i32, i32
  }
  func.func @transform_5(%arg0: i32) -> (i32, i32) {
    %c0_i32 = arith.constant 0 : i32
    %c0_i32_0 = arith.constant 0 : i32
    %c0_i32_1 = arith.constant 0 : i32
    return %c0_i32, %c0_i32_0 : i32, i32
  }
  func.func @transform_6(%arg0: i32) -> (i32, i32) {
    %c0_i32 = arith.constant 0 : i32
    %c0_i32_0 = arith.constant 0 : i32
    %c0_i32_1 = arith.constant 0 : i32
    return %c0_i32, %c0_i32_0 : i32, i32
  }
  func.func @transform_7(%arg0: i32) -> (i32, i32) {
    %c0_i32 = arith.constant 0 : i32
    %c0_i32_0 = arith.constant 0 : i32
    %c0_i32_1 = arith.constant 0 : i32
    return %c0_i32, %c0_i32_0 : i32, i32
  }
}

module attributes {stable_mosaic.version = 11 : i64} {
  func.func @final_conv_kernel(%arg0: i32, %arg1: i32, %arg2: memref<1x256x1xf32, #tpu.memory_space<vmem>>, %arg3: memref<1x8x1024xf32, #tpu.memory_space<vmem>>, %arg4: memref<256x8xbf16, #tpu.memory_space<vmem>>, %arg5: memref<256x1xf32, #tpu.memory_space<vmem>>, %arg6: memref<256x256xbf16, #tpu.memory_space<vmem>>, %arg7: memref<256x1xf32, #tpu.memory_space<vmem>>, %arg8: memref<256x1xf32, #tpu.memory_space<vmem>>, %arg9: memref<3x256xbf16, #tpu.memory_space<vmem>>, %arg10: memref<3x1xf32, #tpu.memory_space<vmem>>, %arg11: memref<1x3x1024xf32, #tpu.memory_space<vmem>>) attributes {dimension_semantics = [#tpu.dimension_semantics<parallel>, #tpu.dimension_semantics<parallel>], iteration_bounds = array<i64: 2, 1>, scalar_prefetch = 0 : i64, scratch_operands = 0 : i64, tpu.core_type = #tpu.core_type<tc>, window_params = [{transform_indices = @transform_0, window_bounds = array<i64: 1, 256, 1>}, {transform_indices = @transform_1, window_bounds = array<i64: 1, 8, 1024>}, {pipeline_mode = #tpu.pipeline_mode<synchronous>, transform_indices = @transform_2, window_bounds = array<i64: 256, 8>}, {pipeline_mode = #tpu.pipeline_mode<synchronous>, transform_indices = @transform_3, window_bounds = array<i64: 256, 1>}, {pipeline_mode = #tpu.pipeline_mode<synchronous>, transform_indices = @transform_4, window_bounds = array<i64: 256, 256>}, {pipeline_mode = #tpu.pipeline_mode<synchronous>, transform_indices = @transform_5, window_bounds = array<i64: 256, 1>}, {pipeline_mode = #tpu.pipeline_mode<synchronous>, transform_indices = @transform_6, window_bounds = array<i64: 256, 1>}, {pipeline_mode = #tpu.pipeline_mode<synchronous>, transform_indices = @transform_7, window_bounds = array<i64: 3, 256>}, {pipeline_mode = #tpu.pipeline_mode<synchronous>, transform_indices = @transform_8, window_bounds = array<i64: 3, 1>}, {transform_indices = @transform_9, window_bounds = array<i64: 1, 3, 1024>}]} {
    %c0 = arith.constant 0 : index
    %c0_0 = arith.constant 0 : index
    %c0_1 = arith.constant 0 : index
    %0 = vector.load %arg3[%c0, %c0_0, %c0_1] : memref<1x8x1024xf32, #tpu.memory_space<vmem>>, vector<1x8x1024xf32>
    %1 = vector.shape_cast %0 : vector<1x8x1024xf32> to vector<8x1024xf32>
    %c0_2 = arith.constant 0 : index
    %c0_3 = arith.constant 0 : index
    %c0_4 = arith.constant 0 : index
    %2 = vector.load %arg2[%c0_2, %c0_3, %c0_4] : memref<1x256x1xf32, #tpu.memory_space<vmem>>, vector<1x256x1xf32>
    %3 = vector.shape_cast %2 : vector<1x256x1xf32> to vector<256x1xf32>
    %c0_5 = arith.constant 0 : index
    %c0_6 = arith.constant 0 : index
    %4 = vector.load %arg4[%c0_5, %c0_6] : memref<256x8xbf16, #tpu.memory_space<vmem>>, vector<256x8xbf16>
    %5 = arith.truncf %1 : vector<8x1024xf32> to vector<8x1024xbf16>
    %cst = arith.constant dense<0.000000e+00> : vector<256x1024xf32>
    %6 = tpu.matmul %4, %5, %cst {dimension_numbers = #tpu.dot_dimension_numbers<[1], [0], [0], [1], [0, 0, 1, 1], [], []>} : vector<256x8xbf16>, vector<8x1024xbf16>, vector<256x1024xf32> -> vector<256x1024xf32>
    %c0_7 = arith.constant 0 : index
    %c0_8 = arith.constant 0 : index
    %7 = vector.load %arg5[%c0_7, %c0_8] : memref<256x1xf32, #tpu.memory_space<vmem>>, vector<256x1xf32>
    %8 = vector.broadcast %7 : vector<256x1xf32> to vector<256x1024xf32>
    %9 = arith.mulf %6, %8 : vector<256x1024xf32>
    %10 = vector.broadcast %3 : vector<256x1xf32> to vector<256x1024xf32>
    %11 = arith.addf %9, %10 : vector<256x1024xf32>
    %cst_9 = arith.constant 0.000000e+00 : f32
    %12 = vector.broadcast %cst_9 : f32 to vector<256x1024xf32>
    %13 = arith.maximumf %11, %12 : vector<256x1024xf32>
    %c0_10 = arith.constant 0 : index
    %c0_11 = arith.constant 0 : index
    %14 = vector.load %arg6[%c0_10, %c0_11] : memref<256x256xbf16, #tpu.memory_space<vmem>>, vector<256x256xbf16>
    %15 = arith.truncf %13 : vector<256x1024xf32> to vector<256x1024xbf16>
    %cst_12 = arith.constant dense<0.000000e+00> : vector<256x1024xf32>
    %16 = tpu.matmul %14, %15, %cst_12 {dimension_numbers = #tpu.dot_dimension_numbers<[1], [0], [0], [1], [0, 0, 1, 1], [], []>} : vector<256x256xbf16>, vector<256x1024xbf16>, vector<256x1024xf32> -> vector<256x1024xf32>
    %c0_13 = arith.constant 0 : index
    %c0_14 = arith.constant 0 : index
    %17 = vector.load %arg7[%c0_13, %c0_14] : memref<256x1xf32, #tpu.memory_space<vmem>>, vector<256x1xf32>
    %18 = vector.broadcast %17 : vector<256x1xf32> to vector<256x1024xf32>
    %19 = arith.mulf %16, %18 : vector<256x1024xf32>
    %c0_15 = arith.constant 0 : index
    %c0_16 = arith.constant 0 : index
    %20 = vector.load %arg8[%c0_15, %c0_16] : memref<256x1xf32, #tpu.memory_space<vmem>>, vector<256x1xf32>
    %21 = vector.broadcast %20 : vector<256x1xf32> to vector<256x1024xf32>
    %22 = arith.addf %19, %21 : vector<256x1024xf32>
    %cst_17 = arith.constant 0.000000e+00 : f32
    %23 = vector.broadcast %cst_17 : f32 to vector<256x1024xf32>
    %24 = arith.maximumf %22, %23 : vector<256x1024xf32>
    %c0_18 = arith.constant 0 : index
    %c0_19 = arith.constant 0 : index
    %25 = vector.load %arg9[%c0_18, %c0_19] : memref<3x256xbf16, #tpu.memory_space<vmem>>, vector<3x256xbf16>
    %26 = arith.truncf %24 : vector<256x1024xf32> to vector<256x1024xbf16>
    %cst_20 = arith.constant dense<0.000000e+00> : vector<3x1024xf32>
    %27 = tpu.matmul %25, %26, %cst_20 {dimension_numbers = #tpu.dot_dimension_numbers<[1], [0], [0], [1], [0, 0, 1, 1], [], []>} : vector<3x256xbf16>, vector<256x1024xbf16>, vector<3x1024xf32> -> vector<3x1024xf32>
    %c0_21 = arith.constant 0 : index
    %c0_22 = arith.constant 0 : index
    %28 = vector.load %arg10[%c0_21, %c0_22] : memref<3x1xf32, #tpu.memory_space<vmem>>, vector<3x1xf32>
    %29 = vector.broadcast %28 : vector<3x1xf32> to vector<3x1024xf32>
    %30 = arith.addf %27, %29 : vector<3x1024xf32>
    %31 = vector.extract_strided_slice %1 {offsets = [0, 0], sizes = [3, 1024], strides = [1, 1]} : vector<8x1024xf32> to vector<3x1024xf32>
    %32 = arith.addf %30, %31 : vector<3x1024xf32>
    %c0_23 = arith.constant 0 : index
    %c0_24 = arith.constant 0 : index
    %c0_25 = arith.constant 0 : index
    %33 = vector.load %arg11[%c0_23, %c0_24, %c0_25] : memref<1x3x1024xf32, #tpu.memory_space<vmem>>, vector<1x3x1024xf32>
    %34 = vector.shape_cast %33 : vector<1x3x1024xf32> to vector<3x1024xf32>
    %35 = vector.shape_cast %32 : vector<3x1024xf32> to vector<1x3x1024xf32>
    tpu.vector_store %arg11[%c0_23, %c0_24, %c0_25], %35 {strides = array<i32>} : memref<1x3x1024xf32, #tpu.memory_space<vmem>>, vector<1x3x1024xf32>,
    return
  }
  func.func @transform_0(%arg0: i32, %arg1: i32) -> (i32, i32, i32) {
    %c0_i32 = arith.constant 0 : i32
    %c0_i32_0 = arith.constant 0 : i32
    %c0_i32_1 = arith.constant 0 : i32
    return %arg0, %c0_i32, %c0_i32_0 : i32, i32, i32
  }
  func.func @transform_1(%arg0: i32, %arg1: i32) -> (i32, i32, i32) {
    %c0_i32 = arith.constant 0 : i32
    %c0_i32_0 = arith.constant 0 : i32
    return %arg0, %c0_i32, %arg1 : i32, i32, i32
  }
  func.func @transform_2(%arg0: i32, %arg1: i32) -> (i32, i32) {
    %c0_i32 = arith.constant 0 : i32
    %c0_i32_0 = arith.constant 0 : i32
    %c0_i32_1 = arith.constant 0 : i32
    return %c0_i32, %c0_i32_0 : i32, i32
  }
  func.func @transform_3(%arg0: i32, %arg1: i32) -> (i32, i32) {
    %c0_i32 = arith.constant 0 : i32
    %c0_i32_0 = arith.constant 0 : i32
    %c0_i32_1 = arith.constant 0 : i32
    return %c0_i32, %c0_i32_0 : i32, i32
  }
  func.func @transform_4(%arg0: i32, %arg1: i32) -> (i32, i32) {
    %c0_i32 = arith.constant 0 : i32
    %c0_i32_0 = arith.constant 0 : i32
    %c0_i32_1 = arith.constant 0 : i32
    return %c0_i32, %c0_i32_0 : i32, i32
  }
  func.func @transform_5(%arg0: i32, %arg1: i32) -> (i32, i32) {
    %c0_i32 = arith.constant 0 : i32
    %c0_i32_0 = arith.constant 0 : i32
    %c0_i32_1 = arith.constant 0 : i32
    return %c0_i32, %c0_i32_0 : i32, i32
  }
  func.func @transform_6(%arg0: i32, %arg1: i32) -> (i32, i32) {
    %c0_i32 = arith.constant 0 : i32
    %c0_i32_0 = arith.constant 0 : i32
    %c0_i32_1 = arith.constant 0 : i32
    return %c0_i32, %c0_i32_0 : i32, i32
  }
  func.func @transform_7(%arg0: i32, %arg1: i32) -> (i32, i32) {
    %c0_i32 = arith.constant 0 : i32
    %c0_i32_0 = arith.constant 0 : i32
    %c0_i32_1 = arith.constant 0 : i32
    return %c0_i32, %c0_i32_0 : i32, i32
  }
  func.func @transform_8(%arg0: i32, %arg1: i32) -> (i32, i32) {
    %c0_i32 = arith.constant 0 : i32
    %c0_i32_0 = arith.constant 0 : i32
    %c0_i32_1 = arith.constant 0 : i32
    return %c0_i32, %c0_i32_0 : i32, i32
  }
  func.func @transform_9(%arg0: i32, %arg1: i32) -> (i32, i32, i32) {
    %c0_i32 = arith.constant 0 : i32
    %c0_i32_0 = arith.constant 0 : i32
    return %arg0, %c0_i32, %arg1 : i32, i32, i32
  }
}

</mosaic_0001>

<bundles_post_ra>
// kernel: tile.13
= control target key start
LH: loop header
LB: loop body
LE: loop exit
PB: predicated region body
PF: predicated region fallthrough
CT: control target
= control target key end

     0   :  { %s22_s0 = inlined_call_operand.vmem [shape: f32[4], index: 0, kind: input, shape index: {}]   ;;  %s23_s1 = inlined_call_operand.vmem [shape: f32[4,4], index: 1, kind: output, shape index: {}]  }
   0x1   :  { %v4_v0 = vld [vmem:[%s22_s0] ss:$0 sm:$0xff] }
   0x2   :  { %5 = vst [vmem:[%s23_s1] sm:$0xf] %v4_v0 }

// kernel: pcn_decoder.2
= control target key start
LH: loop header
LB: loop body
LE: loop exit
PB: predicated region body
PF: predicated region fallthrough
CT: control target
= control target key end

     0   :  { %vm794_vm0 = vcmask 1041408   ;;  %vm795_vm1 = vcmask 519170   ;;  %s1394_s1 = inlined_call_operand.vmem [shape: bf16[256,256], index: 1, kind: input, shape index: {}]   ;;  %s1395_s0 = inlined_call_operand.vmem [shape: f32[2,256], index: 0, kind: input, shape index: {}]   ;;  %s1396_s3 = inlined_call_operand.vmem [shape: bf16[256,256], index: 3, kind: input, shape index: {}]   ;;  %s1397_s5 = inlined_call_operand.vmem [shape: bf16[256,192], index: 5, kind: input, shape index: {}]   ;;  %s1398_s2 = inlined_call_operand.vmem [shape: f32[1,256], index: 2, kind: input, shape index: {}]   ;;  %s1399_s4 = inlined_call_operand.vmem [shape: f32[1,256], index: 4, kind: input, shape index: {}]   ;;  %s1400_s6 = inlined_call_operand.vmem [shape: f32[1,192], index: 6, kind: input, shape index: {}]   ;;  %s1401_s7 = inlined_call_operand.vmem [shape: f32[2,192], index: 7, kind: output, shape index: {}]  }
   0x1   :  { %v900_v0 = vld [vmem:[%s1394_s1 + $0x4] ss:$8 sps:$4 sm:$0xff]   ;;  %v902_v1 = vld [vmem:[%s1394_s1] ss:$8 sps:$4 sm:$0xff]   ;;  %v903_v2 = vld [vmem:[%s1394_s1 + $0x14] ss:$8 sps:$4 sm:$0xff]  }
   0x2   :  { %244 = vmatprep.subr.bf16.mxu0 %v900_v0  ;;  %v905_v3 = vld [vmem:[%s1394_s1 + $0x10] ss:$8 sps:$4 sm:$0xff]   ;;  %v906_v4 = vld [vmem:[%s1394_s1 + $0x24] ss:$8 sps:$4 sm:$0xff]   ;;  %v908_v5 = vld [vmem:[%s1394_s1 + $0x20] ss:$8 sps:$4 sm:$0xff]  }
   0x3   :  { %245 = vmatpush1.bf16.msra.mxu0 %v902_v1  ;;  %v909_v6 = vld [vmem:[%s1394_s1 + $0x34] ss:$8 sps:$4 sm:$0xff]   ;;  %v911_v7 = vld [vmem:[%s1394_s1 + $0x30] ss:$8 sps:$4 sm:$0xff]   ;;  %v912_v8 = vld [vmem:[%s1394_s1 + $0x44] ss:$8 sps:$4 sm:$0xff]  }
   0x4   :  { %246 = vmatprep.subr.bf16.mxu0 %v903_v2  ;;  %v914_v9 = vld [vmem:[%s1394_s1 + $0x40] ss:$8 sps:$4 sm:$0xff]   ;;  %v915_v10 = vld [vmem:[%s1394_s1 + $0x54] ss:$8 sps:$4 sm:$0xff]   ;;  %v917_v11 = vld [vmem:[%s1394_s1 + $0x50] ss:$8 sps:$4 sm:$0xff]  }
   0x5   :  { %v918_v12 = vld [vmem:[%s1394_s1 + $0x64] ss:$8 sps:$4 sm:$0xff]   ;;  %v920_v13 = vld [vmem:[%s1394_s1 + $0x60] ss:$8 sps:$4 sm:$0xff]   ;;  %v921_v18 = vld [vmem:[%s1394_s1 + $0x74] ss:$8 sps:$4 sm:$0xff]  }
   0x6   :  { %v1130_v14 = vld.sshfl [vmem:[%s1395_s0] sm:$0x33 pattern:$0x76325410]  ;;  %v948_v16 = vld [vmem:[%s1396_s3 + $0x4] ss:$8 sps:$4 sm:$0xff]   ;;  %vm796_vm2 = vmor %vm795_vm1, %vm794_vm0 }
   0x7   :  { %247 = vmatpush1.bf16.msra.mxu0 %v905_v3  ;;  %v35_v15 = vcombine.high %v1130_v14, %v1130_v14  ;;  %v950_v17 = vld [vmem:[%s1396_s3] ss:$8 sps:$4 sm:$0xff]   ;;  %493 = vmatprep.subr.bf16.mxu1 %v948_v16  ;;  %v951_v20 = vld [vmem:[%s1396_s3 + $0x14] ss:$8 sps:$4 sm:$0xff]   ;;  %v953_v21 = vld [vmem:[%s1396_s3 + $0x10] ss:$8 sps:$4 sm:$0xff]   ;;  %v38_v57 = vpack.c.bf16 %v1130_v14, %v1130_v14 }
   0x8   :  { %248 = vmatprep.subr.bf16.mxu0 %v906_v4  ;;  %494 = vmatpush1.bf16.msra.mxu1 %v950_v17  ;;  %v954_v22 = vld [vmem:[%s1396_s3 + $0x24] ss:$8 sps:$4 sm:$0xff]   ;;  %v923_v23 = vld [vmem:[%s1394_s1 + $0x70] ss:$8 sps:$4 sm:$0xff]   ;;  %v956_v25 = vld [vmem:[%s1396_s3 + $0x20] ss:$8 sps:$4 sm:$0xff]  }
   0x9   :  { %v39_v19 = vpack.c.bf16 %v35_v15, %v35_v15  ;;  %495 = vmatprep.subr.bf16.mxu1 %v951_v20  ;;  %v924_v24 = vld [vmem:[%s1394_s1 + $0x84] ss:$8 sps:$4 sm:$0xff]   ;;  %v957_v26 = vld [vmem:[%s1396_s3 + $0x34] ss:$8 sps:$4 sm:$0xff]   ;;  %v926_v27 = vld [vmem:[%s1394_s1 + $0x80] ss:$8 sps:$4 sm:$0xff]  }
   0xa   :  { %v927_v28 = vld [vmem:[%s1394_s1 + $0x94] ss:$8 sps:$4 sm:$0xff]   ;;  %v959_v29 = vld [vmem:[%s1396_s3 + $0x30] ss:$8 sps:$4 sm:$0xff]   ;;  %v960_v30 = vld [vmem:[%s1396_s3 + $0x44] ss:$8 sps:$4 sm:$0xff]  }
   0xb   :  { %249 = vmatpush1.bf16.msra.mxu0 %v908_v5  ;;  %276 = vmatprep.mubr.bf16.mxu0 %v39_v19  ;;  %v929_v31 = vld [vmem:[%s1394_s1 + $0x90] ss:$8 sps:$4 sm:$0xff]   ;;  %v930_v32 = vld [vmem:[%s1394_s1 + $0xa4] ss:$8 sps:$4 sm:$0xff]   ;;  %v962_v33 = vld [vmem:[%s1396_s3 + $0x40] ss:$8 sps:$4 sm:$0xff]  }
   0xc   :  { %250 = vmatprep.subr.bf16.mxu0 %v909_v6  ;;  %496 = vmatpush1.bf16.msra.mxu1 %v953_v21  ;;  %v963_v34 = vld [vmem:[%s1396_s3 + $0x54] ss:$8 sps:$4 sm:$0xff]   ;;  %v932_v35 = vld [vmem:[%s1394_s1 + $0xa0] ss:$8 sps:$4 sm:$0xff]   ;;  %v965_v37 = vld [vmem:[%s1396_s3 + $0x50] ss:$8 sps:$4 sm:$0xff]  }
   0xd   :  { %497 = vmatprep.subr.bf16.mxu1 %v954_v22  ;;  %v933_v36 = vld [vmem:[%s1394_s1 + $0xb4] ss:$8 sps:$4 sm:$0xff]   ;;  %v966_v38 = vld [vmem:[%s1396_s3 + $0x64] ss:$8 sps:$4 sm:$0xff]   ;;  %v935_v39 = vld [vmem:[%s1394_s1 + $0xb0] ss:$8 sps:$4 sm:$0xff]  }
   0xe   :  { %v936_v40 = vld [vmem:[%s1394_s1 + $0xc4] ss:$8 sps:$4 sm:$0xff]   ;;  %v968_v41 = vld [vmem:[%s1396_s3 + $0x60] ss:$8 sps:$4 sm:$0xff]   ;;  %v969_v42 = vld [vmem:[%s1396_s3 + $0x74] ss:$8 sps:$4 sm:$0xff]  }
   0xf   :  { %251 = vmatpush1.bf16.msra.mxu0 %v911_v7  ;;  %v938_v43 = vld [vmem:[%s1394_s1 + $0xc0] ss:$8 sps:$4 sm:$0xff]   ;;  %v939_v44 = vld [vmem:[%s1394_s1 + $0xd4] ss:$8 sps:$4 sm:$0xff]   ;;  %v971_v45 = vld [vmem:[%s1396_s3 + $0x70] ss:$8 sps:$4 sm:$0xff]  }
  0x10   :  { %252 = vmatprep.subr.bf16.mxu0 %v912_v8  ;;  %498 = vmatpush1.bf16.msra.mxu1 %v956_v25  ;;  %v972_v46 = vld [vmem:[%s1396_s3 + $0x84] ss:$8 sps:$4 sm:$0xff]   ;;  %v941_v47 = vld [vmem:[%s1394_s1 + $0xd0] ss:$8 sps:$4 sm:$0xff]   ;;  %v974_v49 = vld [vmem:[%s1396_s3 + $0x80] ss:$8 sps:$4 sm:$0xff]  }
  0x11   :  { %499 = vmatprep.subr.bf16.mxu1 %v957_v26  ;;  %v942_v48 = vld [vmem:[%s1394_s1 + $0xe4] ss:$8 sps:$4 sm:$0xff]   ;;  %v975_v50 = vld [vmem:[%s1396_s3 + $0x94] ss:$8 sps:$4 sm:$0xff]   ;;  %v944_v51 = vld [vmem:[%s1394_s1 + $0xe0] ss:$8 sps:$4 sm:$0xff]  }
  0x12   :  { %v945_v52 = vld [vmem:[%s1394_s1 + $0xf4] ss:$8 sps:$4 sm:$0xff]   ;;  %v977_v53 = vld [vmem:[%s1396_s3 + $0x90] ss:$8 sps:$4 sm:$0xff]   ;;  %v978_v54 = vld [vmem:[%s1396_s3 + $0xa4] ss:$8 sps:$4 sm:$0xff]  }
  0x13   :  { %253 = vmatpush1.bf16.msra.mxu0 %v914_v9  ;;  %v947_v55 = vld [vmem:[%s1394_s1 + $0xf0] ss:$8 sps:$4 sm:$0xff]   ;;  %v980_v56 = vld [vmem:[%s1396_s3 + $0xa0] ss:$8 sps:$4 sm:$0xff]   ;;  %v981_v58 = vld [vmem:[%s1396_s3 + $0xb4] ss:$8 sps:$4 sm:$0xff]  }
  0x14   :  { %254 = vmatprep.subr.bf16.mxu0 %v915_v10  ;;  %500 = vmatpush1.bf16.msra.mxu1 %v959_v29  ;;  %v983_v59 = vld [vmem:[%s1396_s3 + $0xb0] ss:$8 sps:$4 sm:$0xff]   ;;  %v984_v60 = vld [vmem:[%s1396_s3 + $0xc4] ss:$8 sps:$4 sm:$0xff]   ;;  %v986_v61 = vld [vmem:[%s1396_s3 + $0xc0] ss:$8 sps:$4 sm:$0xff]  }
  0x15   :  { %501 = vmatprep.subr.bf16.mxu1 %v960_v30  ;;  %v987_v62 = vld [vmem:[%s1396_s3 + $0xd4] ss:$8 sps:$4 sm:$0xff]   ;;  %v989_v63 = vld [vmem:[%s1396_s3 + $0xd0] ss:$8 sps:$4 sm:$0xff]   ;;  %v990_v0 = vld [vmem:[%s1396_s3 + $0xe4] ss:$8 sps:$4 sm:$0xff]  }
  0x16   :  { %v992_v1 = vld [vmem:[%s1396_s3 + $0xe0] ss:$8 sps:$4 sm:$0xff]   ;;  %v993_v2 = vld [vmem:[%s1396_s3 + $0xf4] ss:$8 sps:$4 sm:$0xff]   ;;  %v995_v3 = vld [vmem:[%s1396_s3 + $0xf0] ss:$8 sps:$4 sm:$0xff]  }
  0x17   :  { %255 = vmatpush1.bf16.msra.mxu0 %v917_v11  ;;  %v996_v4 = vld [vmem:[%s1397_s5] ss:$8 sps:$4 sm:$0xff]   ;;  %v998_v5 = vld [vmem:[%s1397_s5 + $0x4] ss:$8 sps:$4 sm:$0xff]   ;;  %v1001_v6 = vld [vmem:[%s1397_s5 + $0x14] ss:$8 sps:$4 sm:$0xff]  }
  0x18   :  { %256 = vmatprep.subr.bf16.mxu0 %v918_v12  ;;  %502 = vmatpush1.bf16.msra.mxu1 %v962_v33  ;;  %v999_v7 = vld [vmem:[%s1397_s5 + $0x10] ss:$8 sps:$4 sm:$0xff]   ;;  %v1004_v8 = vld [vmem:[%s1397_s5 + $0x24] ss:$8 sps:$4 sm:$0xff]   ;;  %v1002_v9 = vld [vmem:[%s1397_s5 + $0x20] ss:$8 sps:$4 sm:$0xff]  }
  0x19   :  { %503 = vmatprep.subr.bf16.mxu1 %v963_v34  ;;  %v1007_v10 = vld [vmem:[%s1397_s5 + $0x34] ss:$8 sps:$4 sm:$0xff]   ;;  %v1005_v11 = vld [vmem:[%s1397_s5 + $0x30] ss:$8 sps:$4 sm:$0xff]   ;;  %v1010_v12 = vld [vmem:[%s1397_s5 + $0x44] ss:$8 sps:$4 sm:$0xff]  }
  0x1a   :  { %v1013_v14 = vld [vmem:[%s1397_s5 + $0x54] ss:$8 sps:$4 sm:$0xff]   ;;  %v1011_v15 = vld [vmem:[%s1397_s5 + $0x50] ss:$8 sps:$4 sm:$0xff]   ;;  %v1016_v16 = vld [vmem:[%s1397_s5 + $0x64] ss:$8 sps:$4 sm:$0xff]  }
  0x1b   :  { %257 = vmatpush1.bf16.msra.mxu0 %v920_v13  ;;  %v1008_v13 = vld [vmem:[%s1397_s5 + $0x40] ss:$8 sps:$4 sm:$0xff]   ;;  %v1017_v19 = vld [vmem:[%s1397_s5 + $0x70] ss:$8 sps:$4 sm:$0xff]   ;;  %v1022_v20 = vld [vmem:[%s1397_s5 + $0x84] ss:$8 sps:$4 sm:$0xff]  }
  0x1c   :  { %258 = vmatprep.subr.bf16.mxu0 %v921_v18  ;;  %504 = vmatpush1.bf16.msra.mxu1 %v965_v37  ;;  %v1014_v17 = vld [vmem:[%s1397_s5 + $0x60] ss:$8 sps:$4 sm:$0xff]   ;;  %v1019_v18 = vld [vmem:[%s1397_s5 + $0x74] ss:$8 sps:$4 sm:$0xff]  }
  0x1d   :  { %505 = vmatprep.subr.bf16.mxu1 %v966_v38  ;;  %v1020_v21 = vld [vmem:[%s1397_s5 + $0x80] ss:$8 sps:$4 sm:$0xff]   ;;  %v1025_v22 = vld [vmem:[%s1397_s5 + $0x94] ss:$8 sps:$4 sm:$0xff]  }
  0x1e   :  { %v1026_v25 = vld [vmem:[%s1397_s5 + $0xa0] ss:$8 sps:$4 sm:$0xff]   ;;  %v1031_v26 = vld [vmem:[%s1397_s5 + $0xb4] ss:$8 sps:$4 sm:$0xff]  }
  0x1f   :  { %259 = vmatpush1.bf16.msra.mxu0 %v923_v23  ;;  %v1023_v23 = vld [vmem:[%s1397_s5 + $0x90] ss:$8 sps:$4 sm:$0xff]   ;;  %v1032_v29 = vld [vmem:[%s1397_s5 + $0xc0] ss:$8 sps:$4 sm:$0xff]   ;;  %v1037_v30 = vld [vmem:[%s1397_s5 + $0xd4] ss:$8 sps:$4 sm:$0xff]  }
  0x20   :  { %260 = vmatprep.subr.bf16.mxu0 %v924_v24  ;;  %506 = vmatpush1.bf16.msra.mxu1 %v968_v41  ;;  %v1028_v24 = vld [vmem:[%s1397_s5 + $0xa4] ss:$8 sps:$4 sm:$0xff]  }
  0x21   :  { %507 = vmatprep.subr.bf16.mxu1 %v969_v42 }
  0x23   :  { %261 = vmatpush1.bf16.msra.mxu0 %v926_v27  ;;  %v1029_v27 = vld [vmem:[%s1397_s5 + $0xb0] ss:$8 sps:$4 sm:$0xff]  }
  0x24   :  { %262 = vmatprep.subr.bf16.mxu0 %v927_v28  ;;  %508 = vmatpush1.bf16.msra.mxu1 %v971_v45  ;;  %v1034_v28 = vld [vmem:[%s1397_s5 + $0xc4] ss:$8 sps:$4 sm:$0xff]  }
  0x25   :  { %509 = vmatprep.subr.bf16.mxu1 %v972_v46 }
  0x27   :  { %263 = vmatpush1.bf16.msra.mxu0 %v929_v31  ;;  %v1035_v31 = vld [vmem:[%s1397_s5 + $0xd0] ss:$8 sps:$4 sm:$0xff]  }
  0x28   :  { %264 = vmatprep.subr.bf16.mxu0 %v930_v32  ;;  %510 = vmatpush1.bf16.msra.mxu1 %v974_v49  ;;  %v74_v32 = vlaneseq  ;;  %v1040_v49 = vld [vmem:[%s1397_s5 + $0xe4] ss:$8 sps:$4 sm:$0xff]  }
  0x29   :  { %511 = vmatprep.subr.bf16.mxu1 %v975_v50  ;;  %v1038_v50 = vld [vmem:[%s1397_s5 + $0xe0] ss:$8 sps:$4 sm:$0xff]  }
  0x2a   :  { %v75_v33 = vshrl.u32 %v74_v32, 7 }
  0x2b   :  { %265 = vmatpush1.bf16.msra.mxu0 %v932_v35  ;;  %v72_v35 = vld [vmem:[%s1398_s2] sm:$0x3] }
  0x2c   :  { %266 = vmatprep.subr.bf16.mxu0 %v933_v36  ;;  %512 = vmatpush1.bf16.msra.mxu1 %v977_v53  ;;  %v76_v34 = vsub.s32 0, %v75_v33  ;;  %v80_v36 = vsub.s32 1, %v75_v33  ;;  %v321_v53 = vld [vmem:[%s1399_s4] sm:$0x3] }
  0x2d   :  { %513 = vmatprep.subr.bf16.mxu1 %v978_v54 }
  0x2e   :  { %v77_v37 = vrot.slane %v72_v35, %v76_v34  ;;  %v81_v38 = vrot.slane %v72_v35, %v80_v36  ;;  %v326_v54 = vrot.slane %v321_v53, %v76_v34 }
  0x2f   :  { %267 = vmatpush1.bf16.msra.mxu0 %v935_v39 }
  0x30   :  { %268 = vmatprep.subr.bf16.mxu0 %v936_v40  ;;  %514 = vmatpush1.bf16.msra.mxu1 %v980_v56 }
  0x31   :  { %515 = vmatprep.subr.bf16.mxu1 %v981_v58 }
  0x33   :  { %269 = vmatpush1.bf16.msra.mxu0 %v938_v43 }
  0x34   :  { %270 = vmatprep.subr.bf16.mxu0 %v939_v44  ;;  %516 = vmatpush1.bf16.msra.mxu1 %v983_v59 }
  0x35   :  { %517 = vmatprep.subr.bf16.mxu1 %v984_v60 }
  0x37   :  { %271 = vmatpush1.bf16.msra.mxu0 %v941_v47 }
  0x38   :  { %272 = vmatprep.subr.bf16.mxu0 %v942_v48  ;;  %518 = vmatpush1.bf16.msra.mxu1 %v986_v61 }
  0x39   :  { %519 = vmatprep.subr.bf16.mxu1 %v987_v62 }
  0x3b   :  { %273 = vmatpush1.bf16.msra.mxu0 %v944_v51  ;;  %v1043_v51 = vld [vmem:[%s1397_s5 + $0xf4] ss:$8 sps:$4 sm:$0xff]  }
  0x3c   :  { %274 = vmatprep.subr.bf16.mxu0 %v945_v52  ;;  %520 = vmatpush1.bf16.msra.mxu1 %v989_v63  ;;  %v1041_v52 = vld [vmem:[%s1397_s5 + $0xf0] ss:$8 sps:$4 sm:$0xff]  }
  0x3d   :  { %521 = vmatprep.subr.bf16.mxu1 %v990_v0 }
  0x3f   :  { %275 = vmatpush1.bf16.msra.mxu0 %v947_v55  ;;  %v330_v55 = vrot.slane %v321_v53, %v80_v36 }
  0x40   :  { %522 = vmatpush1.bf16.msra.mxu1 %v992_v1  ;;  %742 = vmatprep.subr.bf16.mxu0 %v998_v5 }
  0x41   :  { %523 = vmatprep.subr.bf16.mxu1 %v993_v2  ;;  %v570_v2 = vld [vmem:[%s1400_s6] sm:$0x3] }
  0x42   :  { %277 = vmatmul.mubr.bf16.vlgmr.msra.gmra.mrb[0].mxu0 %v38_v57  ;;  %v575_v5 = vrot.slane %v570_v2, %v76_v34 }
  0x43   :  { %743 = vmatpush1.bf16.msra.mxu0 %v996_v4 }
  0x44   :  { %524 = vmatpush1.bf16.msra.mxu1 %v995_v3  ;;  %744 = vmatprep.subr.bf16.mxu0 %v1001_v6  ;;  %v1044_v3 = vmov 1983009808   ;;  %v579_v6 = vrot.slane %v570_v2, %v80_v36 }
  0x45   :  { %v787_v4 = vunpack.c.l.s4 %v1044_v3 }
  0x47   :  { %745 = vmatpush1.bf16.msra.mxu0 %v999_v7  ;;  %v788_v7 = vunpack.c.0.s8 %v787_v4 }
  0x48   :  { %746 = vmatprep.subr.bf16.mxu0 %v1004_v8 }
  0x4b   :  { %747 = vmatpush1.bf16.msra.mxu0 %v1002_v9 }
  0x4c   :  { %748 = vmatprep.subr.bf16.mxu0 %v1007_v10 }
  0x4f   :  { %749 = vmatpush1.bf16.msra.mxu0 %v1005_v11 }
  0x50   :  { %750 = vmatprep.subr.bf16.mxu0 %v1010_v12  ;;  %v791_v12 = vsub.s32 %v788_v7, %v75_v33 }
  0x53   :  { %751 = vmatpush1.bf16.msra.mxu0 %v1008_v13 }
  0x54   :  { %752 = vmatprep.subr.bf16.mxu0 %v1013_v14 }
  0x57   :  { %753 = vmatpush1.bf16.msra.mxu0 %v1011_v15 }
  0x58   :  { %754 = vmatprep.subr.bf16.mxu0 %v1016_v16 }
  0x5b   :  { %755 = vmatpush1.bf16.msra.mxu0 %v1014_v17 }
  0x5c   :  { %756 = vmatprep.subr.bf16.mxu0 %v1019_v18 }
  0x5f   :  { %757 = vmatpush1.bf16.msra.mxu0 %v1017_v19 }
  0x60   :  { %758 = vmatprep.subr.bf16.mxu0 %v1022_v20 }
  0x63   :  { %759 = vmatpush1.bf16.msra.mxu0 %v1020_v21 }
  0x64   :  { %760 = vmatprep.subr.bf16.mxu0 %v1025_v22 }
  0x67   :  { %761 = vmatpush1.bf16.msra.mxu0 %v1023_v23 }
  0x68   :  { %762 = vmatprep.subr.bf16.mxu0 %v1028_v24 }
  0x6b   :  { %763 = vmatpush1.bf16.msra.mxu0 %v1026_v25 }
  0x6c   :  { %764 = vmatprep.subr.bf16.mxu0 %v1031_v26 }
  0x6f   :  { %765 = vmatpush1.bf16.msra.mxu0 %v1029_v27 }
  0x70   :  { %766 = vmatprep.subr.bf16.mxu0 %v1034_v28 }
  0x73   :  { %767 = vmatpush1.bf16.msra.mxu0 %v1032_v29 }
  0x74   :  { %768 = vmatprep.subr.bf16.mxu0 %v1037_v30 }
  0x77   :  { %769 = vmatpush1.bf16.msra.mxu0 %v1035_v31 }
  0x78   :  { %770 = vmatprep.subr.bf16.mxu0 %v1040_v49 }
  0x7b   :  { %771 = vmatpush1.bf16.msra.mxu0 %v1038_v50 }
  0x7c   :  { %772 = vmatprep.subr.bf16.mxu0 %v1043_v51 }
  0x7f   :  { %773 = vmatpush1.bf16.msra.mxu0 %v1041_v52 }
 0x115   :  { %v278_v39 = vpop.f32.mrb[0].mxu0 }
 0x116   :  { %v279_v40 = vadd.f32 %v278_v39, %v77_v37  ;;  %v280_v41 = vpop.f32.mrb[1].mxu0 }
 0x117   :  { %v281_v42 = vadd.f32 %v280_v41, %v81_v38  ;;  %v282_v43 = vpop.f32.mrb[2].mxu0 }
 0x118   :  { %v285_v44 = vmax.f32 %v279_v40, 0.0  ;;  %v283_v45 = vpop.f32.mrb[3].mxu0 }
 0x119   :  { %v286_v46 = vmax.f32 %v281_v42, 0.0 }
 0x11a   :  { %v287_v48 = vpack.c.bf16 %v285_v44, %v285_v44 }
 0x11b   :  { %v288_v47 = vpack.c.bf16 %v286_v46, %v286_v46 }
 0x11d   :  { %525 = vmatprep.mubr.bf16.mxu1 %v288_v47 }
 0x11e   :  { %526 = vmatmul.mubr.bf16.vlgmr.msra.gmra.mrb[0].mxu1 %v287_v48 }
 0x1f1   :  { %v527_v56 = vpop.f32.mrb[0].mxu1 }
 0x1f2   :  { %v528_v57 = vadd.f32 %v527_v56, %v326_v54  ;;  %v529_v58 = vpop.f32.mrb[1].mxu1 }
 0x1f3   :  { %v530_v59 = vadd.f32 %v529_v58, %v330_v55  ;;  %v531_v60 = vpop.f32.mrb[2].mxu1 }
 0x1f4   :  { %v534_v61 = vmax.f32 %v528_v57, 0.0  ;;  %v532_v62 = vpop.f32.mrb[3].mxu1 }
 0x1f5   :  { %v535_v63 = vmax.f32 %v530_v59, 0.0 }
 0x1f6   :  { %v536_v1 = vpack.c.bf16 %v534_v61, %v534_v61 }
 0x1f7   :  { %v537_v0 = vpack.c.bf16 %v535_v63, %v535_v63 }
 0x1f9   :  { %774 = vmatprep.mubr.bf16.mxu0 %v537_v0 }
 0x1fa   :  { %775 = vmatmul.mubr.bf16.vlgmr.msra.gmra.mrb[4].mxu0 %v536_v1 }
 0x2cd   :  { %v776_v8 = vpop.f32.mrb[4].mxu0 }
 0x2ce   :  { %v777_v9 = vadd.f32 %v776_v8, %v575_v5  ;;  %v778_v10 = vpop.f32.mrb[5].mxu0 }
 0x2cf   :  { %v779_v11 = vadd.f32 %v778_v10, %v579_v6  ;;  %v780_v13 = vpop.f32.mrb[6].mxu0 }
 0x2d0   :  { %v781_v14 = vpop.f32.mrb[7].mxu0 }
 0x2d1   :  { %v785_v15 = vcombine.low %v777_v9, %v779_v11 }
 0x2d3   :  { %v792_v16 = vrot.slane %v785_v15, %v791_v12 }
 0x2d5   :  { %797 = vst.msk [vmem:[%s1401_s7] sm:$0xf] %vm796_vm2, %v792_v16 }

// kernel: pcn_decoder.3
= control target key start
LH: loop header
LB: loop body
LE: loop exit
PB: predicated region body
PF: predicated region fallthrough
CT: control target
= control target key end

     0   :  { %s5522_s30 = smov 0   ;;  %s5524_s10 = smov 0   ;;  %s7738_s0 = inlined_call_operand.vmem [shape: f32[2,256,1], index: 0, kind: input, shape index: {}]   ;;  %s7739_s1 = inlined_call_operand.vmem [shape: f32[2,8,1024], index: 1, kind: input, shape index: {}]   ;;  %s7740_s2 = inlined_call_operand.vmem [shape: bf16[256,8], index: 2, kind: input, shape index: {}]   ;;  %s7741_s3 = inlined_call_operand.vmem [shape: f32[256,1], index: 3, kind: input, shape index: {}]   ;;  %s7742_s4 = inlined_call_operand.vmem [shape: bf16[256,256], index: 4, kind: input, shape index: {}]   ;;  %s7743_s5 = inlined_call_operand.vmem [shape: f32[256,1], index: 5, kind: input, shape index: {}]   ;;  %s7744_s6 = inlined_call_operand.vmem [shape: f32[256,1], index: 6, kind: input, shape index: {}]   ;;  %s7745_s7 = inlined_call_operand.vmem [shape: bf16[3,256], index: 7, kind: input, shape index: {}]   ;;  %s7746_s8 = inlined_call_operand.vmem [shape: f32[3,1], index: 8, kind: input, shape index: {}]   ;;  %s7747_s9 = inlined_call_operand.vmem [shape: f32[2,3,1024], index: 9, kind: output, shape index: {}]  }
   0x1   :  { %s5526_s11 = smov 0  }
   0x2 LB: > { %s31_s12 = sadd.s32 1, %s5465_s10  ;;  %p5204_p0 = scmp.ge.s32.totalorder %s5469_s11, 1  ;;  %s5469_s11 = sphi %s5526_s11, %s19_s11   ;;  %s5465_s10 = sphi %s5524_s10, %s7956_s10   ;;  %s5461_s30 = sphi %s5522_s30, %s7955_s30  }
   0x3   : > { %p33_p1 = scmp.ge.s32.totalorder %s31_s12, 2  ;;  %p318_p2 = scmp.lt.s32.totalorder %s5469_s11, 3 }
   0x5   : > { %s7958_s12 = smov (%p33_p1, %s31_s12), 0  ;;  %p319_p3 = pnand %p5204_p0, %p318_p2 }
   0x7   : > { %322 = sbr.rel (%p319_p3) target bundleno = 1072 (0x430), region = 56 }
   0xe   : > { %v1399_v0 = vld [vmem:[%s7741_s3] sm:$0xff]  ;;  %p367_p4 = scmp.lt.s32.totalorder %s5461_s30, 1  ;;  %v7748_v1 = vmov 0   ;;  %v1400_v2 = vld [vmem:[%s7741_s3 + $0x8] sm:$0xff]  ;;  %vm602_vm0 = vcmask 1043456   ;;  %v1401_v8 = vld [vmem:[%s7741_s3 + $0x10] sm:$0xff] }
   0xf   : > { %5358 = vset.pattern.permute.xlu0 %v7748_v1  ;;  %5359 = vset.pattern.permute.xlu1 %v7748_v1  ;;  %v5584_v22 = vld [vmem:[%s7740_s2] sm:$0xff]   ;;  %vm553_vm1 = vcmask 64512   ;;  %v1402_v27 = vld [vmem:[%s7741_s3 + $0x18] sm:$0xff]  ;;  %v5607_v31 = vld [vmem:[%s7740_s2 + $0x8] sm:$0xff]  }
  0x10   : > { %1433 = vperm.xlu0 %5358, %v1399_v0   ;;  %s7960_s30 = smov (!%p367_p4, %s5461_s30), 1  ;;  %659 = vmatprep.mubr.bf16.mxu0 %v7748_v1  ;;  %v1403_v29 = vld [vmem:[%s7741_s3 + $0x20] sm:$0xff]  ;;  %v1404_v33 = vld [vmem:[%s7741_s3 + $0x28] sm:$0xff]  ;;  %v1405_v34 = vld [vmem:[%s7741_s3 + $0x30] sm:$0xff] }
  0x11   : > { %852 = vmatprep.mubr.bf16.mxu1 %v7748_v1  ;;  %s5330_s17 = sshll.u32 %s7960_s30, 8  ;;  %s5331_s18 = sshll.u32 %s7960_s30, 6  ;;  %v5626_v36 = vld [vmem:[%s7740_s2 + $0x10] sm:$0xff]   ;;  %v1406_v38 = vld [vmem:[%s7741_s3 + $0x38] sm:$0xff]  ;;  %v1407_v39 = vld [vmem:[%s7741_s3 + $0x40] sm:$0xff] }
  0x12   : > { %s5557_s21 = scalar_lea.vmem %s7738_s0, %s5330_s17  ;;  %s5562_s24 = scalar_lea.vmem %s7739_s1, %s5331_s18  ;;  %v5645_v41 = vld [vmem:[%s7740_s2 + $0x18] sm:$0xff]   ;;  %v1408_v43 = vld [vmem:[%s7741_s3 + $0x48] sm:$0xff]  ;;  %v1409_v44 = vld [vmem:[%s7741_s3 + $0x50] sm:$0xff] }
  0x13   : > { %v401_v3 = vld [vmem:[%s5557_s21] sm:$0xff]  ;;  %v394_v4 = vld [vmem:[%s5562_s24 + $0x8] sm:$0xff]  ;;  %v396_v5 = vld [vmem:[%s5562_s24 + $0x18] sm:$0xff]  ;;  %s5332_s29 = sshll.u32 %s7960_s30, 5 }
  0x14   : > { %1438 = vperm.xlu0 %5358, %v1400_v2   ;;  %1849 = vperm.xlu1 %5359, %v401_v3   ;;  %v466_v6 = vpack.c.bf16 %v394_v4, %v394_v4  ;;  %v468_v7 = vpack.c.bf16 %v396_v5, %v396_v5  ;;  %v393_v9 = vld [vmem:[%s5562_s24] sm:$0xff]  ;;  %v395_v10 = vld [vmem:[%s5562_s24 + $0x10] sm:$0xff]  ;;  %v398_v13 = vld [vmem:[%s5562_s24 + $0x28] sm:$0xff]  ;;  %s390_s15 = scalar_lea.vmem %s7747_s9, %s5332_s29 }
  0x15   : > { %v465_v11 = vpack.c.bf16 %v393_v9, %v393_v9  ;;  %v467_v12 = vpack.c.bf16 %v395_v10, %v395_v10  ;;  %v400_v14 = vld [vmem:[%s5562_s24 + $0x38] sm:$0xff]  ;;  %v402_v15 = vld [vmem:[%s5557_s21 + $0x8] sm:$0xff]  ;;  %v470_v16 = vpack.c.bf16 %v398_v13, %v398_v13  ;;  %v397_v18 = vld [vmem:[%s5562_s24 + $0x20] sm:$0xff] }
  0x16   : > { %5227 = vmatprep.subr.msk.bf16.mxu0 %vm602_vm0, %v466_v6  ;;  %5244 = vmatprep.subr.msk.bf16.mxu1 %vm602_vm0, %v468_v7  ;;  %v472_v17 = vpack.c.bf16 %v400_v14, %v400_v14  ;;  %v399_v19 = vld [vmem:[%s5562_s24 + $0x30] sm:$0xff]  ;;  %v469_v23 = vpack.c.bf16 %v397_v18, %v397_v18  ;;  %v404_v30 = vld [vmem:[%s5557_s21 + $0x18] sm:$0xff]  ;;  %v405_v32 = vld [vmem:[%s5557_s21 + $0x20] sm:$0xff] }
  0x17   : > { %v604_v20 = vsel %vm602_vm0, %v465_v11, 0  ;;  %v610_v21 = vsel %vm602_vm0, %v467_v12, 0  ;;  %v471_v24 = vpack.c.bf16 %v399_v19, %v399_v19  ;;  %v403_v25 = vld [vmem:[%s5557_s21 + $0x10] sm:$0xff]  ;;  %v406_v35 = vld [vmem:[%s5557_s21 + $0x28] sm:$0xff]  ;;  %v408_v40 = vld [vmem:[%s5557_s21 + $0x38] sm:$0xff] }
  0x18   : > { %1443 = vperm.xlu0 %5358, %v1401_v8   ;;  %628 = vmatpush1.bf16.msra.mxu0 %v604_v20  ;;  %v616_v26 = vsel %vm602_vm0, %v469_v23, 0  ;;  %v407_v37 = vld [vmem:[%s5557_s21 + $0x30] sm:$0xff]  ;;  %v409_v42 = vld [vmem:[%s5557_s21 + $0x40] sm:$0xff]  ;;  %v410_v45 = vld [vmem:[%s5557_s21 + $0x48] sm:$0xff] }
  0x19   : > { %821 = vmatpush1.bf16.msra.mxu1 %v610_v21  ;;  %1854 = vperm.xlu1 %5359, %v402_v15   ;;  %v622_v28 = vsel %vm602_vm0, %v471_v24, 0  ;;  %v5664_v46 = vld [vmem:[%s7740_s2 + $0x20] sm:$0xff]   ;;  %v411_v47 = vld [vmem:[%s5557_s21 + $0x50] sm:$0xff]  ;;  %v1410_v48 = vld [vmem:[%s7741_s3 + $0x58] sm:$0xff] }
  0x1a   : > { %5261 = vmatprep.subr.msk.bf16.mxu0 %vm602_vm0, %v470_v16  ;;  %5278 = vmatprep.subr.msk.bf16.mxu1 %vm602_vm0, %v472_v17  ;;  %v1411_v49 = vld [vmem:[%s7741_s3 + $0x60] sm:$0xff]  ;;  %v412_v50 = vld [vmem:[%s5557_s21 + $0x58] sm:$0xff]  ;;  %v5683_v51 = vld [vmem:[%s7740_s2 + $0x28] sm:$0xff]  }
  0x1b   : > { %5228 = vmatmul.mubr.msk.bf16.vlgmr.msra.gmra.mrb[0].mxu0 %vm553_vm1, %v5584_v22  ;;  %v413_v52 = vld [vmem:[%s5557_s21 + $0x60] sm:$0xff]  ;;  %v1412_v53 = vld [vmem:[%s7741_s3 + $0x68] sm:$0xff]  ;;  %v1413_v54 = vld [vmem:[%s7741_s3 + $0x70] sm:$0xff] }
  0x1c   : > { %5245 = vmatmul.mubr.msk.bf16.vlgmr.msra.gmra.mrb[0].mxu1 %vm553_vm1, %v5584_v22  ;;  %1859 = vperm.xlu0 %5358, %v403_v25   ;;  %v414_v55 = vld [vmem:[%s5557_s21 + $0x68] sm:$0xff]  ;;  %v5702_v56 = vld [vmem:[%s7740_s2 + $0x30] sm:$0xff]   ;;  %v1414_v58 = vld [vmem:[%s7741_s3 + $0x78] sm:$0xff] }
  0x1d   : > { %1014 = vmatpush1.bf16.msra.mxu0 %v616_v26  ;;  %1448 = vperm.xlu1 %5359, %v1402_v27   ;;  %v415_v57 = vld [vmem:[%s5557_s21 + $0x70] sm:$0xff]  ;;  %v1415_v59 = vld [vmem:[%s7741_s3 + $0x80] sm:$0xff]  ;;  %v416_v60 = vld [vmem:[%s5557_s21 + $0x78] sm:$0xff] }
  0x1e   : > { %1207 = vmatpush1.bf16.msra.mxu1 %v622_v28  ;;  %669 = vmatprep.mubr.bf16.mxu0 %v7748_v1  ;;  %v5721_v61 = vld [vmem:[%s7740_s2 + $0x38] sm:$0xff]   ;;  %v417_v62 = vld [vmem:[%s5557_s21 + $0x80] sm:$0xff]  ;;  %v1416_v63 = vld [vmem:[%s7741_s3 + $0x88] sm:$0xff] }
  0x1f   : > { %862 = vmatprep.mubr.bf16.mxu1 %v7748_v1  ;;  %v1417_v0 = vld [vmem:[%s7741_s3 + $0x90] sm:$0xff]  ;;  %v418_v2 = vld [vmem:[%s5557_s21 + $0x88] sm:$0xff]  ;;  %v5740_v3 = vld [vmem:[%s7740_s2 + $0x40] sm:$0xff]  }
  0x20   : > { %1453 = vperm.xlu0 %5358, %v1403_v29   ;;  %v419_v4 = vld [vmem:[%s5557_s21 + $0x90] sm:$0xff]  ;;  %v1418_v5 = vld [vmem:[%s7741_s3 + $0x98] sm:$0xff]  ;;  %v1419_v6 = vld [vmem:[%s7741_s3 + $0xa0] sm:$0xff] }
  0x21   : > { %1864 = vperm.xlu1 %5359, %v404_v30   ;;  %v420_v7 = vld [vmem:[%s5557_s21 + $0x98] sm:$0xff]  ;;  %v5759_v8 = vld [vmem:[%s7740_s2 + $0x48] sm:$0xff]   ;;  %v421_v9 = vld [vmem:[%s5557_s21 + $0xa0] sm:$0xff] }
  0x22   : > { %v1420_v10 = vld [vmem:[%s7741_s3 + $0xa8] sm:$0xff]  ;;  %v1421_v11 = vld [vmem:[%s7741_s3 + $0xb0] sm:$0xff]  ;;  %v1422_v15 = vld [vmem:[%s7741_s3 + $0xb8] sm:$0xff] }
  0x23   : > { %5229 = vmatmul.mubr.msk.bf16.gmra.mrb[4].mxu0 %vm553_vm1, %v5607_v31  ;;  %v422_v12 = vld [vmem:[%s5557_s21 + $0xa8] sm:$0xff]  ;;  %v5778_v13 = vld [vmem:[%s7740_s2 + $0x50] sm:$0xff]   ;;  %v1423_v16 = vld [vmem:[%s7741_s3 + $0xc0] sm:$0xff] }
  0x24   : > { %5246 = vmatmul.mubr.msk.bf16.gmra.mrb[4].mxu1 %vm553_vm1, %v5607_v31  ;;  %1869 = vperm.xlu0 %5358, %v405_v32   ;;  %v423_v14 = vld [vmem:[%s5557_s21 + $0xb0] sm:$0xff]  ;;  %v424_v17 = vld [vmem:[%s5557_s21 + $0xb8] sm:$0xff]  ;;  %v425_v19 = vld [vmem:[%s5557_s21 + $0xc0] sm:$0xff] }
  0x25   : > { %679 = vmatprep.mubr.bf16.mxu0 %v7748_v1  ;;  %1458 = vperm.xlu1 %5359, %v1404_v33   ;;  %v5797_v18 = vld [vmem:[%s7740_s2 + $0x58] sm:$0xff]   ;;  %v1424_v20 = vld [vmem:[%s7741_s3 + $0xc8] sm:$0xff]  ;;  %v1425_v21 = vld [vmem:[%s7741_s3 + $0xd0] sm:$0xff] }
  0x26   : > { %872 = vmatprep.mubr.bf16.mxu1 %v7748_v1  ;;  %v426_v23 = vld [vmem:[%s5557_s21 + $0xc8] sm:$0xff]  ;;  %v5816_v24 = vld [vmem:[%s7740_s2 + $0x60] sm:$0xff]   ;;  %v427_v25 = vld [vmem:[%s5557_s21 + $0xd0] sm:$0xff] }
  0x27   : > { %v1426_v26 = vld [vmem:[%s7741_s3 + $0xd8] sm:$0xff]  ;;  %v1427_v27 = vld [vmem:[%s7741_s3 + $0xe0] sm:$0xff]  ;;  %v5835_v29 = vld [vmem:[%s7740_s2 + $0x68] sm:$0xff]  }
  0x28   : > { %1463 = vperm.xlu0 %5358, %v1405_v34   ;;  %v428_v28 = vld [vmem:[%s5557_s21 + $0xd8] sm:$0xff]  ;;  %v429_v30 = vld [vmem:[%s5557_s21 + $0xe0] sm:$0xff]  ;;  %v1428_v32 = vld [vmem:[%s7741_s3 + $0xe8] sm:$0xff] }
  0x29   : > { %1874 = vperm.xlu1 %5359, %v406_v35   ;;  %v1429_v33 = vld [vmem:[%s7741_s3 + $0xf0] sm:$0xff]  ;;  %v430_v34 = vld [vmem:[%s5557_s21 + $0xe8] sm:$0xff] }
  0x2a   : > { %v5854_v35 = vld [vmem:[%s7740_s2 + $0x70] sm:$0xff]  }
  0x2b   : > { %5230 = vmatmul.mubr.msk.bf16.gmra.mrb[8].mxu0 %vm553_vm1, %v5626_v36 }
  0x2c   : > { %5247 = vmatmul.mubr.msk.bf16.gmra.mrb[8].mxu1 %vm553_vm1, %v5626_v36  ;;  %1879 = vperm.xlu0 %5358, %v407_v37   ;;  %v431_v37 = vld [vmem:[%s5557_s21 + $0xf0] sm:$0xff] }
  0x2d   : > { %689 = vmatprep.mubr.bf16.mxu0 %v7748_v1  ;;  %1468 = vperm.xlu1 %5359, %v1406_v38   ;;  %v1430_v38 = vld [vmem:[%s7741_s3 + $0xf8] sm:$0xff] }
  0x2e   : > { %882 = vmatprep.mubr.bf16.mxu1 %v7748_v1 }
  0x30   : > { %1473 = vperm.xlu0 %5358, %v1407_v39   ;;  %v3611_v39 = vld [vmem:[%s7743_s5] sm:$0xff] }
  0x31   : > { %1884 = vperm.xlu1 %5359, %v408_v40   ;;  %v432_v40 = vld [vmem:[%s5557_s21 + $0xf8] sm:$0xff] }
  0x33   : > { %5231 = vmatmul.mubr.msk.bf16.gmra.mrb[12].mxu0 %vm553_vm1, %v5645_v41 }
  0x34   : > { %5248 = vmatmul.mubr.msk.bf16.gmra.mrb[12].mxu1 %vm553_vm1, %v5645_v41  ;;  %1889 = vperm.xlu0 %5358, %v409_v42   ;;  %v5873_v42 = vld [vmem:[%s7740_s2 + $0x78] sm:$0xff]  }
  0x35   : > { %699 = vmatprep.mubr.bf16.mxu0 %v7748_v1  ;;  %1478 = vperm.xlu1 %5359, %v1408_v43   ;;  %v4059_v43 = vld [vmem:[%s7744_s6] sm:$0xff] }
  0x36   : > { %892 = vmatprep.mubr.bf16.mxu1 %v7748_v1 }
  0x38   : > { %1483 = vperm.xlu0 %5358, %v1409_v44   ;;  %v3612_v44 = vld [vmem:[%s7743_s5 + $0x8] sm:$0xff] }
  0x39   : > { %1894 = vperm.xlu1 %5359, %v410_v45  }
  0x3b   : > { %5232 = vmatmul.mubr.msk.bf16.gmra.mrb[16].mxu0 %vm553_vm1, %v5664_v46 }
  0x3c   : > { %5249 = vmatmul.mubr.msk.bf16.gmra.mrb[16].mxu1 %vm553_vm1, %v5664_v46  ;;  %1899 = vperm.xlu0 %5358, %v411_v47  }
  0x3d   : > { %709 = vmatprep.mubr.bf16.mxu0 %v7748_v1  ;;  %1488 = vperm.xlu1 %5359, %v1410_v48   ;;  %v3613_v48 = vld [vmem:[%s7743_s5 + $0x10] sm:$0xff] }
  0x3e   : > { %902 = vmatprep.mubr.bf16.mxu1 %v7748_v1 }
  0x40   : > { %1493 = vperm.xlu0 %5358, %v1411_v49   ;;  %v4060_v49 = vld [vmem:[%s7744_s6 + $0x8] sm:$0xff] }
  0x41   : > { %1904 = vperm.xlu1 %5359, %v412_v50  }
  0x43   : > { %5233 = vmatmul.mubr.msk.bf16.gmra.mrb[20].mxu0 %vm553_vm1, %v5683_v51 }
  0x44   : > { %5250 = vmatmul.mubr.msk.bf16.gmra.mrb[20].mxu1 %vm553_vm1, %v5683_v51  ;;  %1909 = vperm.xlu0 %5358, %v413_v52  }
  0x45   : > { %719 = vmatprep.mubr.bf16.mxu0 %v7748_v1  ;;  %1498 = vperm.xlu1 %5359, %v1412_v53   ;;  %v4061_v53 = vld [vmem:[%s7744_s6 + $0x10] sm:$0xff] }
  0x46   : > { %912 = vmatprep.mubr.bf16.mxu1 %v7748_v1 }
  0x48   : > { %1503 = vperm.xlu0 %5358, %v1413_v54   ;;  %v3614_v54 = vld [vmem:[%s7743_s5 + $0x18] sm:$0xff] }
  0x49   : > { %1914 = vperm.xlu1 %5359, %v414_v55   ;;  %v3615_v55 = vld [vmem:[%s7743_s5 + $0x20] sm:$0xff] }
  0x4b   : > { %5234 = vmatmul.mubr.msk.bf16.gmra.mrb[24].mxu0 %vm553_vm1, %v5702_v56 }
  0x4c   : > { %5251 = vmatmul.mubr.msk.bf16.gmra.mrb[24].mxu1 %vm553_vm1, %v5702_v56  ;;  %1919 = vperm.xlu0 %5358, %v415_v57   ;;  %v4062_v57 = vld [vmem:[%s7744_s6 + $0x18] sm:$0xff] }
  0x4d   : > { %729 = vmatprep.mubr.bf16.mxu0 %v7748_v1  ;;  %1508 = vperm.xlu1 %5359, %v1414_v58  }
  0x4e   : > { %922 = vmatprep.mubr.bf16.mxu1 %v7748_v1 }
  0x50   : > { %1513 = vperm.xlu0 %5358, %v1415_v59  }
  0x51   : > { %1924 = vperm.xlu1 %5359, %v416_v60   ;;  %v3616_v60 = vld [vmem:[%s7743_s5 + $0x28] sm:$0xff] }
  0x53   : > { %5235 = vmatmul.mubr.msk.bf16.gmra.mrb[28].mxu0 %vm553_vm1, %v5721_v61 }
  0x54   : > { %5252 = vmatmul.mubr.msk.bf16.gmra.mrb[28].mxu1 %vm553_vm1, %v5721_v61  ;;  %1929 = vperm.xlu0 %5358, %v417_v62  }
  0x55   : > { %739 = vmatprep.mubr.bf16.mxu0 %v7748_v1  ;;  %1518 = vperm.xlu1 %5359, %v1416_v63  }
  0x56   : > { %932 = vmatprep.mubr.bf16.mxu1 %v7748_v1 }
  0x58   : > { %1523 = vperm.xlu0 %5358, %v1417_v0   ;;  %v3617_v0 = vld [vmem:[%s7743_s5 + $0x30] sm:$0xff] }
  0x59   : > { %1934 = vperm.xlu1 %5359, %v418_v2   ;;  %v4064_v2 = vld [vmem:[%s7744_s6 + $0x28] sm:$0xff] }
  0x5b   : > { %5236 = vmatmul.mubr.msk.bf16.gmra.mrb[32].mxu0 %vm553_vm1, %v5740_v3 }
  0x5c   : > { %5253 = vmatmul.mubr.msk.bf16.gmra.mrb[32].mxu1 %vm553_vm1, %v5740_v3  ;;  %1939 = vperm.xlu0 %5358, %v419_v4   ;;  %v3618_v4 = vld [vmem:[%s7743_s5 + $0x38] sm:$0xff] }
  0x5d   : > { %749 = vmatprep.mubr.bf16.mxu0 %v7748_v1  ;;  %1528 = vperm.xlu1 %5359, %v1418_v5  }
  0x5e   : > { %942 = vmatprep.mubr.bf16.mxu1 %v7748_v1 }
  0x60   : > { %1533 = vperm.xlu0 %5358, %v1419_v6  }
  0x61   : > { %1944 = vperm.xlu1 %5359, %v420_v7   ;;  %v3619_v7 = vld [vmem:[%s7743_s5 + $0x40] sm:$0xff] }
  0x63   : > { %5237 = vmatmul.mubr.msk.bf16.gmra.mrb[36].mxu0 %vm553_vm1, %v5759_v8 }
  0x64   : > { %5254 = vmatmul.mubr.msk.bf16.gmra.mrb[36].mxu1 %vm553_vm1, %v5759_v8  ;;  %1949 = vperm.xlu0 %5358, %v421_v9   ;;  %v4066_v9 = vld [vmem:[%s7744_s6 + $0x38] sm:$0xff] }
  0x65   : > { %759 = vmatprep.mubr.bf16.mxu0 %v7748_v1  ;;  %1538 = vperm.xlu1 %5359, %v1420_v10  }
  0x66   : > { %952 = vmatprep.mubr.bf16.mxu1 %v7748_v1 }
  0x68   : > { %1543 = vperm.xlu0 %5358, %v1421_v11  }
  0x69   : > { %1954 = vperm.xlu1 %5359, %v422_v12   ;;  %v3620_v12 = vld [vmem:[%s7743_s5 + $0x48] sm:$0xff] }
  0x6b   : > { %5238 = vmatmul.mubr.msk.bf16.gmra.mrb[40].mxu0 %vm553_vm1, %v5778_v13 }
  0x6c   : > { %5255 = vmatmul.mubr.msk.bf16.gmra.mrb[40].mxu1 %vm553_vm1, %v5778_v13  ;;  %1959 = vperm.xlu0 %5358, %v423_v14   ;;  %v3621_v14 = vld [vmem:[%s7743_s5 + $0x50] sm:$0xff] }
  0x6d   : > { %769 = vmatprep.mubr.bf16.mxu0 %v7748_v1  ;;  %1548 = vperm.xlu1 %5359, %v1422_v15   ;;  %v4068_v15 = vld [vmem:[%s7744_s6 + $0x48] sm:$0xff] }
  0x6e   : > { %962 = vmatprep.mubr.bf16.mxu1 %v7748_v1 }
  0x70   : > { %1553 = vperm.xlu0 %5358, %v1423_v16  }
  0x71   : > { %1964 = vperm.xlu1 %5359, %v424_v17  }
  0x73   : > { %5239 = vmatmul.mubr.msk.bf16.gmra.mrb[44].mxu0 %vm553_vm1, %v5797_v18 }
  0x74   : > { %5256 = vmatmul.mubr.msk.bf16.gmra.mrb[44].mxu1 %vm553_vm1, %v5797_v18  ;;  %1969 = vperm.xlu0 %5358, %v425_v19   ;;  %v3622_v19 = vld [vmem:[%s7743_s5 + $0x58] sm:$0xff] }
  0x75   : > { %779 = vmatprep.mubr.bf16.mxu0 %v7748_v1  ;;  %1558 = vperm.xlu1 %5359, %v1424_v20  }
  0x76   : > { %972 = vmatprep.mubr.bf16.mxu1 %v7748_v1 }
  0x78   : > { %1563 = vperm.xlu0 %5358, %v1425_v21  }
  0x79   : > { %1974 = vperm.xlu1 %5359, %v426_v23   ;;  %v3623_v23 = vld [vmem:[%s7743_s5 + $0x60] sm:$0xff] }
  0x7b   : > { %5240 = vmatmul.mubr.msk.bf16.gmra.mrb[48].mxu0 %vm553_vm1, %v5816_v24 }
  0x7c   : > { %5257 = vmatmul.mubr.msk.bf16.gmra.mrb[48].mxu1 %vm553_vm1, %v5816_v24  ;;  %1979 = vperm.xlu0 %5358, %v427_v25   ;;  %v4070_v25 = vld [vmem:[%s7744_s6 + $0x58] sm:$0xff] }
  0x7d   : > { %789 = vmatprep.mubr.bf16.mxu0 %v7748_v1  ;;  %1568 = vperm.xlu1 %5359, %v1426_v26   ;;  %v3624_v26 = vld [vmem:[%s7743_s5 + $0x68] sm:$0xff] }
  0x7e   : > { %982 = vmatprep.mubr.bf16.mxu1 %v7748_v1 }
  0x80   : > { %1573 = vperm.xlu0 %5358, %v1427_v27  }
  0x81   : > { %1984 = vperm.xlu1 %5359, %v428_v28  }
  0x83   : > { %5241 = vmatmul.mubr.msk.bf16.gmra.mrb[52].mxu0 %vm553_vm1, %v5835_v29 }
  0x84   : > { %5258 = vmatmul.mubr.msk.bf16.gmra.mrb[52].mxu1 %vm553_vm1, %v5835_v29  ;;  %1989 = vperm.xlu0 %5358, %v429_v30   ;;  %v3625_v30 = vld [vmem:[%s7743_s5 + $0x70] sm:$0xff] }
  0x85   : > { %799 = vmatprep.mubr.bf16.mxu0 %v7748_v1  ;;  %1578 = vperm.xlu1 %5359, %v1428_v32   ;;  %v4072_v32 = vld [vmem:[%s7744_s6 + $0x68] sm:$0xff] }
  0x86   : > { %992 = vmatprep.mubr.bf16.mxu1 %v7748_v1 }
  0x88   : > { %1583 = vperm.xlu0 %5358, %v1429_v33  }
  0x89   : > { %1994 = vperm.xlu1 %5359, %v430_v34  }
  0x8b   : > { %5242 = vmatmul.mubr.msk.bf16.gmra.mrb[56].mxu0 %vm553_vm1, %v5854_v35 }
  0x8c   : > { %5259 = vmatmul.mubr.msk.bf16.gmra.mrb[56].mxu1 %vm553_vm1, %v5854_v35  ;;  %1999 = vperm.xlu0 %5358, %v431_v37   ;;  %v3626_v37 = vld [vmem:[%s7743_s5 + $0x78] sm:$0xff] }
  0x8d   : > { %809 = vmatprep.mubr.bf16.mxu0 %v7748_v1  ;;  %1588 = vperm.xlu1 %5359, %v1430_v38   ;;  %v3627_v38 = vld [vmem:[%s7743_s5 + $0x80] sm:$0xff] }
  0x8e   : > { %1002 = vmatprep.mubr.bf16.mxu1 %v7748_v1 }
  0x8f   : > { %v5881_v45 = vpop.permute.xlu0 %1433 }
  0x90   : > { %3645 = vperm.xlu0 %5358, %v3611_v39   ;;  %v4074_v39 = vld [vmem:[%s7744_s6 + $0x78] sm:$0xff] }
  0x91   : > { %2004 = vperm.xlu1 %5359, %v432_v40  }
  0x93   : > { %5243 = vmatmul.mubr.msk.bf16.gmra.mrb[60].mxu0 %vm553_vm1, %v5873_v42  ;;  %v5887_v47 = vpop.permute.xlu1 %1849  ;;  %v5897_v50 = vpop.permute.xlu0 %1438 }
  0x94   : > { %5260 = vmatmul.mubr.msk.bf16.gmra.mrb[60].mxu1 %vm553_vm1, %v5873_v42  ;;  %4093 = vperm.xlu0 %5358, %v4059_v43  }
  0x95   : > { %1045 = vmatprep.mubr.bf16.mxu0 %v7748_v1  ;;  %3650 = vperm.xlu1 %5359, %v3612_v44   ;;  %v3628_v44 = vld [vmem:[%s7743_s5 + $0x88] sm:$0xff] }
  0x96   : > { %1238 = vmatprep.mubr.bf16.mxu1 %v7748_v1 }
  0x97   : > { %v5919_v58 = vpop.permute.xlu0 %1443 }
  0x98   : > { %3655 = vperm.xlu0 %5358, %v3613_v48   ;;  %v5899_v52 = vpop.permute.xlu1 %1854 }
  0x99   : > { %7852 = vst [vmem:[#allocation2_spill] sm:$0xff] %v5899_v52  ;;  %4098 = vperm.xlu1 %5359, %v4060_v49  }
  0x9b   : > { %5262 = vmatmul.mubr.msk.bf16.vlgmr.msra.gmra.mrb[64].mxu0 %vm553_vm1, %v5584_v22  ;;  %v5934_v62 = vpop.permute.xlu0 %1859 }
  0x9c   : > { %5279 = vmatmul.mubr.msk.bf16.vlgmr.msra.gmra.mrb[64].mxu1 %vm553_vm1, %v5584_v22  ;;  %4103 = vperm.xlu0 %5358, %v4061_v53   ;;  %v5921_v59 = vpop.permute.xlu1 %1448  ;;  %v4063_v22 = vld [vmem:[%s7744_s6 + $0x20] sm:$0xff]  ;;  %v3629_v53 = vld [vmem:[%s7743_s5 + $0x90] sm:$0xff] }
  0x9d   : > { %1055 = vmatprep.mubr.bf16.mxu0 %v7748_v1  ;;  %3660 = vperm.xlu1 %5359, %v3614_v54   ;;  %7853 = vst [vmem:[#allocation3_spill] sm:$0xff] %v5921_v59  ;;  %v4076_v54 = vld [vmem:[%s7744_s6 + $0x88] sm:$0xff] }
  0x9e   : > { %1248 = vmatprep.mubr.bf16.mxu1 %v7748_v1 }
  0x9f   : > { %v5951_v5 = vpop.permute.xlu0 %1453 }
  0xa0   : > { %3665 = vperm.xlu0 %5358, %v3615_v55   ;;  %v5936_v63 = vpop.permute.xlu1 %1864  ;;  %v3630_v55 = vld [vmem:[%s7743_s5 + $0x98] sm:$0xff] }
  0xa1   : > { %4108 = vperm.xlu1 %5359, %v4062_v57   ;;  %7854 = vst [vmem:[#allocation4_spill] sm:$0xff] %v5936_v63 }
  0xa3   : > { %5263 = vmatmul.mubr.msk.bf16.gmra.mrb[68].mxu0 %vm553_vm1, %v5607_v31  ;;  %v5967_v10 = vpop.permute.xlu0 %1869 }
  0xa4   : > { %5280 = vmatmul.mubr.msk.bf16.gmra.mrb[68].mxu1 %vm553_vm1, %v5607_v31  ;;  %4113 = vperm.xlu0 %5358, %v4063_v22   ;;  %v4065_v31 = vld [vmem:[%s7744_s6 + $0x30] sm:$0xff]  ;;  %v5953_v6 = vpop.permute.xlu1 %1458 }
  0xa5   : > { %1065 = vmatprep.mubr.bf16.mxu0 %v7748_v1  ;;  %3670 = vperm.xlu1 %5359, %v3616_v60   ;;  %v3631_v60 = vld [vmem:[%s7743_s5 + $0xa0] sm:$0xff] }
  0xa6   : > { %1258 = vmatprep.mubr.bf16.mxu1 %v7748_v1 }
  0xa7   : > { %v5989_v16 = vpop.permute.xlu0 %1463 }
  0xa8   : > { %3675 = vperm.xlu0 %5358, %v3617_v0   ;;  %v5969_v11 = vpop.permute.xlu1 %1874  ;;  %v4078_v0 = vld [vmem:[%s7744_s6 + $0x98] sm:$0xff] }
  0xa9   : > { %4118 = vperm.xlu1 %5359, %v4064_v2  }
  0xab   : > { %5264 = vmatmul.mubr.msk.bf16.gmra.mrb[72].mxu0 %vm553_vm1, %v5626_v36  ;;  %v6004_v20 = vpop.permute.xlu0 %1879 }
  0xac   : > { %5281 = vmatmul.mubr.msk.bf16.gmra.mrb[72].mxu1 %vm553_vm1, %v5626_v36  ;;  %4123 = vperm.xlu0 %5358, %v4065_v31   ;;  %v4067_v36 = vld [vmem:[%s7744_s6 + $0x40] sm:$0xff]  ;;  %v5991_v17 = vpop.permute.xlu1 %1468 }
  0xad   : > { %1075 = vmatprep.mubr.bf16.mxu0 %v7748_v1  ;;  %3680 = vperm.xlu1 %5359, %v3618_v4   ;;  %v3632_v4 = vld [vmem:[%s7743_s5 + $0xa8] sm:$0xff] }
  0xae   : > { %1268 = vmatprep.mubr.bf16.mxu1 %v7748_v1 }
  0xaf   : > { %v6021_v27 = vpop.permute.xlu0 %1473 }
  0xb0   : > { %3685 = vperm.xlu0 %5358, %v3619_v7   ;;  %v6006_v21 = vpop.permute.xlu1 %1884  ;;  %v3633_v7 = vld [vmem:[%s7743_s5 + $0xb0] sm:$0xff] }
  0xb1   : > { %4128 = vperm.xlu1 %5359, %v4066_v9   ;;  %v4080_v9 = vld [vmem:[%s7744_s6 + $0xa8] sm:$0xff] }
  0xb3   : > { %5265 = vmatmul.mubr.msk.bf16.gmra.mrb[76].mxu0 %vm553_vm1, %v5645_v41  ;;  %v6037_v33 = vpop.permute.xlu0 %1889 }
  0xb4   : > { %5282 = vmatmul.mubr.msk.bf16.gmra.mrb[76].mxu1 %vm553_vm1, %v5645_v41  ;;  %4133 = vperm.xlu0 %5358, %v4067_v36   ;;  %v4069_v41 = vld [vmem:[%s7744_s6 + $0x50] sm:$0xff]  ;;  %v6023_v28 = vpop.permute.xlu1 %1478 }
  0xb5   : > { %1085 = vmatprep.mubr.bf16.mxu0 %v7748_v1  ;;  %3690 = vperm.xlu1 %5359, %v3620_v12   ;;  %7855 = vst [vmem:[#allocation5_spill] sm:$0xff] %v6023_v28 }
  0xb6   : > { %1278 = vmatprep.mubr.bf16.mxu1 %v7748_v1 }
  0xb7   : > { %v6059_v40 = vpop.permute.xlu0 %1483 }
  0xb8   : > { %3695 = vperm.xlu0 %5358, %v3621_v14   ;;  %v6039_v34 = vpop.permute.xlu1 %1894  ;;  %v3634_v14 = vld [vmem:[%s7743_s5 + $0xb8] sm:$0xff] }
  0xb9   : > { %4138 = vperm.xlu1 %5359, %v4068_v15  }
  0xbb   : > { %5266 = vmatmul.mubr.msk.bf16.gmra.mrb[80].mxu0 %vm553_vm1, %v5664_v46  ;;  %v6074_v48 = vpop.permute.xlu0 %1899 }
  0xbc   : > { %5283 = vmatmul.mubr.msk.bf16.gmra.mrb[80].mxu1 %vm553_vm1, %v5664_v46  ;;  %4143 = vperm.xlu0 %5358, %v4069_v41   ;;  %v4071_v46 = vld [vmem:[%s7744_s6 + $0x60] sm:$0xff]  ;;  %v6061_v43 = vpop.permute.xlu1 %1488 }
  0xbd   : > { %1095 = vmatprep.mubr.bf16.mxu0 %v7748_v1  ;;  %3700 = vperm.xlu1 %5359, %v3622_v19   ;;  %v3635_v19 = vld [vmem:[%s7743_s5 + $0xc0] sm:$0xff] }
  0xbe   : > { %1288 = vmatprep.mubr.bf16.mxu1 %v7748_v1 }
  0xbf   : > { %v6091_v57 = vpop.permute.xlu0 %1493 }
  0xc0   : > { %3705 = vperm.xlu0 %5358, %v3623_v23   ;;  %v6076_v49 = vpop.permute.xlu1 %1904 }
  0xc1   : > { %4148 = vperm.xlu1 %5359, %v4070_v25  }
  0xc3   : > { %5267 = vmatmul.mubr.msk.bf16.gmra.mrb[84].mxu0 %vm553_vm1, %v5683_v51  ;;  %v6107_v2 = vpop.permute.xlu0 %1909 }
  0xc4   : > { %5284 = vmatmul.mubr.msk.bf16.gmra.mrb[84].mxu1 %vm553_vm1, %v5683_v51  ;;  %4153 = vperm.xlu0 %5358, %v4071_v46   ;;  %v4073_v51 = vld [vmem:[%s7744_s6 + $0x70] sm:$0xff]  ;;  %v6093_v22 = vpop.permute.xlu1 %1498  ;;  %7857 = vst [vmem:[#allocation7_spill] sm:$0xff] %v6107_v2 }
  0xc5   : > { %1105 = vmatprep.mubr.bf16.mxu0 %v7748_v1  ;;  %3710 = vperm.xlu1 %5359, %v3624_v26   ;;  %7856 = vst [vmem:[#allocation6_spill] sm:$0xff] %v6093_v22 }
  0xc6   : > { %1298 = vmatprep.mubr.bf16.mxu1 %v7748_v1 }
  0xc7   : > { %v6129_v36 = vpop.permute.xlu0 %1503 }
  0xc8   : > { %3715 = vperm.xlu0 %5358, %v3625_v30   ;;  %v6109_v31 = vpop.permute.xlu1 %1914 }
  0xc9   : > { %4158 = vperm.xlu1 %5359, %v4072_v32  }
  0xcb   : > { %5268 = vmatmul.mubr.msk.bf16.gmra.mrb[88].mxu0 %vm553_vm1, %v5702_v56  ;;  %v6144_v15 = vpop.permute.xlu0 %1919 }
  0xcc   : > { %5285 = vmatmul.mubr.msk.bf16.gmra.mrb[88].mxu1 %vm553_vm1, %v5702_v56  ;;  %4163 = vperm.xlu0 %5358, %v4073_v51   ;;  %v4075_v56 = vld [vmem:[%s7744_s6 + $0x80] sm:$0xff]  ;;  %v6131_v12 = vpop.permute.xlu1 %1508  ;;  %7859 = vst [vmem:[#allocation9_spill] sm:$0xff] %v6144_v15 }
  0xcd   : > { %1115 = vmatprep.mubr.bf16.mxu0 %v7748_v1  ;;  %3720 = vperm.xlu1 %5359, %v3626_v37   ;;  %7858 = vst [vmem:[#allocation8_spill] sm:$0xff] %v6131_v12 }
  0xce   : > { %1308 = vmatprep.mubr.bf16.mxu1 %v7748_v1 }
  0xd0   : > { %3725 = vperm.xlu0 %5358, %v3627_v38   ;;  %v6146_v41 = vpop.permute.xlu1 %1924 }
  0xd1   : > { %4168 = vperm.xlu1 %5359, %v4074_v39  }
  0xd3   : > { %5269 = vmatmul.mubr.msk.bf16.gmra.mrb[92].mxu0 %vm553_vm1, %v5721_v61 }
  0xd4   : > { %5286 = vmatmul.mubr.msk.bf16.gmra.mrb[92].mxu1 %vm553_vm1, %v5721_v61  ;;  %4173 = vperm.xlu0 %5358, %v4075_v56   ;;  %v4077_v61 = vld [vmem:[%s7744_s6 + $0x90] sm:$0xff] }
  0xd5   : > { %1125 = vmatprep.mubr.bf16.mxu0 %v7748_v1  ;;  %3730 = vperm.xlu1 %5359, %v3628_v44  }
  0xd6   : > { %1318 = vmatprep.mubr.bf16.mxu1 %v7748_v1 }
  0xd8   : > { %3735 = vperm.xlu0 %5358, %v3629_v53   ;;  %v4083_v53 = vld [vmem:[%s7744_s6 + $0xc0] sm:$0xff] }
  0xd9   : > { %4178 = vperm.xlu1 %5359, %v4076_v54  }
  0xdb   : > { %5270 = vmatmul.mubr.msk.bf16.gmra.mrb[96].mxu0 %vm553_vm1, %v5740_v3 }
  0xdc   : > { %5287 = vmatmul.mubr.msk.bf16.gmra.mrb[96].mxu1 %vm553_vm1, %v5740_v3  ;;  %4183 = vperm.xlu0 %5358, %v4077_v61   ;;  %v4079_v3 = vld [vmem:[%s7744_s6 + $0xa0] sm:$0xff] }
  0xdd   : > { %1135 = vmatprep.mubr.bf16.mxu0 %v7748_v1  ;;  %3740 = vperm.xlu1 %5359, %v3630_v55  }
  0xde   : > { %1328 = vmatprep.mubr.bf16.mxu1 %v7748_v1 }
  0xe0   : > { %3745 = vperm.xlu0 %5358, %v3631_v60  }
  0xe1   : > { %4188 = vperm.xlu1 %5359, %v4078_v0  }
  0xe3   : > { %5271 = vmatmul.mubr.msk.bf16.gmra.mrb[100].mxu0 %vm553_vm1, %v5759_v8 }
  0xe4   : > { %5288 = vmatmul.mubr.msk.bf16.gmra.mrb[100].mxu1 %vm553_vm1, %v5759_v8  ;;  %4193 = vperm.xlu0 %5358, %v4079_v3   ;;  %v4081_v8 = vld [vmem:[%s7744_s6 + $0xb0] sm:$0xff]  ;;  %v3636_v3 = vld [vmem:[%s7743_s5 + $0xc8] sm:$0xff] }
  0xe5   : > { %1145 = vmatprep.mubr.bf16.mxu0 %v7748_v1  ;;  %3750 = vperm.xlu1 %5359, %v3632_v4  }
  0xe6   : > { %1338 = vmatprep.mubr.bf16.mxu1 %v7748_v1 }
  0xe8   : > { %3755 = vperm.xlu0 %5358, %v3633_v7  }
  0xe9   : > { %4198 = vperm.xlu1 %5359, %v4080_v9  }
  0xeb   : > { %5272 = vmatmul.mubr.msk.bf16.gmra.mrb[104].mxu0 %vm553_vm1, %v5778_v13 }
  0xec   : > { %5289 = vmatmul.mubr.msk.bf16.gmra.mrb[104].mxu1 %vm553_vm1, %v5778_v13  ;;  %4203 = vperm.xlu0 %5358, %v4081_v8   ;;  %v4082_v13 = vld [vmem:[%s7744_s6 + $0xb8] sm:$0xff] }
  0xed   : > { %1155 = vmatprep.mubr.bf16.mxu0 %v7748_v1  ;;  %3760 = vperm.xlu1 %5359, %v3634_v14  }
  0xee   : > { %1348 = vmatprep.mubr.bf16.mxu1 %v7748_v1  ;;  %v661_v23 = vpop.f32.mrb[0].mxu0 }
  0xef   : > { %v854_v25 = vpop.f32.mrb[0].mxu1  ;;  %v1591_v46 = vmul.f32 %v5881_v45, %v661_v23  ;;  %v663_v30 = vpop.f32.mrb[1].mxu0 }
  0xf0   : > { %v1593_v26 = vmul.f32 %v5881_v45, %v854_v25  ;;  %v856_v32 = vpop.f32.mrb[1].mxu1  ;;  %v1592_v51 = vmul.f32 %v5881_v45, %v663_v30  ;;  %v665_v38 = vpop.f32.mrb[2].mxu0  ;;  %3765 = vperm.xlu0 %5358, %v3635_v19  }
  0xf1   : > { %v1594_v37 = vmul.f32 %v5881_v45, %v856_v32  ;;  %v2007_v39 = vadd.f32 %v5887_v47, %v1591_v46  ;;  %v1599_v56 = vmul.f32 %v5897_v50, %v665_v38  ;;  %v858_v44 = vpop.f32.mrb[2].mxu1  ;;  %4208 = vperm.xlu1 %5359, %v4082_v13   ;;  %v667_v60 = vpop.f32.mrb[3].mxu0  ;;  %v4084_v38 = vld [vmem:[%s7744_s6 + $0xc8] sm:$0xff] }
  0xf2   : > { %v2009_v54 = vadd.f32 %v5887_v47, %v1593_v26  ;;  %v2008_v61 = vadd.f32 %v5887_v47, %v1592_v51  ;;  %v1601_v55 = vmul.f32 %v5897_v50, %v858_v44  ;;  %v860_v0 = vpop.f32.mrb[3].mxu1  ;;  %v1600_v7 = vmul.f32 %v5897_v50, %v667_v60  ;;  %v6180_v19 = vpop.permute.xlu0 %1513 }
  0xf3   : > { %v2015_v4 = vadd.f32 %v5899_v52, %v1599_v56  ;;  %5273 = vmatmul.mubr.msk.bf16.gmra.mrb[108].mxu0 %vm553_vm1, %v5797_v18  ;;  %v2010_v9 = vadd.f32 %v5887_v47, %v1594_v37  ;;  %v1602_v14 = vmul.f32 %v5897_v50, %v860_v0  ;;  %v6182_v23 = vpop.permute.xlu1 %1518  ;;  %v2263_v25 = vmax.f32 %v2007_v39, 0.0 }
  0xf4   : > { %5290 = vmatmul.mubr.msk.bf16.gmra.mrb[108].mxu1 %vm553_vm1, %v5797_v18  ;;  %v2017_v8 = vadd.f32 %v5899_v52, %v1601_v55  ;;  %4213 = vperm.xlu0 %5358, %v4083_v53   ;;  %7860 = vst [vmem:[#allocation10_spill] sm:$0xff] %v6182_v23  ;;  %v2016_v46 = vadd.f32 %v5899_v52, %v1600_v7  ;;  %v3637_v18 = vld [vmem:[%s7743_s5 + $0xd0] sm:$0xff]  ;;  %v2265_v26 = vmax.f32 %v2009_v54, 0.0  ;;  %v2264_v39 = vmax.f32 %v2008_v61, 0.0 }
  0xf5   : > { %1165 = vmatprep.mubr.bf16.mxu0 %v7748_v1  ;;  %v2271_v13 = vmax.f32 %v2015_v4, 0.0  ;;  %3770 = vperm.xlu1 %5359, %v3636_v3   ;;  %v2018_v32 = vadd.f32 %v5899_v52, %v1602_v14  ;;  %v2266_v4 = vmax.f32 %v2010_v9, 0.0 }
  0xf6   : > { %1358 = vmatprep.mubr.bf16.mxu1 %v7748_v1  ;;  %v2273_v30 = vmax.f32 %v2017_v8, 0.0  ;;  %v671_v51 = vpop.f32.mrb[4].mxu0  ;;  %v2272_v60 = vmax.f32 %v2016_v46, 0.0 }
  0xf7   : > { %v864_v37 = vpop.f32.mrb[4].mxu1  ;;  %v1607_v56 = vmul.f32 %v5919_v58, %v671_v51  ;;  %v673_v53 = vpop.f32.mrb[5].mxu0  ;;  %v2551_v0 = vpack.c.bf16 %v2271_v13, %v2263_v25  ;;  %v2274_v7 = vmax.f32 %v2018_v32, 0.0  ;;  %v4085_v32 = vld [vmem:[%s7744_s6 + $0xd0] sm:$0xff] }
  0xf8   : > { %v1609_v44 = vmul.f32 %v5919_v58, %v864_v37  ;;  %v866_v55 = vpop.f32.mrb[5].mxu1  ;;  %v1608_v54 = vmul.f32 %v5919_v58, %v673_v53  ;;  %v675_v3 = vpop.f32.mrb[6].mxu0  ;;  %3775 = vperm.xlu0 %5358, %v3637_v18   ;;  %v2553_v8 = vpack.c.bf16 %v2273_v30, %v2265_v26  ;;  %v2552_v37 = vpack.c.bf16 %v2272_v60, %v2264_v39 }
  0xf9   : > { %v2023_v14 = vadd.f32 %v5934_v62, %v1607_v56  ;;  %v1610_v1 = vmul.f32 %v5919_v58, %v866_v55  ;;  %v1615_v61 = vmul.f32 %v5921_v59, %v675_v3  ;;  %v868_v51 = vpop.f32.mrb[6].mxu1  ;;  %4218 = vperm.xlu1 %5359, %v4084_v38   ;;  %v677_v46 = vpop.f32.mrb[7].mxu0  ;;  %v2554_v9 = vpack.c.bf16 %v2274_v7, %v2266_v4  ;;  %v3638_v38 = vld [vmem:[%s7743_s5 + $0xd8] sm:$0xff] }
  0xfa   : > { %v2025_v52 = vadd.f32 %v5934_v62, %v1609_v44  ;;  %v2024_v25 = vadd.f32 %v5934_v62, %v1608_v54  ;;  %v1617_v13 = vmul.f32 %v5921_v59, %v868_v51  ;;  %v870_v18 = vpop.f32.mrb[7].mxu1  ;;  %v1616_v30 = vmul.f32 %v5921_v59, %v677_v46  ;;  %2839 = vmatprep.subr.bf16.mxu0 %v2552_v37  ;;  %v6216_v44 = vpop.permute.xlu0 %1929 }
  0xfb   : > { %v2031_v26 = vadd.f32 %v5936_v63, %v1615_v61  ;;  %5274 = vmatmul.mubr.msk.bf16.gmra.mrb[112].mxu0 %vm553_vm1, %v5816_v24  ;;  %v1618_v56 = vmul.f32 %v5921_v59, %v870_v18  ;;  %3032 = vmatprep.subr.bf16.mxu1 %v2554_v9  ;;  %7861 = vst [vmem:[#allocation11_spill] sm:$0xff] %v6216_v44  ;;  %v6218_v53 = vpop.permute.xlu1 %1934  ;;  %v2279_v55 = vmax.f32 %v2023_v14, 0.0 }
  0xfc   : > { %v2033_v39 = vadd.f32 %v5936_v63, %v1617_v13  ;;  %5291 = vmatmul.mubr.msk.bf16.gmra.mrb[112].mxu1 %vm553_vm1, %v5816_v24  ;;  %v2026_v60 = vadd.f32 %v5934_v62, %v1610_v1  ;;  %v2032_v3 = vadd.f32 %v5936_v63, %v1616_v30  ;;  %2840 = vmatpush1.bf16.msra.mxu0 %v2551_v0  ;;  %v2281_v4 = vmax.f32 %v2025_v52, 0.0  ;;  %v3639_v0 = vld [vmem:[%s7743_s5 + $0xe0] sm:$0xff]  ;;  %v4086_v52 = vld [vmem:[%s7744_s6 + $0xd8] sm:$0xff] }
  0xfd   : > { %v2287_v54 = vmax.f32 %v2031_v26, 0.0  ;;  %3033 = vmatpush1.bf16.msra.mxu1 %v2553_v8  ;;  %v2034_v61 = vadd.f32 %v5936_v63, %v1618_v56  ;;  %4223 = vperm.xlu0 %5358, %v4085_v32   ;;  %v2280_v37 = vmax.f32 %v2024_v25, 0.0  ;;  %v7862_v8 = vmov 0  }
  0xfe   : > { %v2289_v7 = vmax.f32 %v2033_v39, 0.0  ;;  %3780 = vperm.xlu1 %5359, %v3638_v38   ;;  %v681_v51 = vpop.f32.mrb[8].mxu0  ;;  %1175 = vmatprep.mubr.bf16.mxu0 %v7862_v8  ;;  %v2288_v18 = vmax.f32 %v2032_v3, 0.0 }
  0xff   : > { %v874_v24 = vpop.f32.mrb[8].mxu1  ;;  %v1623_v13 = vmul.f32 %v5951_v5, %v681_v51  ;;  %v683_v46 = vpop.f32.mrb[9].mxu0  ;;  %1368 = vmatprep.mubr.bf16.mxu1 %v7862_v8  ;;  %v2559_v25 = vpack.c.bf16 %v2287_v54, %v2279_v55 }
 0x100   : > { %v1625_v14 = vmul.f32 %v5951_v5, %v874_v24  ;;  %v876_v1 = vpop.f32.mrb[9].mxu1  ;;  %v1624_v9 = vmul.f32 %v5951_v5, %v683_v46  ;;  %v685_v30 = vpop.f32.mrb[10].mxu0  ;;  %v2561_v32 = vpack.c.bf16 %v2289_v7, %v2281_v4  ;;  %v2560_v51 = vpack.c.bf16 %v2288_v18, %v2280_v37  ;;  %v3640_v37 = vld [vmem:[%s7743_s5 + $0xe8] sm:$0xff] }
 0x101   : > { %v1626_v26 = vmul.f32 %v5951_v5, %v876_v1  ;;  %v2039_v38 = vadd.f32 %v5967_v10, %v1623_v13  ;;  %v1631_v39 = vmul.f32 %v5953_v6, %v685_v30  ;;  %v878_v56 = vpop.f32.mrb[10].mxu1  ;;  %v2290_v24 = vmax.f32 %v2034_v61, 0.0  ;;  %3785 = vperm.xlu0 %5358, %v3639_v0   ;;  %v687_v55 = vpop.f32.mrb[11].mxu0  ;;  %v4087_v61 = vld [vmem:[%s7744_s6 + $0xe0] sm:$0xff] }
 0x102   : > { %v2041_v63 = vadd.f32 %v5967_v10, %v1625_v14  ;;  %v2040_v59 = vadd.f32 %v5967_v10, %v1624_v9  ;;  %v1633_v3 = vmul.f32 %v5953_v6, %v878_v56  ;;  %v880_v54 = vpop.f32.mrb[11].mxu1  ;;  %4228 = vperm.xlu1 %5359, %v4086_v52   ;;  %v1632_v4 = vmul.f32 %v5953_v6, %v687_v55  ;;  %v6259_v0 = vpop.permute.xlu1 %1528 }
 0x103   : > { %v2047_v46 = vadd.f32 %v5969_v11, %v1631_v39  ;;  %2841 = vmatprep.subr.bf16.mxu0 %v2560_v51  ;;  %v2282_v7 = vmax.f32 %v2026_v60, 0.0  ;;  %5275 = vmatmul.mubr.msk.bf16.gmra.mrb[116].mxu0 %vm553_vm1, %v5835_v29  ;;  %v6251_v13 = vadd.f32 %v5967_v10, %v1626_v26  ;;  %v1634_v1 = vmul.f32 %v5953_v6, %v880_v54  ;;  %v6257_v60 = vpop.permute.xlu0 %1523 }
 0x104   : > { %v2049_v14 = vadd.f32 %v5969_v11, %v1633_v3  ;;  %5292 = vmatmul.mubr.msk.bf16.gmra.mrb[116].mxu1 %vm553_vm1, %v5835_v29  ;;  %2842 = vmatpush1.bf16.msra.mxu0 %v2559_v25  ;;  %7863 = vst [vmem:[#allocation12_spill] sm:$0xff] %v6259_v0  ;;  %v2295_v52 = vmax.f32 %v2039_v38, 0.0  ;;  %v2048_v9 = vadd.f32 %v5969_v11, %v1632_v4  ;;  %v2297_v26 = vmax.f32 %v2041_v63, 0.0  ;;  %v4088_v63 = vld [vmem:[%s7744_s6 + $0xe8] sm:$0xff] }
 0x105   : > { %v2303_v18 = vmax.f32 %v2047_v46, 0.0  ;;  %v2562_v30 = vpack.c.bf16 %v2290_v24, %v2282_v7  ;;  %1185 = vmatprep.mubr.bf16.mxu0 %v7862_v8  ;;  %1378 = vmatprep.mubr.bf16.mxu1 %v7862_v8  ;;  %v2296_v39 = vmax.f32 %v2040_v59, 0.0  ;;  %v2050_v51 = vadd.f32 %v5969_v11, %v1634_v1  ;;  %v3641_v59 = vld [vmem:[%s7743_s5 + $0xf0] sm:$0xff] }
 0x106   : > { %v2305_v56 = vmax.f32 %v2049_v14, 0.0  ;;  %4233 = vperm.xlu0 %5358, %v4087_v61   ;;  %3790 = vperm.xlu1 %5359, %v3640_v37   ;;  %v691_v29 = vpop.f32.mrb[12].mxu0  ;;  %v2304_v55 = vmax.f32 %v2048_v9, 0.0 }
 0x107   : > { %v884_v25 = vpop.f32.mrb[12].mxu1  ;;  %v2567_v3 = vpack.c.bf16 %v2303_v18, %v2295_v52  ;;  %3034 = vmatprep.subr.bf16.mxu1 %v2562_v30  ;;  %v1639_v38 = vmul.f32 %v5989_v16, %v691_v29  ;;  %v693_v54 = vpop.f32.mrb[13].mxu0  ;;  %v2306_v14 = vmax.f32 %v2050_v51, 0.0 }
 0x108   : > { %v1641_v24 = vmul.f32 %v5989_v16, %v884_v25  ;;  %v886_v46 = vpop.f32.mrb[13].mxu1  ;;  %v2569_v4 = vpack.c.bf16 %v2305_v56, %v2297_v26  ;;  %3035 = vmatpush1.bf16.msra.mxu1 %v2561_v32  ;;  %v1640_v7 = vmul.f32 %v5989_v16, %v693_v54  ;;  %v695_v37 = vpop.f32.mrb[14].mxu0  ;;  %v2568_v9 = vpack.c.bf16 %v2304_v55, %v2296_v39  ;;  %v4089_v39 = vld [vmem:[%s7744_s6 + $0xf0] sm:$0xff]  ;;  %v3642_v55 = vld [vmem:[%s7743_s5 + $0xf8] sm:$0xff] }
 0x109   : > { %v1642_v61 = vmul.f32 %v5989_v16, %v886_v46  ;;  %v2055_v1 = vadd.f32 %v6004_v20, %v1639_v38  ;;  %v1647_v52 = vmul.f32 %v5991_v17, %v695_v37  ;;  %v888_v18 = vpop.f32.mrb[14].mxu1  ;;  %v697_v32 = vpop.f32.mrb[15].mxu0  ;;  %v2298_v56 = vmax.f32 %v6251_v13, 0.0 }
 0x10a   : > { %v2057_v30 = vadd.f32 %v6004_v20, %v1641_v24  ;;  %v2056_v29 = vadd.f32 %v6004_v20, %v1640_v7  ;;  %v1649_v25 = vmul.f32 %v5991_v17, %v888_v18  ;;  %3795 = vperm.xlu0 %5358, %v3641_v59   ;;  %v890_v26 = vpop.f32.mrb[15].mxu1  ;;  %4238 = vperm.xlu1 %5359, %v4088_v63   ;;  %v6298_v46 = vpop.permute.xlu0 %1939 }
 0x10b   : > { %v2063_v51 = vadd.f32 %v6006_v21, %v1647_v52  ;;  %v1648_v38 = vmul.f32 %v5991_v17, %v697_v32  ;;  %2843 = vmatprep.subr.bf16.mxu0 %v2568_v9  ;;  %5276 = vmatmul.mubr.msk.bf16.gmra.mrb[120].mxu0 %vm553_vm1, %v5854_v35  ;;  %v6292_v24 = vadd.f32 %v6004_v20, %v1642_v61  ;;  %v6300_v59 = vpop.permute.xlu1 %1944  ;;  %v2311_v63 = vmax.f32 %v2055_v1, 0.0 }
 0x10c   : > { %v2065_v13 = vadd.f32 %v6006_v21, %v1649_v25  ;;  %v1650_v54 = vmul.f32 %v5991_v17, %v890_v26  ;;  %5293 = vmatmul.mubr.msk.bf16.gmra.mrb[120].mxu1 %vm553_vm1, %v5854_v35  ;;  %2844 = vmatpush1.bf16.msra.mxu0 %v2567_v3  ;;  %7864 = vst [vmem:[#allocation13_spill] sm:$0xff] %v6298_v46  ;;  %v2313_v61 = vmax.f32 %v2057_v30, 0.0  ;;  %v2312_v18 = vmax.f32 %v2056_v29, 0.0  ;;  %v4090_v30 = vld [vmem:[%s7744_s6 + $0xf8] sm:$0xff] }
 0x10d   : > { %v2319_v7 = vmax.f32 %v2063_v51, 0.0  ;;  %v2064_v37 = vadd.f32 %v6006_v21, %v1648_v38  ;;  %v2570_v52 = vpack.c.bf16 %v2306_v14, %v2298_v56  ;;  %1195 = vmatprep.mubr.bf16.mxu0 %v7862_v8  ;;  %1388 = vmatprep.mubr.bf16.mxu1 %v7862_v8  ;;  %v4892_v8 = vld [vmem:[%s7746_s8] sm:$0x7] }
 0x10e   : > { %v2321_v9 = vmax.f32 %v2065_v13, 0.0  ;;  %v2066_v25 = vadd.f32 %v6006_v21, %v1650_v54  ;;  %4243 = vperm.xlu0 %5358, %v4089_v39   ;;  %3800 = vperm.xlu1 %5359, %v3642_v55   ;;  %v701_v35 = vpop.f32.mrb[16].mxu0 }
 0x10f   : > { %v894_v3 = vpop.f32.mrb[16].mxu1  ;;  %v2575_v32 = vpack.c.bf16 %v2319_v7, %v2311_v63  ;;  %v2320_v26 = vmax.f32 %v2064_v37, 0.0  ;;  %3036 = vmatprep.subr.bf16.mxu1 %v2570_v52  ;;  %v1655_v1 = vmul.f32 %v6021_v27, %v701_v35  ;;  %v703_v56 = vpop.f32.mrb[17].mxu0  ;;  %v5378_v35 = vld [vmem:[%s7742_s4 + $0x4] ss:$8 sps:$4 sm:$0xff]  }
 0x110   : > { %v1657_v14 = vmul.f32 %v6021_v27, %v894_v3  ;;  %v896_v51 = vpop.f32.mrb[17].mxu1  ;;  %v2577_v29 = vpack.c.bf16 %v2321_v9, %v2313_v61  ;;  %v2322_v38 = vmax.f32 %v2066_v25, 0.0  ;;  %3037 = vmatpush1.bf16.msra.mxu1 %v2569_v4  ;;  %v1656_v39 = vmul.f32 %v6021_v27, %v703_v56  ;;  %v705_v13 = vpop.f32.mrb[18].mxu0 }
 0x111   : > { %v1658_v55 = vmul.f32 %v6021_v27, %v896_v51  ;;  %v2071_v54 = vadd.f32 %v6037_v33, %v1655_v1  ;;  %v1663_v7 = vmul.f32 %v6023_v28, %v705_v13  ;;  %v898_v37 = vpop.f32.mrb[18].mxu1  ;;  %v2576_v52 = vpack.c.bf16 %v2320_v26, %v2312_v18  ;;  %v707_v25 = vpop.f32.mrb[19].mxu0 }
 0x112   : > { %v2073_v63 = vadd.f32 %v6037_v33, %v1657_v14  ;;  %v2072_v61 = vadd.f32 %v6037_v33, %v1656_v39  ;;  %v1665_v9 = vmul.f32 %v6023_v28, %v898_v37  ;;  %4895 = vperm.xlu0 %5358, %v4892_v8   ;;  %v900_v3 = vpop.f32.mrb[19].mxu1  ;;  %4248 = vperm.xlu1 %5359, %v4090_v30   ;;  %v2314_v1 = vmax.f32 %v6292_v24, 0.0  ;;  %v6334_v8 = vpop.permute.xlu0 %1533 }
 0x113   : > { %v2074_v4 = vadd.f32 %v6037_v33, %v1658_v55  ;;  %v2079_v14 = vadd.f32 %v6039_v34, %v1663_v7  ;;  %v1664_v18 = vmul.f32 %v6023_v28, %v707_v25  ;;  %2845 = vmatprep.subr.bf16.mxu0 %v2576_v52  ;;  %5277 = vmatmul.mubr.msk.bf16.gmra.mrb[124].mxu0 %vm553_vm1, %v5873_v42  ;;  %v2327_v26 = vmax.f32 %v2071_v54, 0.0  ;;  %v6336_v24 = vpop.permute.xlu1 %1538 }
 0x114   : > { %v2081_v56 = vadd.f32 %v6039_v34, %v1665_v9  ;;  %v1666_v51 = vmul.f32 %v6023_v28, %v900_v3  ;;  %5294 = vmatmul.mubr.msk.bf16.gmra.mrb[124].mxu1 %vm553_vm1, %v5873_v42  ;;  %2846 = vmatpush1.bf16.msra.mxu0 %v2575_v32  ;;  %7865 = vst [vmem:[#allocation14_spill] sm:$0xff] %v6336_v24  ;;  %v2329_v30 = vmax.f32 %v2073_v63, 0.0  ;;  %v2328_v54 = vmax.f32 %v2072_v61, 0.0 }
 0x115   : > { %v2335_v39 = vmax.f32 %v2079_v14, 0.0  ;;  %v2080_v55 = vadd.f32 %v6039_v34, %v1664_v18  ;;  %v2578_v13 = vpack.c.bf16 %v2322_v38, %v2314_v1  ;;  %2871 = vmatprep.mubr.bf16.mxu0 %v5378_v35  ;;  %3064 = vmatprep.mubr.bf16.mxu1 %v5378_v35  ;;  %v2330_v7 = vmax.f32 %v2074_v4, 0.0 }
 0x116   : > { %v2337_v37 = vmax.f32 %v2081_v56, 0.0  ;;  %v2082_v52 = vadd.f32 %v6039_v34, %v1666_v51  ;;  %v711_v9 = vpop.f32.mrb[20].mxu0 }
 0x117   : > { %v904_v25 = vpop.f32.mrb[20].mxu1  ;;  %v2583_v42 = vpack.c.bf16 %v2335_v39, %v2327_v26  ;;  %v2336_v32 = vmax.f32 %v2080_v55, 0.0  ;;  %3038 = vmatprep.subr.bf16.mxu1 %v2578_v13  ;;  %v1671_v3 = vmul.f32 %v6059_v40, %v711_v9  ;;  %v713_v14 = vpop.f32.mrb[21].mxu0 }
 0x118   : > { %v1673_v63 = vmul.f32 %v6059_v40, %v904_v25  ;;  %v906_v28 = vpop.f32.mrb[21].mxu1  ;;  %v2585_v18 = vpack.c.bf16 %v2337_v37, %v2329_v30  ;;  %v2338_v38 = vmax.f32 %v2082_v52, 0.0  ;;  %3039 = vmatpush1.bf16.msra.mxu1 %v2577_v29  ;;  %v1672_v35 = vmul.f32 %v6059_v40, %v713_v14  ;;  %v715_v4 = vpop.f32.mrb[22].mxu0 }
 0x119   : > { %v1674_v61 = vmul.f32 %v6059_v40, %v906_v28  ;;  %v2087_v1 = vadd.f32 %v6074_v48, %v1671_v3  ;;  %v1679_v56 = vmul.f32 %v6061_v43, %v715_v4  ;;  %v908_v51 = vpop.f32.mrb[22].mxu1  ;;  %v2584_v39 = vpack.c.bf16 %v2336_v32, %v2328_v54  ;;  %v717_v29 = vpop.f32.mrb[23].mxu0 }
 0x11a   : > { %v2089_v26 = vadd.f32 %v6074_v48, %v1673_v63  ;;  %v2088_v55 = vadd.f32 %v6074_v48, %v1672_v35  ;;  %v1681_v30 = vmul.f32 %v6061_v43, %v908_v51  ;;  %v910_v37 = vpop.f32.mrb[23].mxu1  ;;  %v2586_v52 = vpack.c.bf16 %v2338_v38, %v2330_v7  ;;  %v6354_v54 = vpop.permute.xlu0 %1949 }
 0x11b   : > { %v2090_v13 = vadd.f32 %v6074_v48, %v1674_v61  ;;  %v2095_v28 = vadd.f32 %v6076_v49, %v1679_v56  ;;  %v1680_v9 = vmul.f32 %v6061_v43, %v717_v29  ;;  %2847 = vmatprep.subr.bf16.mxu0 %v2584_v39  ;;  %v1682_v3 = vmul.f32 %v6061_v43, %v910_v37  ;;  %v6356_v32 = vpop.permute.xlu1 %1954 }
 0x11c   : > { %v2097_v25 = vadd.f32 %v6076_v49, %v1681_v30  ;;  %3040 = vmatprep.subr.bf16.mxu1 %v2586_v52  ;;  %2848 = vmatpush1.bf16.msra.mxu0 %v2583_v42  ;;  %7866 = vst [vmem:[#allocation15_spill] sm:$0xff] %v6354_v54  ;;  %v2343_v63 = vmax.f32 %v2087_v1, 0.0  ;;  %v2345_v14 = vmax.f32 %v2089_v26, 0.0  ;;  %v2344_v38 = vmax.f32 %v2088_v55, 0.0 }
 0x11d   : > { %v2351_v35 = vmax.f32 %v2095_v28, 0.0  ;;  %v2096_v7 = vadd.f32 %v6076_v49, %v1680_v9  ;;  %3041 = vmatpush1.bf16.msra.mxu1 %v2585_v18  ;;  %v2346_v61 = vmax.f32 %v2090_v13, 0.0  ;;  %v2098_v56 = vadd.f32 %v6076_v49, %v1682_v3 }
 0x11e   : > { %v2353_v4 = vmax.f32 %v2097_v25, 0.0  ;;  %v721_v51 = vpop.f32.mrb[24].mxu0 }
 0x11f   : > { %v914_v39 = vpop.f32.mrb[24].mxu1  ;;  %v2591_v30 = vpack.c.bf16 %v2351_v35, %v2343_v63  ;;  %v2352_v29 = vmax.f32 %v2096_v7, 0.0  ;;  %v1687_v42 = vmul.f32 %v6091_v57, %v721_v51  ;;  %v723_v52 = vpop.f32.mrb[25].mxu0  ;;  %v2354_v28 = vmax.f32 %v2098_v56, 0.0 }
 0x120   : > { %v1689_v37 = vmul.f32 %v6091_v57, %v914_v39  ;;  %v916_v1 = vpop.f32.mrb[25].mxu1  ;;  %v2593_v26 = vpack.c.bf16 %v2353_v4, %v2345_v14  ;;  %v1688_v9 = vmul.f32 %v6091_v57, %v723_v52  ;;  %v725_v55 = vpop.f32.mrb[26].mxu0 }
 0x121   : > { %v1690_v18 = vmul.f32 %v6091_v57, %v916_v1  ;;  %v2103_v13 = vadd.f32 %v6107_v2, %v1687_v42  ;;  %v1695_v3 = vmul.f32 %v6093_v22, %v725_v55  ;;  %v918_v63 = vpop.f32.mrb[26].mxu1  ;;  %v2592_v35 = vpack.c.bf16 %v2352_v29, %v2344_v38  ;;  %v727_v4 = vpop.f32.mrb[27].mxu0 }
 0x122   : > { %v2105_v25 = vadd.f32 %v6107_v2, %v1689_v37  ;;  %v2104_v7 = vadd.f32 %v6107_v2, %v1688_v9  ;;  %v1697_v14 = vmul.f32 %v6093_v22, %v918_v63  ;;  %v920_v56 = vpop.f32.mrb[27].mxu1  ;;  %v2594_v39 = vpack.c.bf16 %v2354_v28, %v2346_v61  ;;  %v6374_v38 = vpop.permute.xlu0 %1543 }
 0x123   : > { %v2106_v51 = vadd.f32 %v6107_v2, %v1690_v18  ;;  %v2111_v52 = vadd.f32 %v6109_v31, %v1695_v3  ;;  %v1696_v1 = vmul.f32 %v6093_v22, %v727_v4  ;;  %2849 = vmatprep.subr.bf16.mxu0 %v2592_v35  ;;  %v1698_v37 = vmul.f32 %v6093_v22, %v920_v56  ;;  %v6376_v29 = vpop.permute.xlu1 %1548 }
 0x124   : > { %v2113_v42 = vadd.f32 %v6109_v31, %v1697_v14  ;;  %3042 = vmatprep.subr.bf16.mxu1 %v2594_v39  ;;  %2850 = vmatpush1.bf16.msra.mxu0 %v2591_v30  ;;  %7867 = vst [vmem:[#allocation16_spill] sm:$0xff] %v6376_v29  ;;  %v2359_v9 = vmax.f32 %v2103_v13, 0.0  ;;  %v2361_v18 = vmax.f32 %v2105_v25, 0.0  ;;  %v2360_v28 = vmax.f32 %v2104_v7, 0.0 }
 0x125   : > { %v2367_v55 = vmax.f32 %v2111_v52, 0.0  ;;  %v2112_v61 = vadd.f32 %v6109_v31, %v1696_v1  ;;  %3043 = vmatpush1.bf16.msra.mxu1 %v2593_v26  ;;  %v2362_v3 = vmax.f32 %v2106_v51, 0.0  ;;  %v2114_v35 = vadd.f32 %v6109_v31, %v1698_v37 }
 0x126   : > { %v2369_v63 = vmax.f32 %v2113_v42, 0.0  ;;  %v731_v14 = vpop.f32.mrb[28].mxu0 }
 0x127   : > { %v924_v4 = vpop.f32.mrb[28].mxu1  ;;  %v2599_v56 = vpack.c.bf16 %v2367_v55, %v2359_v9  ;;  %v2368_v39 = vmax.f32 %v2112_v61, 0.0  ;;  %v1703_v30 = vmul.f32 %v6129_v36, %v731_v14  ;;  %v733_v2 = vpop.f32.mrb[29].mxu0  ;;  %v2370_v52 = vmax.f32 %v2114_v35, 0.0 }
 0x128   : > { %v1705_v22 = vmul.f32 %v6129_v36, %v924_v4  ;;  %v926_v13 = vpop.f32.mrb[29].mxu1  ;;  %v2601_v25 = vpack.c.bf16 %v2369_v63, %v2361_v18  ;;  %v1704_v1 = vmul.f32 %v6129_v36, %v733_v2  ;;  %v735_v7 = vpop.f32.mrb[30].mxu0 }
 0x129   : > { %v1706_v26 = vmul.f32 %v6129_v36, %v926_v13  ;;  %v2119_v51 = vadd.f32 %v6144_v15, %v1703_v30  ;;  %v1711_v37 = vmul.f32 %v6131_v12, %v735_v7  ;;  %v928_v9 = vpop.f32.mrb[30].mxu1  ;;  %v2600_v55 = vpack.c.bf16 %v2368_v39, %v2360_v28  ;;  %v737_v63 = vpop.f32.mrb[31].mxu0 }
 0x12a   : > { %v2121_v42 = vadd.f32 %v6144_v15, %v1705_v22  ;;  %v2120_v61 = vadd.f32 %v6144_v15, %v1704_v1  ;;  %v1713_v18 = vmul.f32 %v6131_v12, %v928_v9  ;;  %v930_v35 = vpop.f32.mrb[31].mxu1  ;;  %v2602_v2 = vpack.c.bf16 %v2370_v52, %v2362_v3  ;;  %v6394_v28 = vpop.permute.xlu0 %1959 }
 0x12b   : > { %v2122_v14 = vadd.f32 %v6144_v15, %v1706_v26  ;;  %v2127_v4 = vadd.f32 %v6146_v41, %v1711_v37  ;;  %v1712_v13 = vmul.f32 %v6131_v12, %v737_v63  ;;  %2851 = vmatprep.subr.bf16.mxu0 %v2600_v55  ;;  %v1714_v30 = vmul.f32 %v6131_v12, %v930_v35  ;;  %v6396_v39 = vpop.permute.xlu1 %1964 }
 0x12c   : > { %v2129_v22 = vadd.f32 %v6146_v41, %v1713_v18  ;;  %3044 = vmatprep.subr.bf16.mxu1 %v2602_v2  ;;  %2852 = vmatpush1.bf16.msra.mxu0 %v2599_v56  ;;  %7868 = vst [vmem:[#allocation17_spill] sm:$0xff] %v6394_v28  ;;  %v2375_v1 = vmax.f32 %v2119_v51, 0.0  ;;  %v2377_v26 = vmax.f32 %v2121_v42, 0.0  ;;  %v2376_v52 = vmax.f32 %v2120_v61, 0.0 }
 0x12d   : > { %v2383_v7 = vmax.f32 %v2127_v4, 0.0  ;;  %v2128_v3 = vadd.f32 %v6146_v41, %v1712_v13  ;;  %3045 = vmatpush1.bf16.msra.mxu1 %v2601_v25  ;;  %v2378_v37 = vmax.f32 %v2122_v14, 0.0  ;;  %v2130_v55 = vadd.f32 %v6146_v41, %v1714_v30 }
 0x12e   : > { %v2385_v9 = vmax.f32 %v2129_v22, 0.0  ;;  %v741_v18 = vpop.f32.mrb[32].mxu0 }
 0x12f   : > { %v934_v63 = vpop.f32.mrb[32].mxu1  ;;  %v2607_v35 = vpack.c.bf16 %v2383_v7, %v2375_v1  ;;  %v2384_v2 = vmax.f32 %v2128_v3, 0.0  ;;  %v1719_v56 = vmul.f32 %v6180_v19, %v741_v18  ;;  %v743_v15 = vpop.f32.mrb[33].mxu0  ;;  %v2386_v4 = vmax.f32 %v2130_v55, 0.0 }
 0x130   : > { %v1721_v12 = vmul.f32 %v6180_v19, %v934_v63  ;;  %v936_v51 = vpop.f32.mrb[33].mxu1  ;;  %v2609_v42 = vpack.c.bf16 %v2385_v9, %v2377_v26  ;;  %v1720_v13 = vmul.f32 %v6180_v19, %v743_v15  ;;  %v745_v61 = vpop.f32.mrb[34].mxu0 }
 0x131   : > { %v1722_v25 = vmul.f32 %v6180_v19, %v936_v51  ;;  %v2135_v14 = vadd.f32 %v6216_v44, %v1719_v56  ;;  %v1727_v30 = vmul.f32 %v6182_v23, %v745_v61  ;;  %v938_v1 = vpop.f32.mrb[34].mxu1  ;;  %v2608_v7 = vpack.c.bf16 %v2384_v2, %v2376_v52  ;;  %v747_v9 = vpop.f32.mrb[35].mxu0 }
 0x132   : > { %v2137_v22 = vadd.f32 %v6216_v44, %v1721_v12  ;;  %v2136_v3 = vadd.f32 %v6216_v44, %v1720_v13  ;;  %v1729_v26 = vmul.f32 %v6182_v23, %v938_v1  ;;  %v940_v55 = vpop.f32.mrb[35].mxu1  ;;  %v2610_v15 = vpack.c.bf16 %v2386_v4, %v2378_v37  ;;  %v6414_v52 = vpop.permute.xlu0 %1553 }
 0x133   : > { %v2138_v18 = vadd.f32 %v6216_v44, %v1722_v25  ;;  %v2143_v63 = vadd.f32 %v6218_v53, %v1727_v30  ;;  %v1728_v51 = vmul.f32 %v6182_v23, %v747_v9  ;;  %2853 = vmatprep.subr.bf16.mxu0 %v2608_v7  ;;  %v1730_v56 = vmul.f32 %v6182_v23, %v940_v55  ;;  %v6416_v2 = vpop.permute.xlu1 %1558 }
 0x134   : > { %v2145_v12 = vadd.f32 %v6218_v53, %v1729_v26  ;;  %3046 = vmatprep.subr.bf16.mxu1 %v2610_v15  ;;  %2854 = vmatpush1.bf16.msra.mxu0 %v2607_v35  ;;  %7869 = vst [vmem:[#allocation18_spill] sm:$0xff] %v6416_v2  ;;  %v2391_v13 = vmax.f32 %v2135_v14, 0.0  ;;  %v2393_v25 = vmax.f32 %v2137_v22, 0.0  ;;  %v2392_v4 = vmax.f32 %v2136_v3, 0.0 }
 0x135   : > { %v2399_v61 = vmax.f32 %v2143_v63, 0.0  ;;  %v2144_v37 = vadd.f32 %v6218_v53, %v1728_v51  ;;  %3047 = vmatpush1.bf16.msra.mxu1 %v2609_v42  ;;  %v2394_v30 = vmax.f32 %v2138_v18, 0.0  ;;  %v2146_v7 = vadd.f32 %v6218_v53, %v1730_v56 }
 0x136   : > { %v2401_v1 = vmax.f32 %v2145_v12, 0.0  ;;  %v751_v26 = vpop.f32.mrb[36].mxu0 }
 0x137   : > { %v944_v9 = vpop.f32.mrb[36].mxu1  ;;  %v2615_v55 = vpack.c.bf16 %v2399_v61, %v2391_v13  ;;  %v2400_v15 = vmax.f32 %v2144_v37, 0.0  ;;  %v1735_v35 = vmul.f32 %v6257_v60, %v751_v26  ;;  %v753_v44 = vpop.f32.mrb[37].mxu0  ;;  %v2402_v63 = vmax.f32 %v2146_v7, 0.0 }
 0x138   : > { %v1737_v23 = vmul.f32 %v6257_v60, %v944_v9  ;;  %v946_v14 = vpop.f32.mrb[37].mxu1  ;;  %v2617_v22 = vpack.c.bf16 %v2401_v1, %v2393_v25  ;;  %v1736_v51 = vmul.f32 %v6257_v60, %v753_v44  ;;  %v755_v3 = vpop.f32.mrb[38].mxu0 }
 0x139   : > { %v1738_v42 = vmul.f32 %v6257_v60, %v946_v14  ;;  %v2151_v18 = vadd.f32 %v6298_v46, %v1735_v35  ;;  %v1743_v56 = vmul.f32 %v6259_v0, %v755_v3  ;;  %v948_v13 = vpop.f32.mrb[38].mxu1  ;;  %v2616_v61 = vpack.c.bf16 %v2400_v15, %v2392_v4  ;;  %v757_v1 = vpop.f32.mrb[39].mxu0 }
 0x13a   : > { %v2153_v12 = vadd.f32 %v6298_v46, %v1737_v23  ;;  %v2152_v37 = vadd.f32 %v6298_v46, %v1736_v51  ;;  %v1745_v25 = vmul.f32 %v6259_v0, %v948_v13  ;;  %v950_v7 = vpop.f32.mrb[39].mxu1  ;;  %v2618_v44 = vpack.c.bf16 %v2402_v63, %v2394_v30  ;;  %v6434_v4 = vpop.permute.xlu0 %1969 }
 0x13b   : > { %v2154_v26 = vadd.f32 %v6298_v46, %v1738_v42  ;;  %v2159_v9 = vadd.f32 %v6300_v59, %v1743_v56  ;;  %v1744_v14 = vmul.f32 %v6259_v0, %v757_v1  ;;  %2855 = vmatprep.subr.bf16.mxu0 %v2616_v61  ;;  %v1746_v35 = vmul.f32 %v6259_v0, %v950_v7  ;;  %v6436_v15 = vpop.permute.xlu1 %1974 }
 0x13c   : > { %v2161_v23 = vadd.f32 %v6300_v59, %v1745_v25  ;;  %3048 = vmatprep.subr.bf16.mxu1 %v2618_v44  ;;  %2856 = vmatpush1.bf16.msra.mxu0 %v2615_v55  ;;  %7870 = vst [vmem:[#allocation19_spill] sm:$0xff] %v6434_v4  ;;  %v2407_v51 = vmax.f32 %v2151_v18, 0.0  ;;  %v2409_v42 = vmax.f32 %v2153_v12, 0.0  ;;  %v2408_v63 = vmax.f32 %v2152_v37, 0.0 }
 0x13d   : > { %v2415_v3 = vmax.f32 %v2159_v9, 0.0  ;;  %v2160_v30 = vadd.f32 %v6300_v59, %v1744_v14  ;;  %3049 = vmatpush1.bf16.msra.mxu1 %v2617_v22  ;;  %v2410_v56 = vmax.f32 %v2154_v26, 0.0  ;;  %v2162_v61 = vadd.f32 %v6300_v59, %v1746_v35 }
 0x13e   : > { %v2417_v13 = vmax.f32 %v2161_v23, 0.0  ;;  %v761_v25 = vpop.f32.mrb[40].mxu0 }
 0x13f   : > { %v954_v1 = vpop.f32.mrb[40].mxu1  ;;  %v2623_v7 = vpack.c.bf16 %v2415_v3, %v2407_v51  ;;  %v2416_v44 = vmax.f32 %v2160_v30, 0.0  ;;  %v1751_v55 = vmul.f32 %v6334_v8, %v761_v25  ;;  %v763_v46 = vpop.f32.mrb[41].mxu0  ;;  %v2418_v9 = vmax.f32 %v2162_v61, 0.0 }
 0x140   : > { %v1753_v0 = vmul.f32 %v6334_v8, %v954_v1  ;;  %v956_v18 = vpop.f32.mrb[41].mxu1  ;;  %v2625_v12 = vpack.c.bf16 %v2417_v13, %v2409_v42  ;;  %v1752_v14 = vmul.f32 %v6334_v8, %v763_v46  ;;  %v765_v37 = vpop.f32.mrb[42].mxu0 }
 0x141   : > { %v1754_v22 = vmul.f32 %v6334_v8, %v956_v18  ;;  %v2167_v26 = vadd.f32 %v6354_v54, %v1751_v55  ;;  %v1759_v35 = vmul.f32 %v6336_v24, %v765_v37  ;;  %v958_v51 = vpop.f32.mrb[42].mxu1  ;;  %v2624_v3 = vpack.c.bf16 %v2416_v44, %v2408_v63  ;;  %v767_v13 = vpop.f32.mrb[43].mxu0 }
 0x142   : > { %v2169_v23 = vadd.f32 %v6354_v54, %v1753_v0  ;;  %v2168_v30 = vadd.f32 %v6354_v54, %v1752_v14  ;;  %v1761_v42 = vmul.f32 %v6336_v24, %v958_v51  ;;  %v960_v61 = vpop.f32.mrb[43].mxu1  ;;  %v2626_v46 = vpack.c.bf16 %v2418_v9, %v2410_v56  ;;  %v6454_v63 = vpop.permute.xlu0 %1563 }
 0x143   : > { %v2170_v25 = vadd.f32 %v6354_v54, %v1754_v22  ;;  %v2175_v1 = vadd.f32 %v6356_v32, %v1759_v35  ;;  %v1760_v18 = vmul.f32 %v6336_v24, %v767_v13  ;;  %2857 = vmatprep.subr.bf16.mxu0 %v2624_v3  ;;  %v1762_v55 = vmul.f32 %v6336_v24, %v960_v61  ;;  %v6456_v44 = vpop.permute.xlu1 %1568 }
 0x144   : > { %v2177_v0 = vadd.f32 %v6356_v32, %v1761_v42  ;;  %3050 = vmatprep.subr.bf16.mxu1 %v2626_v46  ;;  %2858 = vmatpush1.bf16.msra.mxu0 %v2623_v7  ;;  %7871 = vst [vmem:[#allocation20_spill] sm:$0xff] %v6454_v63  ;;  %v2423_v14 = vmax.f32 %v2167_v26, 0.0  ;;  %v2425_v22 = vmax.f32 %v2169_v23, 0.0  ;;  %v2424_v9 = vmax.f32 %v2168_v30, 0.0 }
 0x145   : > { %v2431_v37 = vmax.f32 %v2175_v1, 0.0  ;;  %v2176_v56 = vadd.f32 %v6356_v32, %v1760_v18  ;;  %3051 = vmatpush1.bf16.msra.mxu1 %v2625_v12  ;;  %v2426_v35 = vmax.f32 %v2170_v25, 0.0  ;;  %v2178_v3 = vadd.f32 %v6356_v32, %v1762_v55 }
 0x146   : > { %v2433_v51 = vmax.f32 %v2177_v0, 0.0  ;;  %v771_v42 = vpop.f32.mrb[44].mxu0 }
 0x147   : > { %v964_v13 = vpop.f32.mrb[44].mxu1  ;;  %v2631_v61 = vpack.c.bf16 %v2431_v37, %v2423_v14  ;;  %v2432_v46 = vmax.f32 %v2176_v56, 0.0  ;;  %v1767_v7 = vmul.f32 %v6374_v38, %v771_v42  ;;  %v773_v54 = vpop.f32.mrb[45].mxu0  ;;  %v2434_v1 = vmax.f32 %v2178_v3, 0.0 }
 0x148   : > { %v1769_v24 = vmul.f32 %v6374_v38, %v964_v13  ;;  %v966_v26 = vpop.f32.mrb[45].mxu1  ;;  %v2633_v23 = vpack.c.bf16 %v2433_v51, %v2425_v22  ;;  %v1768_v18 = vmul.f32 %v6374_v38, %v773_v54  ;;  %v775_v30 = vpop.f32.mrb[46].mxu0 }
 0x149   : > { %v1770_v12 = vmul.f32 %v6374_v38, %v966_v26  ;;  %v2183_v25 = vadd.f32 %v6394_v28, %v1767_v7  ;;  %v1775_v55 = vmul.f32 %v6376_v29, %v775_v30  ;;  %v968_v14 = vpop.f32.mrb[46].mxu1  ;;  %v2632_v37 = vpack.c.bf16 %v2432_v46, %v2424_v9  ;;  %v777_v51 = vpop.f32.mrb[47].mxu0 }
 0x14a   : > { %v2185_v0 = vadd.f32 %v6394_v28, %v1769_v24  ;;  %v2184_v56 = vadd.f32 %v6394_v28, %v1768_v18  ;;  %v1777_v22 = vmul.f32 %v6376_v29, %v968_v14  ;;  %v970_v3 = vpop.f32.mrb[47].mxu1  ;;  %v2634_v54 = vpack.c.bf16 %v2434_v1, %v2426_v35  ;;  %v6474_v9 = vpop.permute.xlu0 %1979 }
 0x14b   : > { %v2186_v42 = vadd.f32 %v6394_v28, %v1770_v12  ;;  %v2191_v13 = vadd.f32 %v6396_v39, %v1775_v55  ;;  %v1776_v26 = vmul.f32 %v6376_v29, %v777_v51  ;;  %2859 = vmatprep.subr.bf16.mxu0 %v2632_v37  ;;  %v1778_v7 = vmul.f32 %v6376_v29, %v970_v3  ;;  %v6476_v46 = vpop.permute.xlu1 %1984 }
 0x14c   : > { %v2193_v24 = vadd.f32 %v6396_v39, %v1777_v22  ;;  %3052 = vmatprep.subr.bf16.mxu1 %v2634_v54  ;;  %2860 = vmatpush1.bf16.msra.mxu0 %v2631_v61  ;;  %7872 = vst [vmem:[#allocation21_spill] sm:$0xff] %v6474_v9  ;;  %7873 = vst [vmem:[#allocation22_spill] sm:$0xff] %v6476_v46  ;;  %v2439_v18 = vmax.f32 %v2183_v25, 0.0  ;;  %v2441_v12 = vmax.f32 %v2185_v0, 0.0  ;;  %v2440_v1 = vmax.f32 %v2184_v56, 0.0 }
 0x14d   : > { %v2447_v30 = vmax.f32 %v2191_v13, 0.0  ;;  %v2192_v35 = vadd.f32 %v6396_v39, %v1776_v26  ;;  %3053 = vmatpush1.bf16.msra.mxu1 %v2633_v23  ;;  %v2442_v55 = vmax.f32 %v2186_v42, 0.0  ;;  %v2194_v37 = vadd.f32 %v6396_v39, %v1778_v7 }
 0x14e   : > { %v2449_v14 = vmax.f32 %v2193_v24, 0.0  ;;  %v781_v22 = vpop.f32.mrb[48].mxu0 }
 0x14f   : > { %v974_v51 = vpop.f32.mrb[48].mxu1  ;;  %v2639_v3 = vpack.c.bf16 %v2447_v30, %v2439_v18  ;;  %v2448_v54 = vmax.f32 %v2192_v35, 0.0  ;;  %v1783_v61 = vmul.f32 %v6414_v52, %v781_v22  ;;  %v783_v28 = vpop.f32.mrb[49].mxu0  ;;  %v2450_v13 = vmax.f32 %v2194_v37, 0.0 }
 0x150   : > { %v1785_v29 = vmul.f32 %v6414_v52, %v974_v51  ;;  %v976_v25 = vpop.f32.mrb[49].mxu1  ;;  %v2641_v0 = vpack.c.bf16 %v2449_v14, %v2441_v12  ;;  %v1784_v26 = vmul.f32 %v6414_v52, %v783_v28  ;;  %v785_v56 = vpop.f32.mrb[50].mxu0 }
 0x151   : > { %v1786_v23 = vmul.f32 %v6414_v52, %v976_v25  ;;  %v2199_v42 = vadd.f32 %v6434_v4, %v1783_v61  ;;  %v1791_v7 = vmul.f32 %v6416_v2, %v785_v56  ;;  %v978_v18 = vpop.f32.mrb[50].mxu1  ;;  %v2640_v30 = vpack.c.bf16 %v2448_v54, %v2440_v1  ;;  %v787_v14 = vpop.f32.mrb[51].mxu0 }
 0x152   : > { %v2201_v24 = vadd.f32 %v6434_v4, %v1785_v29  ;;  %v2200_v35 = vadd.f32 %v6434_v4, %v1784_v26  ;;  %v1793_v12 = vmul.f32 %v6416_v2, %v978_v18  ;;  %v980_v37 = vpop.f32.mrb[51].mxu1  ;;  %v2642_v28 = vpack.c.bf16 %v2450_v13, %v2442_v55  ;;  %v6494_v1 = vpop.permute.xlu0 %1573 }
 0x153   : > { %v2202_v22 = vadd.f32 %v6434_v4, %v1786_v23  ;;  %v2207_v51 = vadd.f32 %v6436_v15, %v1791_v7  ;;  %v1792_v25 = vmul.f32 %v6416_v2, %v787_v14  ;;  %2861 = vmatprep.subr.bf16.mxu0 %v2640_v30  ;;  %v1794_v61 = vmul.f32 %v6416_v2, %v980_v37  ;;  %v6496_v54 = vpop.permute.xlu1 %1578 }
 0x154   : > { %v2209_v29 = vadd.f32 %v6436_v15, %v1793_v12  ;;  %3054 = vmatprep.subr.bf16.mxu1 %v2642_v28  ;;  %2862 = vmatpush1.bf16.msra.mxu0 %v2639_v3  ;;  %7874 = vst [vmem:[#allocation23_spill] sm:$0xff] %v6494_v1  ;;  %v2455_v26 = vmax.f32 %v2199_v42, 0.0  ;;  %v2457_v23 = vmax.f32 %v2201_v24, 0.0  ;;  %v2456_v13 = vmax.f32 %v2200_v35, 0.0 }
 0x155   : > { %v2463_v56 = vmax.f32 %v2207_v51, 0.0  ;;  %v2208_v55 = vadd.f32 %v6436_v15, %v1792_v25  ;;  %3055 = vmatpush1.bf16.msra.mxu1 %v2641_v0  ;;  %v2458_v7 = vmax.f32 %v2202_v22, 0.0  ;;  %v2210_v30 = vadd.f32 %v6436_v15, %v1794_v61 }
 0x156   : > { %v2465_v18 = vmax.f32 %v2209_v29, 0.0  ;;  %v791_v12 = vpop.f32.mrb[52].mxu0 }
 0x157   : > { %v984_v14 = vpop.f32.mrb[52].mxu1  ;;  %v2647_v37 = vpack.c.bf16 %v2463_v56, %v2455_v26  ;;  %v2464_v28 = vmax.f32 %v2208_v55, 0.0  ;;  %v1799_v3 = vmul.f32 %v6454_v63, %v791_v12  ;;  %v793_v4 = vpop.f32.mrb[53].mxu0  ;;  %v2466_v51 = vmax.f32 %v2210_v30, 0.0 }
 0x158   : > { %v1801_v2 = vmul.f32 %v6454_v63, %v984_v14  ;;  %v986_v42 = vpop.f32.mrb[53].mxu1  ;;  %v2649_v24 = vpack.c.bf16 %v2465_v18, %v2457_v23  ;;  %v1800_v25 = vmul.f32 %v6454_v63, %v793_v4  ;;  %v795_v35 = vpop.f32.mrb[54].mxu0 }
 0x159   : > { %v1802_v0 = vmul.f32 %v6454_v63, %v986_v42  ;;  %v2215_v22 = vadd.f32 %v6474_v9, %v1799_v3  ;;  %v1807_v61 = vmul.f32 %v6456_v44, %v795_v35  ;;  %v988_v26 = vpop.f32.mrb[54].mxu1  ;;  %v2648_v56 = vpack.c.bf16 %v2464_v28, %v2456_v13  ;;  %v797_v18 = vpop.f32.mrb[55].mxu0 }
 0x15a   : > { %v2217_v29 = vadd.f32 %v6474_v9, %v1801_v2  ;;  %v2216_v55 = vadd.f32 %v6474_v9, %v1800_v25  ;;  %v1809_v23 = vmul.f32 %v6456_v44, %v988_v26  ;;  %v990_v30 = vpop.f32.mrb[55].mxu1  ;;  %v2650_v4 = vpack.c.bf16 %v2466_v51, %v2458_v7  ;;  %v6510_v14 = vpop.permute.xlu0 %1989 }
 0x15b   : > { %v2218_v12 = vadd.f32 %v6474_v9, %v1802_v0  ;;  %7875 = vst [vmem:[#allocation24_spill] sm:$0xff] %v6510_v14  ;;  %v2223_v42 = vadd.f32 %v6476_v46, %v1807_v61  ;;  %v1808_v3 = vmul.f32 %v6456_v44, %v797_v18  ;;  %2863 = vmatprep.subr.bf16.mxu0 %v2648_v56  ;;  %v6516_v28 = vpop.permute.xlu1 %1994  ;;  %v2471_v25 = vmax.f32 %v2215_v22, 0.0 }
 0x15c   : > { %v2225_v2 = vadd.f32 %v6476_v46, %v1809_v23  ;;  %v1810_v13 = vmul.f32 %v6456_v44, %v990_v30  ;;  %3056 = vmatprep.subr.bf16.mxu1 %v2650_v4  ;;  %2864 = vmatpush1.bf16.msra.mxu0 %v2647_v37  ;;  %v2473_v0 = vmax.f32 %v2217_v29, 0.0  ;;  %v2472_v51 = vmax.f32 %v2216_v55, 0.0 }
 0x15d   : > { %v2479_v35 = vmax.f32 %v2223_v42, 0.0  ;;  %v2224_v7 = vadd.f32 %v6476_v46, %v1808_v3  ;;  %3057 = vmatpush1.bf16.msra.mxu1 %v2649_v24  ;;  %v2474_v26 = vmax.f32 %v2218_v12, 0.0 }
 0x15e   : > { %v2481_v61 = vmax.f32 %v2225_v2, 0.0  ;;  %v2226_v18 = vadd.f32 %v6476_v46, %v1810_v13  ;;  %v801_v56 = vpop.f32.mrb[56].mxu0  ;;  %v6524_v12 = vpop.permute.xlu0 %1583 }
 0x15f   : > { %v994_v9 = vpop.f32.mrb[56].mxu1  ;;  %v2655_v23 = vpack.c.bf16 %v2479_v35, %v2471_v25  ;;  %v2480_v63 = vmax.f32 %v2224_v7, 0.0  ;;  %v1815_v30 = vmul.f32 %v6494_v1, %v801_v56  ;;  %v803_v4 = vpop.f32.mrb[57].mxu0  ;;  %7876 = vst [vmem:[#allocation25_spill] sm:$0xff] %v6524_v12 }
 0x160   : > { %v1817_v37 = vmul.f32 %v6494_v1, %v994_v9  ;;  %v996_v22 = vpop.f32.mrb[57].mxu1  ;;  %v2657_v29 = vpack.c.bf16 %v2481_v61, %v2473_v0  ;;  %v2482_v42 = vmax.f32 %v2226_v18, 0.0  ;;  %v1816_v3 = vmul.f32 %v6494_v1, %v803_v4  ;;  %v805_v55 = vpop.f32.mrb[58].mxu0 }
 0x161   : > { %v1818_v24 = vmul.f32 %v6494_v1, %v996_v22  ;;  %v2231_v2 = vadd.f32 %v6510_v14, %v1815_v30  ;;  %v1823_v25 = vmul.f32 %v6496_v54, %v805_v55  ;;  %v998_v35 = vpop.f32.mrb[58].mxu1  ;;  %v2656_v7 = vpack.c.bf16 %v2480_v63, %v2472_v51  ;;  %v807_v18 = vpop.f32.mrb[59].mxu0 }
 0x162   : > { %v2233_v13 = vadd.f32 %v6510_v14, %v1817_v37  ;;  %v2232_v9 = vadd.f32 %v6510_v14, %v1816_v3  ;;  %v1825_v61 = vmul.f32 %v6496_v54, %v998_v35  ;;  %v1000_v56 = vpop.f32.mrb[59].mxu1  ;;  %v2658_v4 = vpack.c.bf16 %v2482_v42, %v2474_v26  ;;  %v6532_v22 = vpop.permute.xlu1 %1588 }
 0x163   : > { %v2234_v0 = vadd.f32 %v6510_v14, %v1818_v24  ;;  %v2239_v1 = vadd.f32 %v6516_v28, %v1823_v25  ;;  %v1824_v30 = vmul.f32 %v6496_v54, %v807_v18  ;;  %2865 = vmatprep.subr.bf16.mxu0 %v2656_v7  ;;  %v1826_v63 = vmul.f32 %v6496_v54, %v1000_v56 }
 0x164   : > { %v2241_v37 = vadd.f32 %v6516_v28, %v1825_v61  ;;  %3058 = vmatprep.subr.bf16.mxu1 %v2658_v4  ;;  %2866 = vmatpush1.bf16.msra.mxu0 %v2655_v23  ;;  %v2487_v51 = vmax.f32 %v2231_v2, 0.0  ;;  %v2489_v3 = vmax.f32 %v2233_v13, 0.0  ;;  %v2488_v26 = vmax.f32 %v2232_v9, 0.0  ;;  %v6542_v13 = vpop.permute.xlu0 %1999 }
 0x165   : > { %v2495_v24 = vmax.f32 %v2239_v1, 0.0  ;;  %v2240_v55 = vadd.f32 %v6516_v28, %v1824_v30  ;;  %3059 = vmatpush1.bf16.msra.mxu1 %v2657_v29  ;;  %v2490_v42 = vmax.f32 %v2234_v0, 0.0  ;;  %v2242_v25 = vadd.f32 %v6516_v28, %v1826_v63  ;;  %7877 = vst [vmem:[#allocation26_spill] sm:$0xff] %v6542_v13 }
 0x166   : > { %v2497_v35 = vmax.f32 %v2241_v37, 0.0  ;;  %v811_v14 = vpop.f32.mrb[60].mxu0  ;;  %v6546_v30 = vpop.permute.xlu1 %2004 }
 0x167   : > { %v1004_v18 = vpop.f32.mrb[60].mxu1  ;;  %v2663_v7 = vpack.c.bf16 %v2495_v24, %v2487_v51  ;;  %v2496_v46 = vmax.f32 %v2240_v55, 0.0  ;;  %v1831_v61 = vmul.f32 %v6524_v12, %v811_v14  ;;  %v813_v23 = vpop.f32.mrb[61].mxu0  ;;  %v2498_v4 = vmax.f32 %v2242_v25, 0.0 }
 0x168   : > { %v1833_v56 = vmul.f32 %v6524_v12, %v1004_v18  ;;  %v1006_v2 = vpop.f32.mrb[61].mxu1  ;;  %v2665_v1 = vpack.c.bf16 %v2497_v35, %v2489_v3  ;;  %v1832_v29 = vmul.f32 %v6524_v12, %v813_v23  ;;  %v815_v0 = vpop.f32.mrb[62].mxu0 }
 0x169   : > { %v1834_v9 = vmul.f32 %v6524_v12, %v1006_v2  ;;  %v2247_v37 = vadd.f32 %v6542_v13, %v1831_v61  ;;  %v1839_v14 = vmul.f32 %v6532_v22, %v815_v0  ;;  %v1008_v51 = vpop.f32.mrb[62].mxu1  ;;  %v2664_v24 = vpack.c.bf16 %v2496_v46, %v2488_v26  ;;  %v817_v25 = vpop.f32.mrb[63].mxu0 }
 0x16a   : > { %v2249_v63 = vadd.f32 %v6542_v13, %v1833_v56  ;;  %v2248_v55 = vadd.f32 %v6542_v13, %v1832_v29  ;;  %v1841_v35 = vmul.f32 %v6532_v22, %v1008_v51  ;;  %v1010_v18 = vpop.f32.mrb[63].mxu1  ;;  %v2666_v23 = vpack.c.bf16 %v2498_v4, %v2490_v42 }
 0x16b   : > { %v2250_v3 = vadd.f32 %v6542_v13, %v1834_v9  ;;  %v2255_v2 = vadd.f32 %v6546_v30, %v1839_v14  ;;  %v1840_v12 = vmul.f32 %v6532_v22, %v817_v25  ;;  %2867 = vmatprep.subr.bf16.mxu0 %v2664_v24  ;;  %v1842_v56 = vmul.f32 %v6532_v22, %v1010_v18 }
 0x16c   : > { %v2257_v61 = vadd.f32 %v6546_v30, %v1841_v35  ;;  %3060 = vmatprep.subr.bf16.mxu1 %v2666_v23  ;;  %2868 = vmatpush1.bf16.msra.mxu0 %v2663_v7  ;;  %v2503_v46 = vmax.f32 %v2247_v37, 0.0  ;;  %v2505_v26 = vmax.f32 %v2249_v63, 0.0  ;;  %v2504_v0 = vmax.f32 %v2248_v55, 0.0 }
 0x16d   : > { %v2511_v29 = vmax.f32 %v2255_v2, 0.0  ;;  %v2256_v9 = vadd.f32 %v6546_v30, %v1840_v12  ;;  %3061 = vmatpush1.bf16.msra.mxu1 %v2665_v1  ;;  %v2506_v51 = vmax.f32 %v2250_v3, 0.0  ;;  %v2258_v4 = vadd.f32 %v6546_v30, %v1842_v56 }
 0x16e   : > { %v2513_v42 = vmax.f32 %v2257_v61, 0.0  ;;  %v1047_v14 = vpop.f32.mrb[64].mxu0 }
 0x16f   : > { %v1240_v25 = vpop.f32.mrb[64].mxu1  ;;  %v2671_v24 = vpack.c.bf16 %v2511_v29, %v2503_v46  ;;  %v2512_v13 = vmax.f32 %v2256_v9, 0.0  ;;  %v1595_v35 = vmul.f32 %v5881_v45, %v1047_v14  ;;  %v1049_v7 = vpop.f32.mrb[65].mxu0  ;;  %v2514_v23 = vmax.f32 %v2258_v4, 0.0 }
 0x170   : > { %v1597_v18 = vmul.f32 %v5881_v45, %v1240_v25  ;;  %v1242_v37 = vpop.f32.mrb[65].mxu1  ;;  %v2673_v63 = vpack.c.bf16 %v2513_v42, %v2505_v26  ;;  %v1596_v12 = vmul.f32 %v5881_v45, %v1049_v7  ;;  %v1051_v55 = vpop.f32.mrb[66].mxu0  ;;  %v7878_v25 = vld [vmem:[#allocation2_spill] sm:$0xff] }
 0x171   : > { %v1598_v1 = vmul.f32 %v5881_v45, %v1242_v37  ;;  %v2011_v3 = vadd.f32 %v5887_v47, %v1595_v35  ;;  %v1603_v61 = vmul.f32 %v5897_v50, %v1051_v55  ;;  %v1244_v56 = vpop.f32.mrb[66].mxu1  ;;  %v2672_v46 = vpack.c.bf16 %v2512_v13, %v2504_v0  ;;  %v1053_v42 = vpop.f32.mrb[67].mxu0  ;;  %v5376_v35 = vld [vmem:[%s7742_s4] ss:$8 sps:$4 sm:$0xff]  }
 0x172   : > { %v2013_v2 = vadd.f32 %v5887_v47, %v1597_v18  ;;  %v2012_v29 = vadd.f32 %v5887_v47, %v1596_v12  ;;  %v1605_v26 = vmul.f32 %v5897_v50, %v1244_v56  ;;  %v1246_v4 = vpop.f32.mrb[67].mxu1  ;;  %v2674_v14 = vpack.c.bf16 %v2514_v23, %v2506_v51 }
 0x173   : > { %v2014_v9 = vadd.f32 %v5887_v47, %v1598_v1  ;;  %v2019_v45 = vadd.f32 %v7878_v25, %v1603_v61  ;;  %v1604_v7 = vmul.f32 %v5897_v50, %v1053_v42  ;;  %2869 = vmatprep.subr.bf16.mxu0 %v2672_v46  ;;  %v1606_v0 = vmul.f32 %v5897_v50, %v1246_v4  ;;  %v5379_v47 = vld [vmem:[%s7742_s4 + $0x14] ss:$8 sps:$4 sm:$0xff]  }
 0x174   : > { %v2021_v13 = vadd.f32 %v7878_v25, %v1605_v26  ;;  %3062 = vmatprep.subr.bf16.mxu1 %v2674_v14  ;;  %2870 = vmatpush1.bf16.msra.mxu0 %v2671_v24  ;;  %v2267_v51 = vmax.f32 %v2011_v3, 0.0  ;;  %v2269_v18 = vmax.f32 %v2013_v2, 0.0  ;;  %v2268_v12 = vmax.f32 %v2012_v29, 0.0 }
 0x175   : > { %v2275_v37 = vmax.f32 %v2019_v45, 0.0  ;;  %v2020_v23 = vadd.f32 %v7878_v25, %v1604_v7  ;;  %3063 = vmatpush1.bf16.msra.mxu1 %v2673_v63  ;;  %v2270_v1 = vmax.f32 %v2014_v9, 0.0  ;;  %v2022_v61 = vadd.f32 %v7878_v25, %v1606_v0  ;;  %v7879_v7 = vld [vmem:[#allocation3_spill] sm:$0xff] }
 0x176   : > { %v2277_v55 = vmax.f32 %v2021_v13, 0.0  ;;  %v1057_v56 = vpop.f32.mrb[68].mxu0 }
 0x177   : > { %v1250_v46 = vpop.f32.mrb[68].mxu1  ;;  %v2555_v50 = vpack.c.bf16 %v2275_v37, %v2267_v51  ;;  %v2276_v26 = vmax.f32 %v2020_v23, 0.0  ;;  %v1611_v24 = vmul.f32 %v5919_v58, %v1057_v56  ;;  %2872 = vmatmul.mubr.bf16.vlgmr.msra.gmra.mrb[128].mxu0 %v5376_v35  ;;  %v1059_v3 = vpop.f32.mrb[69].mxu0  ;;  %v2278_v14 = vmax.f32 %v2022_v61, 0.0  ;;  %v7880_v61 = vld [vmem:[#allocation4_spill] sm:$0xff] }
 0x178   : > { %v1613_v42 = vmul.f32 %v5919_v58, %v1250_v46  ;;  %v1252_v2 = vpop.f32.mrb[69].mxu1  ;;  %v2557_v4 = vpack.c.bf16 %v2277_v55, %v2269_v18  ;;  %3065 = vmatmul.mubr.bf16.vlgmr.msra.gmra.mrb[128].mxu1 %v5376_v35  ;;  %v1612_v63 = vmul.f32 %v5919_v58, %v1059_v3  ;;  %v1061_v9 = vpop.f32.mrb[70].mxu0  ;;  %2881 = vmatprep.mubr.bf16.mxu0 %v5379_v47 }
 0x179   : > { %v1614_v29 = vmul.f32 %v5919_v58, %v1252_v2  ;;  %v2027_v25 = vadd.f32 %v5934_v62, %v1611_v24  ;;  %v1619_v13 = vmul.f32 %v7879_v7, %v1061_v9  ;;  %v1254_v0 = vpop.f32.mrb[70].mxu1  ;;  %v2556_v51 = vpack.c.bf16 %v2276_v26, %v2268_v12  ;;  %3074 = vmatprep.mubr.bf16.mxu1 %v5379_v47  ;;  %v1063_v23 = vpop.f32.mrb[71].mxu0  ;;  %v5381_v24 = vld [vmem:[%s7742_s4 + $0x10] ss:$8 sps:$4 sm:$0xff]  }
 0x17a   : > { %v2029_v45 = vadd.f32 %v5934_v62, %v1613_v42  ;;  %v2028_v37 = vadd.f32 %v5934_v62, %v1612_v63  ;;  %v1621_v35 = vmul.f32 %v7879_v7, %v1254_v0  ;;  %v1256_v55 = vpop.f32.mrb[71].mxu1  ;;  %v2558_v58 = vpack.c.bf16 %v2278_v14, %v2270_v1 }
 0x17b   : > { %v2030_v18 = vadd.f32 %v5934_v62, %v1614_v29  ;;  %v2035_v56 = vadd.f32 %v7880_v61, %v1619_v13  ;;  %v1620_v46 = vmul.f32 %v7879_v7, %v1063_v23  ;;  %3225 = vmatprep.subr.bf16.mxu0 %v2556_v51  ;;  %v1622_v12 = vmul.f32 %v7879_v7, %v1256_v55  ;;  %v5382_v62 = vld [vmem:[%s7742_s4 + $0x24] ss:$8 sps:$4 sm:$0xff]  }
 0x17c   : > { %v2037_v47 = vadd.f32 %v7880_v61, %v1621_v35  ;;  %3418 = vmatprep.subr.bf16.mxu1 %v2558_v58  ;;  %3226 = vmatpush1.bf16.msra.mxu0 %v2555_v50  ;;  %v2283_v1 = vmax.f32 %v2027_v25, 0.0  ;;  %v2285_v26 = vmax.f32 %v2029_v45, 0.0  ;;  %v2284_v2 = vmax.f32 %v2028_v37, 0.0 }
 0x17d   : > { %v2291_v42 = vmax.f32 %v2035_v56, 0.0  ;;  %v2036_v3 = vadd.f32 %v7880_v61, %v1620_v46  ;;  %3419 = vmatpush1.bf16.msra.mxu1 %v2557_v4  ;;  %v2286_v14 = vmax.f32 %v2030_v18, 0.0  ;;  %v2038_v29 = vadd.f32 %v7880_v61, %v1622_v12 }
 0x17e   : > { %v2293_v63 = vmax.f32 %v2037_v47, 0.0  ;;  %v1067_v9 = vpop.f32.mrb[72].mxu0 }
 0x17f   : > { %v1260_v13 = vpop.f32.mrb[72].mxu1  ;;  %v2563_v7 = vpack.c.bf16 %v2291_v42, %v2283_v1  ;;  %v2292_v0 = vmax.f32 %v2036_v3, 0.0  ;;  %v1627_v50 = vmul.f32 %v5951_v5, %v1067_v9  ;;  %2882 = vmatmul.mubr.bf16.gmra.mrb[132].mxu0 %v5381_v24  ;;  %v1069_v25 = vpop.f32.mrb[73].mxu0  ;;  %v2294_v23 = vmax.f32 %v2038_v29, 0.0 }
 0x180   : > { %v1629_v51 = vmul.f32 %v5951_v5, %v1260_v13  ;;  %v1262_v45 = vpop.f32.mrb[73].mxu1  ;;  %v2565_v35 = vpack.c.bf16 %v2293_v63, %v2285_v26  ;;  %3075 = vmatmul.mubr.bf16.gmra.mrb[132].mxu1 %v5381_v24  ;;  %v1628_v4 = vmul.f32 %v5951_v5, %v1069_v25  ;;  %v1071_v18 = vpop.f32.mrb[74].mxu0  ;;  %2891 = vmatprep.mubr.bf16.mxu0 %v5382_v62  ;;  %v5384_v63 = vld [vmem:[%s7742_s4 + $0x20] ss:$8 sps:$4 sm:$0xff]  }
 0x181   : > { %v1630_v37 = vmul.f32 %v5951_v5, %v1262_v45  ;;  %v1264_v55 = vpop.f32.mrb[74].mxu1  ;;  %v2043_v58 = vadd.f32 %v5967_v10, %v1627_v50  ;;  %v1635_v56 = vmul.f32 %v5953_v6, %v1071_v18  ;;  %3084 = vmatprep.mubr.bf16.mxu1 %v5382_v62  ;;  %v1073_v12 = vpop.f32.mrb[75].mxu0  ;;  %v2564_v26 = vpack.c.bf16 %v2292_v0, %v2284_v2 }
 0x182   : > { %v2045_v61 = vadd.f32 %v5967_v10, %v1629_v51  ;;  %v1637_v46 = vmul.f32 %v5953_v6, %v1264_v55  ;;  %v2044_v47 = vadd.f32 %v5967_v10, %v1628_v4  ;;  %v1266_v1 = vpop.f32.mrb[75].mxu1  ;;  %v2566_v5 = vpack.c.bf16 %v2294_v23, %v2286_v14 }
 0x183   : > { %v2046_v24 = vadd.f32 %v5967_v10, %v1630_v37  ;;  %v2051_v42 = vadd.f32 %v5969_v11, %v1635_v56  ;;  %v1636_v29 = vmul.f32 %v5953_v6, %v1073_v12  ;;  %v1638_v62 = vmul.f32 %v5953_v6, %v1266_v1  ;;  %3227 = vmatprep.subr.bf16.mxu0 %v2564_v26  ;;  %v5385_v10 = vld [vmem:[%s7742_s4 + $0x34] ss:$8 sps:$4 sm:$0xff]  }
 0x184   : > { %v2053_v3 = vadd.f32 %v5969_v11, %v1637_v46  ;;  %3420 = vmatprep.subr.bf16.mxu1 %v2566_v5  ;;  %v2299_v2 = vmax.f32 %v2043_v58, 0.0  ;;  %v2301_v14 = vmax.f32 %v2045_v61, 0.0  ;;  %3228 = vmatpush1.bf16.msra.mxu0 %v2563_v7  ;;  %v2300_v0 = vmax.f32 %v2044_v47, 0.0 }
 0x185   : > { %v2307_v9 = vmax.f32 %v2051_v42, 0.0  ;;  %3421 = vmatpush1.bf16.msra.mxu1 %v2565_v35  ;;  %v2302_v50 = vmax.f32 %v2046_v24, 0.0  ;;  %v2052_v51 = vadd.f32 %v5969_v11, %v1636_v29  ;;  %v2054_v25 = vadd.f32 %v5969_v11, %v1638_v62  ;;  %v5387_v62 = vld [vmem:[%s7742_s4 + $0x30] ss:$8 sps:$4 sm:$0xff]  }
 0x186   : > { %v2309_v13 = vmax.f32 %v2053_v3, 0.0  ;;  %v1077_v45 = vpop.f32.mrb[76].mxu0 }
 0x187   : > { %v1270_v6 = vpop.f32.mrb[76].mxu1  ;;  %v2571_v23 = vpack.c.bf16 %v2307_v9, %v2299_v2  ;;  %v1643_v37 = vmul.f32 %v5989_v16, %v1077_v45  ;;  %2892 = vmatmul.mubr.bf16.gmra.mrb[136].mxu0 %v5384_v63  ;;  %v1079_v55 = vpop.f32.mrb[77].mxu0  ;;  %v2308_v61 = vmax.f32 %v2052_v51, 0.0  ;;  %v2310_v7 = vmax.f32 %v2054_v25, 0.0  ;;  %v5388_v9 = vld [vmem:[%s7742_s4 + $0x44] ss:$8 sps:$4 sm:$0xff]  }
 0x188   : > { %v2573_v4 = vpack.c.bf16 %v2309_v13, %v2301_v14  ;;  %v1645_v18 = vmul.f32 %v5989_v16, %v1270_v6  ;;  %v1272_v58 = vpop.f32.mrb[77].mxu1  ;;  %3085 = vmatmul.mubr.bf16.gmra.mrb[136].mxu1 %v5384_v63  ;;  %v1644_v35 = vmul.f32 %v5989_v16, %v1079_v55  ;;  %v1081_v46 = vpop.f32.mrb[78].mxu0  ;;  %2901 = vmatprep.mubr.bf16.mxu0 %v5385_v10 }
 0x189   : > { %v1646_v56 = vmul.f32 %v5989_v16, %v1272_v58  ;;  %v1274_v11 = vpop.f32.mrb[78].mxu1  ;;  %v2059_v47 = vadd.f32 %v6004_v20, %v1643_v37  ;;  %v1651_v12 = vmul.f32 %v5991_v17, %v1081_v46  ;;  %3094 = vmatprep.mubr.bf16.mxu1 %v5385_v10  ;;  %v1083_v26 = vpop.f32.mrb[79].mxu0  ;;  %v2572_v42 = vpack.c.bf16 %v2308_v61, %v2300_v0 }
 0x18a   : > { %v2061_v24 = vadd.f32 %v6004_v20, %v1645_v18  ;;  %v1653_v1 = vmul.f32 %v5991_v17, %v1274_v11  ;;  %v1276_v5 = vpop.f32.mrb[79].mxu1  ;;  %v2574_v3 = vpack.c.bf16 %v2310_v7, %v2302_v50  ;;  %v2060_v63 = vadd.f32 %v6004_v20, %v1644_v35 }
 0x18b   : > { %v2067_v16 = vadd.f32 %v6006_v21, %v1651_v12  ;;  %v2062_v2 = vadd.f32 %v6004_v20, %v1646_v56  ;;  %v1652_v14 = vmul.f32 %v5991_v17, %v1083_v26  ;;  %v1654_v10 = vmul.f32 %v5991_v17, %v1276_v5  ;;  %3229 = vmatprep.subr.bf16.mxu0 %v2572_v42 }
 0x18c   : > { %v2069_v29 = vadd.f32 %v6006_v21, %v1653_v1  ;;  %3422 = vmatprep.subr.bf16.mxu1 %v2574_v3  ;;  %v2315_v13 = vmax.f32 %v2059_v47, 0.0  ;;  %v2317_v0 = vmax.f32 %v2061_v24, 0.0  ;;  %3230 = vmatpush1.bf16.msra.mxu0 %v2571_v23  ;;  %v2316_v7 = vmax.f32 %v2060_v63, 0.0  ;;  %v7881_v47 = vld [vmem:[#allocation5_spill] sm:$0xff] }
 0x18d   : > { %v2323_v50 = vmax.f32 %v2067_v16, 0.0  ;;  %3423 = vmatpush1.bf16.msra.mxu1 %v2573_v4  ;;  %v2068_v25 = vadd.f32 %v6006_v21, %v1652_v14  ;;  %v2070_v20 = vadd.f32 %v6006_v21, %v1654_v10  ;;  %v2318_v35 = vmax.f32 %v2062_v2, 0.0 }
 0x18e   : > { %v2325_v51 = vmax.f32 %v2069_v29, 0.0  ;;  %v1087_v45 = vpop.f32.mrb[80].mxu0 }
 0x18f   : > { %v1280_v6 = vpop.f32.mrb[80].mxu1  ;;  %v2579_v37 = vpack.c.bf16 %v2323_v50, %v2315_v13  ;;  %v1659_v18 = vmul.f32 %v6021_v27, %v1087_v45  ;;  %2902 = vmatmul.mubr.bf16.gmra.mrb[140].mxu0 %v5387_v62  ;;  %v1089_v58 = vpop.f32.mrb[81].mxu0  ;;  %v2324_v56 = vmax.f32 %v2068_v25, 0.0  ;;  %v2326_v23 = vmax.f32 %v2070_v20, 0.0 }
 0x190   : > { %v2581_v17 = vpack.c.bf16 %v2325_v51, %v2317_v0  ;;  %v1661_v55 = vmul.f32 %v6021_v27, %v1280_v6  ;;  %v1282_v61 = vpop.f32.mrb[81].mxu1  ;;  %3095 = vmatmul.mubr.bf16.gmra.mrb[140].mxu1 %v5387_v62  ;;  %v1091_v4 = vpop.f32.mrb[82].mxu0  ;;  %2911 = vmatprep.mubr.bf16.mxu0 %v5388_v9  ;;  %v1660_v1 = vmul.f32 %v6021_v27, %v1089_v58  ;;  %v5390_v62 = vld [vmem:[%s7742_s4 + $0x40] ss:$8 sps:$4 sm:$0xff]  }
 0x191   : > { %v1284_v46 = vpop.f32.mrb[82].mxu1  ;;  %v2075_v21 = vadd.f32 %v6037_v33, %v1659_v18  ;;  %v1667_v24 = vmul.f32 %v7881_v47, %v1091_v4  ;;  %3104 = vmatprep.mubr.bf16.mxu1 %v5388_v9  ;;  %v1662_v26 = vmul.f32 %v6021_v27, %v1282_v61  ;;  %v1093_v5 = vpop.f32.mrb[83].mxu0  ;;  %v2580_v3 = vpack.c.bf16 %v2324_v56, %v2316_v7  ;;  %v5391_v27 = vld [vmem:[%s7742_s4 + $0x54] ss:$8 sps:$4 sm:$0xff]  }
 0x192   : > { %v2077_v11 = vadd.f32 %v6037_v33, %v1661_v55  ;;  %v1669_v12 = vmul.f32 %v7881_v47, %v1284_v46  ;;  %v1286_v42 = vpop.f32.mrb[83].mxu1  ;;  %v2582_v63 = vpack.c.bf16 %v2326_v23, %v2318_v35  ;;  %v1668_v2 = vmul.f32 %v7881_v47, %v1093_v5 }
 0x193   : > { %v2083_v16 = vadd.f32 %v6039_v34, %v1667_v24  ;;  %v1670_v14 = vmul.f32 %v7881_v47, %v1286_v42  ;;  %3231 = vmatprep.subr.bf16.mxu0 %v2580_v3  ;;  %v2331_v10 = vmax.f32 %v2075_v21, 0.0  ;;  %v2076_v50 = vadd.f32 %v6037_v33, %v1660_v1 }
 0x194   : > { %v2085_v29 = vadd.f32 %v6039_v34, %v1669_v12  ;;  %3424 = vmatprep.subr.bf16.mxu1 %v2582_v63  ;;  %v2333_v9 = vmax.f32 %v2077_v11, 0.0  ;;  %3232 = vmatpush1.bf16.msra.mxu0 %v2579_v37  ;;  %v2078_v51 = vadd.f32 %v6037_v33, %v1662_v26  ;;  %v2084_v25 = vadd.f32 %v6039_v34, %v1668_v2 }
 0x195   : > { %v2339_v13 = vmax.f32 %v2083_v16, 0.0  ;;  %3425 = vmatpush1.bf16.msra.mxu1 %v2581_v17  ;;  %v2086_v20 = vadd.f32 %v6039_v34, %v1670_v14  ;;  %v2332_v1 = vmax.f32 %v2076_v50, 0.0 }
 0x196   : > { %v2341_v0 = vmax.f32 %v2085_v29, 0.0  ;;  %v1097_v45 = vpop.f32.mrb[84].mxu0  ;;  %v2340_v17 = vmax.f32 %v2084_v25, 0.0  ;;  %v2334_v26 = vmax.f32 %v2078_v51, 0.0 }
 0x197   : > { %v1290_v6 = vpop.f32.mrb[84].mxu1  ;;  %v2587_v18 = vpack.c.bf16 %v2339_v13, %v2331_v10  ;;  %v1675_v58 = vmul.f32 %v6059_v40, %v1097_v45  ;;  %2912 = vmatmul.mubr.bf16.gmra.mrb[144].mxu0 %v5390_v62  ;;  %v1099_v7 = vpop.f32.mrb[85].mxu0  ;;  %v2342_v35 = vmax.f32 %v2086_v20, 0.0 }
 0x198   : > { %v2589_v55 = vpack.c.bf16 %v2341_v0, %v2333_v9  ;;  %v1677_v61 = vmul.f32 %v6059_v40, %v1290_v6  ;;  %v1292_v37 = vpop.f32.mrb[85].mxu1  ;;  %3105 = vmatmul.mubr.bf16.gmra.mrb[144].mxu1 %v5390_v62  ;;  %v1101_v56 = vpop.f32.mrb[86].mxu0  ;;  %2921 = vmatprep.mubr.bf16.mxu0 %v5391_v27  ;;  %v1676_v47 = vmul.f32 %v6059_v40, %v1099_v7 }
 0x199   : > { %v1294_v33 = vpop.f32.mrb[86].mxu1  ;;  %v2091_v23 = vadd.f32 %v6074_v48, %v1675_v58  ;;  %v1683_v4 = vmul.f32 %v6061_v43, %v1101_v56  ;;  %v1103_v21 = vpop.f32.mrb[87].mxu0  ;;  %3114 = vmatprep.mubr.bf16.mxu1 %v5391_v27  ;;  %v1678_v16 = vmul.f32 %v6059_v40, %v1292_v37  ;;  %v2588_v14 = vpack.c.bf16 %v2340_v17, %v2332_v1  ;;  %v5394_v40 = vld [vmem:[%s7742_s4 + $0x64] ss:$8 sps:$4 sm:$0xff]  }
 0x19a   : > { %v2093_v34 = vadd.f32 %v6074_v48, %v1677_v61  ;;  %v1685_v46 = vmul.f32 %v6061_v43, %v1294_v33  ;;  %v1296_v11 = vpop.f32.mrb[87].mxu1  ;;  %v1684_v24 = vmul.f32 %v6061_v43, %v1103_v21  ;;  %v2590_v27 = vpack.c.bf16 %v2342_v35, %v2334_v26  ;;  %v7882_v37 = vld [vmem:[#allocation7_spill] sm:$0xff]  ;;  %v7883_v35 = vld [vmem:[#allocation6_spill] sm:$0xff] }
 0x19b   : > { %v1686_v12 = vmul.f32 %v6061_v43, %v1296_v11  ;;  %v2099_v5 = vadd.f32 %v6076_v49, %v1683_v4  ;;  %v2347_v3 = vmax.f32 %v2091_v23, 0.0  ;;  %v5393_v43 = vld [vmem:[%s7742_s4 + $0x50] ss:$8 sps:$4 sm:$0xff]   ;;  %v2092_v10 = vadd.f32 %v6074_v48, %v1676_v47  ;;  %3233 = vmatprep.subr.bf16.mxu0 %v2588_v14 }
 0x19c   : > { %v2101_v42 = vadd.f32 %v6076_v49, %v1685_v46  ;;  %v2349_v63 = vmax.f32 %v2093_v34, 0.0  ;;  %v2100_v29 = vadd.f32 %v6076_v49, %v1684_v24  ;;  %3426 = vmatprep.subr.bf16.mxu1 %v2590_v27  ;;  %v2094_v6 = vadd.f32 %v6074_v48, %v1678_v16  ;;  %3234 = vmatpush1.bf16.msra.mxu0 %v2587_v18  ;;  %v6708_v16 = vld [vmem:[%s7742_s4 + $0x60] ss:$8 sps:$4 sm:$0xff]  }
 0x19d   : > { %v2355_v62 = vmax.f32 %v2099_v5, 0.0  ;;  %v2102_v9 = vadd.f32 %v6076_v49, %v1686_v12  ;;  %3427 = vmatpush1.bf16.msra.mxu1 %v2589_v55  ;;  %v2348_v4 = vmax.f32 %v2092_v10, 0.0 }
 0x19e   : > { %v2357_v2 = vmax.f32 %v2101_v42, 0.0  ;;  %v1107_v13 = vpop.f32.mrb[88].mxu0  ;;  %v2356_v7 = vmax.f32 %v2100_v29, 0.0  ;;  %v2350_v24 = vmax.f32 %v2094_v6, 0.0  ;;  %v7884_v6 = vld [vmem:[#allocation9_spill] sm:$0xff] }
 0x19f   : > { %v1300_v0 = vpop.f32.mrb[88].mxu1  ;;  %v2595_v50 = vpack.c.bf16 %v2355_v62, %v2347_v3  ;;  %v1691_v25 = vmul.f32 %v6091_v57, %v1107_v13  ;;  %v1109_v20 = vpop.f32.mrb[89].mxu0  ;;  %2922 = vmatmul.mubr.bf16.gmra.mrb[148].mxu0 %v5393_v43  ;;  %v2358_v46 = vmax.f32 %v2102_v9, 0.0 }
 0x1a0   : > { %v2597_v51 = vpack.c.bf16 %v2357_v2, %v2349_v63  ;;  %v1302_v45 = vpop.f32.mrb[89].mxu1  ;;  %v1693_v49 = vmul.f32 %v6091_v57, %v1300_v0  ;;  %v1111_v58 = vpop.f32.mrb[90].mxu0  ;;  %3115 = vmatmul.mubr.bf16.gmra.mrb[148].mxu1 %v5393_v43  ;;  %2931 = vmatprep.mubr.bf16.mxu0 %v5394_v40  ;;  %v1692_v55 = vmul.f32 %v6091_v57, %v1109_v20  ;;  %v6716_v0 = vld [vmem:[%s7742_s4 + $0x74] ss:$8 sps:$4 sm:$0xff]  }
 0x1a1   : > { %v1304_v61 = vpop.f32.mrb[90].mxu1  ;;  %v2107_v17 = vadd.f32 %v7882_v37, %v1691_v25  ;;  %v1699_v56 = vmul.f32 %v7883_v35, %v1111_v58  ;;  %v1113_v23 = vpop.f32.mrb[91].mxu0  ;;  %3124 = vmatprep.mubr.bf16.mxu1 %v5394_v40  ;;  %v1694_v26 = vmul.f32 %v6091_v57, %v1302_v45  ;;  %v2596_v63 = vpack.c.bf16 %v2356_v7, %v2348_v4  ;;  %v7885_v58 = vld [vmem:[#allocation8_spill] sm:$0xff] }
 0x1a2   : > { %v1701_v33 = vmul.f32 %v7883_v35, %v1304_v61  ;;  %v1306_v34 = vpop.f32.mrb[91].mxu1  ;;  %v2109_v48 = vadd.f32 %v7882_v37, %v1693_v49  ;;  %v1700_v18 = vmul.f32 %v7883_v35, %v1113_v23  ;;  %v2598_v62 = vpack.c.bf16 %v2358_v46, %v2350_v24 }
 0x1a3   : > { %v2115_v21 = vadd.f32 %v6109_v31, %v1699_v56  ;;  %v1702_v47 = vmul.f32 %v7883_v35, %v1306_v34  ;;  %v2363_v12 = vmax.f32 %v2107_v17, 0.0  ;;  %v2108_v27 = vadd.f32 %v7882_v37, %v1692_v55  ;;  %3235 = vmatprep.subr.bf16.mxu0 %v2596_v63 }
 0x1a4   : > { %v2117_v11 = vadd.f32 %v6109_v31, %v1701_v33  ;;  %v2365_v1 = vmax.f32 %v2109_v48, 0.0  ;;  %v2116_v3 = vadd.f32 %v6109_v31, %v1700_v18  ;;  %v2110_v40 = vadd.f32 %v7882_v37, %v1694_v26  ;;  %3428 = vmatprep.subr.bf16.mxu1 %v2598_v62  ;;  %3236 = vmatpush1.bf16.msra.mxu0 %v2595_v50 }
 0x1a5   : > { %v2371_v5 = vmax.f32 %v2115_v21, 0.0  ;;  %v2118_v29 = vadd.f32 %v6109_v31, %v1702_v47  ;;  %3429 = vmatpush1.bf16.msra.mxu1 %v2597_v51  ;;  %v2364_v51 = vmax.f32 %v2108_v27, 0.0 }
 0x1a6   : > { %v2373_v42 = vmax.f32 %v2117_v11, 0.0  ;;  %v1117_v2 = vpop.f32.mrb[92].mxu0  ;;  %v2372_v45 = vmax.f32 %v2116_v3, 0.0  ;;  %v2366_v46 = vmax.f32 %v2110_v40, 0.0  ;;  %v7886_v40 = vld [vmem:[#allocation11_spill] sm:$0xff] }
 0x1a7   : > { %v1310_v14 = vpop.f32.mrb[92].mxu1  ;;  %v2603_v43 = vpack.c.bf16 %v2371_v5, %v2363_v12  ;;  %v1707_v57 = vmul.f32 %v6129_v36, %v1117_v2  ;;  %v1119_v9 = vpop.f32.mrb[93].mxu0  ;;  %2932 = vmatmul.mubr.bf16.gmra.mrb[152].mxu0 %v6708_v16  ;;  %v2374_v56 = vmax.f32 %v2118_v29, 0.0  ;;  %v6738_v12 = vld [vmem:[%s7742_s4 + $0x70] ss:$8 sps:$4 sm:$0xff]  }
 0x1a8   : > { %v2605_v10 = vpack.c.bf16 %v2373_v42, %v2365_v1  ;;  %v1312_v13 = vpop.f32.mrb[93].mxu1  ;;  %v1709_v31 = vmul.f32 %v6129_v36, %v1310_v14  ;;  %v1121_v25 = vpop.f32.mrb[94].mxu0  ;;  %3125 = vmatmul.mubr.bf16.gmra.mrb[152].mxu1 %v6708_v16  ;;  %v1708_v50 = vmul.f32 %v6129_v36, %v1119_v9  ;;  %2941 = vmatprep.mubr.bf16.mxu0 %v6716_v0  ;;  %v6746_v14 = vld [vmem:[%s7742_s4 + $0x84] ss:$8 sps:$4 sm:$0xff]  }
 0x1a9   : > { %v1314_v20 = vpop.f32.mrb[94].mxu1  ;;  %v2123_v49 = vadd.f32 %v7884_v6, %v1707_v57  ;;  %v1715_v61 = vmul.f32 %v7885_v58, %v1121_v25  ;;  %v1123_v17 = vpop.f32.mrb[95].mxu0  ;;  %3134 = vmatprep.mubr.bf16.mxu1 %v6716_v0  ;;  %v1710_v55 = vmul.f32 %v6129_v36, %v1312_v13  ;;  %v2604_v24 = vpack.c.bf16 %v2372_v45, %v2364_v51  ;;  %v7887_v25 = vld [vmem:[#allocation10_spill] sm:$0xff] }
 0x1aa   : > { %v1717_v7 = vmul.f32 %v7885_v58, %v1314_v20  ;;  %v1316_v35 = vpop.f32.mrb[95].mxu1  ;;  %v2125_v37 = vadd.f32 %v7884_v6, %v1709_v31  ;;  %v1716_v33 = vmul.f32 %v7885_v58, %v1123_v17  ;;  %v2606_v26 = vpack.c.bf16 %v2374_v56, %v2366_v46 }
 0x1ab   : > { %v2131_v23 = vadd.f32 %v6146_v41, %v1715_v61  ;;  %v1718_v4 = vmul.f32 %v7885_v58, %v1316_v35  ;;  %v2379_v48 = vmax.f32 %v2123_v49, 0.0  ;;  %v2124_v3 = vadd.f32 %v7884_v6, %v1708_v50  ;;  %3237 = vmatprep.subr.bf16.mxu0 %v2604_v24 }
 0x1ac   : > { %v2133_v34 = vadd.f32 %v6146_v41, %v1717_v7  ;;  %v2381_v18 = vmax.f32 %v2125_v37, 0.0  ;;  %v2132_v47 = vadd.f32 %v6146_v41, %v1716_v33  ;;  %v2126_v27 = vadd.f32 %v7884_v6, %v1710_v55  ;;  %3430 = vmatprep.subr.bf16.mxu1 %v2606_v26  ;;  %3238 = vmatpush1.bf16.msra.mxu0 %v2603_v43 }
 0x1ad   : > { %v2387_v21 = vmax.f32 %v2131_v23, 0.0  ;;  %v2134_v1 = vadd.f32 %v6146_v41, %v1718_v4  ;;  %3431 = vmatpush1.bf16.msra.mxu1 %v2605_v10  ;;  %v2380_v10 = vmax.f32 %v2124_v3, 0.0 }
 0x1ae   : > { %v2389_v11 = vmax.f32 %v2133_v34, 0.0  ;;  %v1127_v5 = vpop.f32.mrb[96].mxu0  ;;  %v2388_v13 = vmax.f32 %v2132_v47, 0.0  ;;  %v2382_v37 = vmax.f32 %v2126_v27, 0.0 }
 0x1af   : > { %v1320_v42 = vpop.f32.mrb[96].mxu1  ;;  %v2611_v63 = vpack.c.bf16 %v2387_v21, %v2379_v48  ;;  %v1723_v36 = vmul.f32 %v6180_v19, %v1127_v5  ;;  %v1129_v62 = vpop.f32.mrb[97].mxu0  ;;  %2942 = vmatmul.mubr.bf16.gmra.mrb[156].mxu0 %v6738_v12  ;;  %v2390_v61 = vmax.f32 %v2134_v1, 0.0  ;;  %v6768_v48 = vld [vmem:[%s7742_s4 + $0x80] ss:$8 sps:$4 sm:$0xff]  }
 0x1b0   : > { %v2613_v29 = vpack.c.bf16 %v2389_v11, %v2381_v18  ;;  %v1322_v2 = vpop.f32.mrb[97].mxu1  ;;  %v1725_v41 = vmul.f32 %v6180_v19, %v1320_v42  ;;  %v1131_v57 = vpop.f32.mrb[98].mxu0  ;;  %3135 = vmatmul.mubr.bf16.gmra.mrb[156].mxu1 %v6738_v12  ;;  %v1724_v43 = vmul.f32 %v6180_v19, %v1129_v62  ;;  %2951 = vmatprep.mubr.bf16.mxu0 %v6746_v14  ;;  %v6776_v42 = vld [vmem:[%s7742_s4 + $0x94] ss:$8 sps:$4 sm:$0xff]  }
 0x1b1   : > { %v1324_v9 = vpop.f32.mrb[98].mxu1  ;;  %v2139_v31 = vadd.f32 %v7886_v40, %v1723_v36  ;;  %v1731_v20 = vmul.f32 %v7887_v25, %v1131_v57  ;;  %v1133_v49 = vpop.f32.mrb[99].mxu0  ;;  %3144 = vmatprep.mubr.bf16.mxu1 %v6746_v14  ;;  %v1726_v51 = vmul.f32 %v6180_v19, %v1322_v2  ;;  %v2612_v46 = vpack.c.bf16 %v2388_v13, %v2380_v10 }
 0x1b2   : > { %v1733_v45 = vmul.f32 %v7887_v25, %v1324_v9  ;;  %v1326_v58 = vpop.f32.mrb[99].mxu1  ;;  %v2141_v6 = vadd.f32 %v7886_v40, %v1725_v41  ;;  %v1732_v7 = vmul.f32 %v7887_v25, %v1133_v49  ;;  %v2614_v55 = vpack.c.bf16 %v2390_v61, %v2382_v37  ;;  %v7888_v41 = vld [vmem:[#allocation13_spill] sm:$0xff]  ;;  %v7889_v9 = vld [vmem:[#allocation12_spill] sm:$0xff] }
 0x1b3   : > { %v2147_v17 = vadd.f32 %v6218_v53, %v1731_v20  ;;  %v1734_v56 = vmul.f32 %v7887_v25, %v1326_v58  ;;  %v2395_v50 = vmax.f32 %v2139_v31, 0.0  ;;  %v2140_v47 = vadd.f32 %v7886_v40, %v1724_v43  ;;  %3239 = vmatprep.subr.bf16.mxu0 %v2612_v46 }
 0x1b4   : > { %v2149_v35 = vadd.f32 %v6218_v53, %v1733_v45  ;;  %v2397_v33 = vmax.f32 %v2141_v6, 0.0  ;;  %v2148_v4 = vadd.f32 %v6218_v53, %v1732_v7  ;;  %v2142_v3 = vadd.f32 %v7886_v40, %v1726_v51  ;;  %3432 = vmatprep.subr.bf16.mxu1 %v2614_v55  ;;  %3240 = vmatpush1.bf16.msra.mxu0 %v2611_v63 }
 0x1b5   : > { %v2403_v23 = vmax.f32 %v2147_v17, 0.0  ;;  %v2150_v18 = vadd.f32 %v6218_v53, %v1734_v56  ;;  %3433 = vmatpush1.bf16.msra.mxu1 %v2613_v29  ;;  %v2396_v29 = vmax.f32 %v2140_v47, 0.0  ;;  %v6807_v47 = vld [vmem:[%s7742_s4 + $0xa4] ss:$8 sps:$4 sm:$0xff]  }
 0x1b6   : > { %v2405_v34 = vmax.f32 %v2149_v35, 0.0  ;;  %v1137_v21 = vpop.f32.mrb[100].mxu0  ;;  %v2404_v27 = vmax.f32 %v2148_v4, 0.0  ;;  %v2398_v43 = vmax.f32 %v2142_v3, 0.0 }
 0x1b7   : > { %v1330_v11 = vpop.f32.mrb[100].mxu1  ;;  %v2619_v24 = vpack.c.bf16 %v2403_v23, %v2395_v50  ;;  %v1739_v19 = vmul.f32 %v6257_v60, %v1137_v21  ;;  %v1139_v26 = vpop.f32.mrb[101].mxu0  ;;  %2952 = vmatmul.mubr.bf16.gmra.mrb[160].mxu0 %v6768_v48  ;;  %v2406_v20 = vmax.f32 %v2150_v18, 0.0  ;;  %v6799_v50 = vld [vmem:[%s7742_s4 + $0x90] ss:$8 sps:$4 sm:$0xff]  }
 0x1b8   : > { %v2621_v1 = vpack.c.bf16 %v2405_v34, %v2397_v33  ;;  %v1332_v5 = vpop.f32.mrb[101].mxu1  ;;  %v1741_v53 = vmul.f32 %v6257_v60, %v1330_v11  ;;  %v1740_v36 = vmul.f32 %v6257_v60, %v1139_v26  ;;  %v1141_v62 = vpop.f32.mrb[102].mxu0  ;;  %3145 = vmatmul.mubr.bf16.gmra.mrb[160].mxu1 %v6768_v48  ;;  %2961 = vmatprep.mubr.bf16.mxu0 %v6776_v42 }
 0x1b9   : > { %v1334_v2 = vpop.f32.mrb[102].mxu1  ;;  %v2155_v57 = vadd.f32 %v7888_v41, %v1739_v19  ;;  %v1747_v13 = vmul.f32 %v7889_v9, %v1141_v62  ;;  %v1143_v25 = vpop.f32.mrb[103].mxu0  ;;  %v1742_v45 = vmul.f32 %v6257_v60, %v1332_v5  ;;  %3154 = vmatprep.mubr.bf16.mxu1 %v6776_v42  ;;  %v2620_v37 = vpack.c.bf16 %v2404_v27, %v2396_v29  ;;  %v7891_v62 = vld [vmem:[#allocation14_spill] sm:$0xff] }
 0x1ba   : > { %v1749_v31 = vmul.f32 %v7889_v9, %v1334_v2  ;;  %v1336_v40 = vpop.f32.mrb[103].mxu1  ;;  %v2157_v63 = vadd.f32 %v7888_v41, %v1741_v53  ;;  %v1748_v49 = vmul.f32 %v7889_v9, %v1143_v25  ;;  %v2156_v17 = vadd.f32 %v7888_v41, %v1740_v36  ;;  %v7890_v53 = vld [vmem:[#allocation15_spill] sm:$0xff] }
 0x1bb   : > { %v2163_v58 = vadd.f32 %v6300_v59, %v1747_v13  ;;  %v1750_v6 = vmul.f32 %v7889_v9, %v1336_v40  ;;  %v2411_v7 = vmax.f32 %v2155_v57, 0.0  ;;  %v2622_v51 = vpack.c.bf16 %v2406_v20, %v2398_v43  ;;  %3241 = vmatprep.subr.bf16.mxu0 %v2620_v37 }
 0x1bc   : > { %v2165_v61 = vadd.f32 %v6300_v59, %v1749_v31  ;;  %v2413_v10 = vmax.f32 %v2157_v63, 0.0  ;;  %v2164_v56 = vadd.f32 %v6300_v59, %v1748_v49  ;;  %v2158_v4 = vadd.f32 %v7888_v41, %v1742_v45  ;;  %3242 = vmatpush1.bf16.msra.mxu0 %v2619_v24 }
 0x1bd   : > { %v2419_v35 = vmax.f32 %v2163_v58, 0.0  ;;  %v2166_v33 = vadd.f32 %v6300_v59, %v1750_v6  ;;  %v2412_v19 = vmax.f32 %v2156_v17, 0.0  ;;  %3434 = vmatprep.subr.bf16.mxu1 %v2622_v51 }
 0x1be   : > { %v2421_v60 = vmax.f32 %v2165_v61, 0.0  ;;  %v1147_v23 = vpop.f32.mrb[104].mxu0  ;;  %v2420_v3 = vmax.f32 %v2164_v56, 0.0  ;;  %3435 = vmatpush1.bf16.msra.mxu1 %v2621_v1  ;;  %v2414_v1 = vmax.f32 %v2158_v4, 0.0 }
 0x1bf   : > { %v1340_v34 = vpop.f32.mrb[104].mxu1  ;;  %v2627_v46 = vpack.c.bf16 %v2419_v35, %v2411_v7  ;;  %v1755_v55 = vmul.f32 %v6334_v8, %v1147_v23  ;;  %v1149_v21 = vpop.f32.mrb[105].mxu0  ;;  %2962 = vmatmul.mubr.bf16.gmra.mrb[164].mxu0 %v6799_v50  ;;  %v2422_v9 = vmax.f32 %v2166_v33, 0.0  ;;  %v6829_v7 = vld [vmem:[%s7742_s4 + $0xa0] ss:$8 sps:$4 sm:$0xff]  }
 0x1c0   : > { %v2629_v18 = vpack.c.bf16 %v2421_v60, %v2413_v10  ;;  %v1342_v11 = vpop.f32.mrb[105].mxu1  ;;  %v1757_v59 = vmul.f32 %v6334_v8, %v1340_v34  ;;  %v1151_v26 = vpop.f32.mrb[106].mxu0  ;;  %3155 = vmatmul.mubr.bf16.gmra.mrb[164].mxu1 %v6799_v50  ;;  %v1756_v24 = vmul.f32 %v6334_v8, %v1149_v21  ;;  %2971 = vmatprep.mubr.bf16.mxu0 %v6807_v47 }
 0x1c1   : > { %v1344_v5 = vpop.f32.mrb[106].mxu1  ;;  %v2171_v36 = vadd.f32 %v7890_v53, %v1755_v55  ;;  %v1763_v2 = vmul.f32 %v7891_v62, %v1151_v26  ;;  %v1153_v41 = vpop.f32.mrb[107].mxu0  ;;  %3164 = vmatprep.mubr.bf16.mxu1 %v6807_v47  ;;  %v1758_v49 = vmul.f32 %v6334_v8, %v1342_v11  ;;  %v2628_v43 = vpack.c.bf16 %v2420_v3, %v2412_v19 }
 0x1c2   : > { %v1765_v27 = vmul.f32 %v7891_v62, %v1344_v5  ;;  %v1346_v57 = vpop.f32.mrb[107].mxu1  ;;  %v2173_v13 = vadd.f32 %v7890_v53, %v1757_v59  ;;  %v1764_v31 = vmul.f32 %v7891_v62, %v1153_v41  ;;  %v2630_v10 = vpack.c.bf16 %v2422_v9, %v2414_v1  ;;  %v7892_v59 = vld [vmem:[#allocation17_spill] sm:$0xff]  ;;  %v7893_v5 = vld [vmem:[#allocation16_spill] sm:$0xff] }
 0x1c3   : > { %v2179_v25 = vadd.f32 %v6356_v32, %v1763_v2  ;;  %v1766_v20 = vmul.f32 %v7891_v62, %v1346_v57  ;;  %v2427_v63 = vmax.f32 %v2171_v36, 0.0  ;;  %v2172_v60 = vadd.f32 %v7890_v53, %v1756_v24  ;;  %3243 = vmatprep.subr.bf16.mxu0 %v2628_v43 }
 0x1c4   : > { %v2181_v40 = vadd.f32 %v6356_v32, %v1765_v27  ;;  %v2429_v45 = vmax.f32 %v2173_v13, 0.0  ;;  %v2180_v29 = vadd.f32 %v6356_v32, %v1764_v31  ;;  %v2174_v23 = vadd.f32 %v7890_v53, %v1758_v49  ;;  %3436 = vmatprep.subr.bf16.mxu1 %v2630_v10  ;;  %3244 = vmatpush1.bf16.msra.mxu0 %v2627_v46 }
 0x1c5   : > { %v2435_v58 = vmax.f32 %v2179_v25, 0.0  ;;  %v2182_v6 = vadd.f32 %v6356_v32, %v1766_v20  ;;  %v6836_v32 = vld [vmem:[%s7742_s4 + $0xb4] ss:$8 sps:$4 sm:$0xff]   ;;  %3437 = vmatpush1.bf16.msra.mxu1 %v2629_v18  ;;  %v2428_v41 = vmax.f32 %v2172_v60, 0.0 }
 0x1c6   : > { %v2437_v61 = vmax.f32 %v2181_v40, 0.0  ;;  %v1157_v17 = vpop.f32.mrb[108].mxu0  ;;  %v2436_v34 = vmax.f32 %v2180_v29, 0.0  ;;  %v2430_v24 = vmax.f32 %v2174_v23, 0.0 }
 0x1c7   : > { %v1350_v35 = vpop.f32.mrb[108].mxu1  ;;  %v2635_v56 = vpack.c.bf16 %v2435_v58, %v2427_v63  ;;  %v1771_v8 = vmul.f32 %v6374_v38, %v1157_v17  ;;  %v1159_v33 = vpop.f32.mrb[109].mxu0  ;;  %v2438_v19 = vmax.f32 %v2182_v6, 0.0  ;;  %2972 = vmatmul.mubr.bf16.gmra.mrb[168].mxu0 %v6829_v7 }
 0x1c8   : > { %v2637_v37 = vpack.c.bf16 %v2437_v61, %v2429_v45  ;;  %v1352_v51 = vpop.f32.mrb[109].mxu1  ;;  %v1773_v4 = vmul.f32 %v6374_v38, %v1350_v35  ;;  %v1772_v55 = vmul.f32 %v6374_v38, %v1159_v33  ;;  %v1161_v21 = vpop.f32.mrb[110].mxu0  ;;  %3165 = vmatmul.mubr.bf16.gmra.mrb[168].mxu1 %v6829_v7  ;;  %2981 = vmatprep.mubr.bf16.mxu0 %v6836_v32  ;;  %v6860_v45 = vld [vmem:[%s7742_s4 + $0xb0] ss:$8 sps:$4 sm:$0xff]  }
 0x1c9   : > { %v1354_v11 = vpop.f32.mrb[110].mxu1  ;;  %v2187_v26 = vadd.f32 %v7892_v59, %v1771_v8  ;;  %v1779_v3 = vmul.f32 %v7893_v5, %v1161_v21  ;;  %v1163_v53 = vpop.f32.mrb[111].mxu0  ;;  %v1774_v27 = vmul.f32 %v6374_v38, %v1352_v51  ;;  %3174 = vmatprep.mubr.bf16.mxu1 %v6836_v32  ;;  %v2636_v63 = vpack.c.bf16 %v2436_v34, %v2428_v41 }
 0x1ca   : > { %v1781_v36 = vmul.f32 %v7893_v5, %v1354_v11  ;;  %v1356_v62 = vpop.f32.mrb[111].mxu1  ;;  %v2189_v46 = vadd.f32 %v7892_v59, %v1773_v4  ;;  %v2188_v2 = vadd.f32 %v7892_v59, %v1772_v55  ;;  %v1780_v18 = vmul.f32 %v7893_v5, %v1163_v53  ;;  %v7894_v55 = vld [vmem:[#allocation19_spill] sm:$0xff] }
 0x1cb   : > { %v2195_v57 = vadd.f32 %v6396_v39, %v1779_v3  ;;  %v1782_v13 = vmul.f32 %v7893_v5, %v1356_v62  ;;  %v2443_v31 = vmax.f32 %v2187_v26, 0.0  ;;  %v2638_v58 = vpack.c.bf16 %v2438_v19, %v2430_v24  ;;  %3245 = vmatprep.subr.bf16.mxu0 %v2636_v63  ;;  %v7895_v19 = vld [vmem:[#allocation18_spill] sm:$0xff] }
 0x1cc   : > { %v2197_v9 = vadd.f32 %v6396_v39, %v1781_v36  ;;  %v2445_v1 = vmax.f32 %v2189_v46, 0.0  ;;  %v2196_v25 = vadd.f32 %v6396_v39, %v1780_v18  ;;  %v2444_v49 = vmax.f32 %v2188_v2, 0.0  ;;  %3246 = vmatpush1.bf16.msra.mxu0 %v2635_v56  ;;  %v6891_v24 = vld [vmem:[%s7742_s4 + $0xc0] ss:$8 sps:$4 sm:$0xff]  }
 0x1cd   : > { %v2451_v40 = vmax.f32 %v2195_v57, 0.0  ;;  %v2198_v20 = vadd.f32 %v6396_v39, %v1782_v13  ;;  %v2190_v6 = vadd.f32 %v7892_v59, %v1774_v27  ;;  %v6867_v39 = vld [vmem:[%s7742_s4 + $0xc4] ss:$8 sps:$4 sm:$0xff]   ;;  %3438 = vmatprep.subr.bf16.mxu1 %v2638_v58 }
 0x1ce   : > { %v2453_v38 = vmax.f32 %v2197_v9, 0.0  ;;  %v2452_v29 = vmax.f32 %v2196_v25, 0.0  ;;  %v1167_v61 = vpop.f32.mrb[112].mxu0  ;;  %3439 = vmatpush1.bf16.msra.mxu1 %v2637_v37 }
 0x1cf   : > { %v2643_v43 = vpack.c.bf16 %v2451_v40, %v2443_v31  ;;  %v1787_v17 = vmul.f32 %v6414_v52, %v1167_v61  ;;  %v1360_v35 = vpop.f32.mrb[112].mxu1  ;;  %v1169_v60 = vpop.f32.mrb[113].mxu0  ;;  %v2454_v4 = vmax.f32 %v2198_v20, 0.0  ;;  %2982 = vmatmul.mubr.bf16.gmra.mrb[172].mxu0 %v6860_v45  ;;  %v2446_v62 = vmax.f32 %v2190_v6, 0.0 }
 0x1d0   : > { %v2645_v10 = vpack.c.bf16 %v2453_v38, %v2445_v1  ;;  %v1789_v8 = vmul.f32 %v6414_v52, %v1360_v35  ;;  %v1788_v33 = vmul.f32 %v6414_v52, %v1169_v60  ;;  %v1362_v51 = vpop.f32.mrb[113].mxu1  ;;  %v1171_v23 = vpop.f32.mrb[114].mxu0  ;;  %v2644_v34 = vpack.c.bf16 %v2452_v29, %v2444_v49  ;;  %3175 = vmatmul.mubr.bf16.gmra.mrb[172].mxu1 %v6860_v45  ;;  %v7896_v29 = vld [vmem:[#allocation20_spill] sm:$0xff] }
 0x1d1   : > { %v2203_v21 = vadd.f32 %v7894_v55, %v1787_v17  ;;  %v1790_v11 = vmul.f32 %v6414_v52, %v1362_v51  ;;  %v1795_v59 = vmul.f32 %v7895_v19, %v1171_v23  ;;  %v1364_v26 = vpop.f32.mrb[114].mxu1  ;;  %v1173_v5 = vpop.f32.mrb[115].mxu0  ;;  %2991 = vmatprep.mubr.bf16.mxu0 %v6867_v39  ;;  %3184 = vmatprep.mubr.bf16.mxu1 %v6867_v39 }
 0x1d2   : > { %v2205_v56 = vadd.f32 %v7894_v55, %v1789_v8  ;;  %v2204_v3 = vadd.f32 %v7894_v55, %v1788_v33  ;;  %v1797_v36 = vmul.f32 %v7895_v19, %v1364_v26  ;;  %v1796_v37 = vmul.f32 %v7895_v19, %v1173_v5  ;;  %v1366_v53 = vpop.f32.mrb[115].mxu1  ;;  %3247 = vmatprep.subr.bf16.mxu0 %v2644_v34  ;;  %v7897_v33 = vld [vmem:[#allocation21_spill] sm:$0xff] }
 0x1d3   : > { %v2206_v46 = vadd.f32 %v7894_v55, %v1790_v11  ;;  %v2211_v52 = vadd.f32 %v6436_v15, %v1795_v59  ;;  %v1798_v2 = vmul.f32 %v7895_v19, %v1366_v53  ;;  %3248 = vmatpush1.bf16.msra.mxu0 %v2643_v43  ;;  %v2459_v41 = vmax.f32 %v2203_v21, 0.0 }
 0x1d4   : > { %v2213_v27 = vadd.f32 %v6436_v15, %v1797_v36  ;;  %v2212_v18 = vadd.f32 %v6436_v15, %v1796_v37  ;;  %v2646_v13 = vpack.c.bf16 %v2454_v4, %v2446_v62  ;;  %v2461_v31 = vmax.f32 %v2205_v56, 0.0 }
 0x1d5   : > { %v2467_v57 = vmax.f32 %v2211_v52, 0.0  ;;  %v2214_v9 = vadd.f32 %v6436_v15, %v1798_v2  ;;  %v2460_v1 = vmax.f32 %v2204_v3, 0.0  ;;  %v2462_v20 = vmax.f32 %v2206_v46, 0.0  ;;  %v7898_v3 = vld [vmem:[#allocation22_spill] sm:$0xff] }
 0x1d6   : > { %v2469_v25 = vmax.f32 %v2213_v27, 0.0  ;;  %v2468_v40 = vmax.f32 %v2212_v18, 0.0  ;;  %v1177_v38 = vpop.f32.mrb[116].mxu0  ;;  %3440 = vmatprep.subr.bf16.mxu1 %v2646_v13 }
 0x1d7   : > { %v2651_v63 = vpack.c.bf16 %v2467_v57, %v2459_v41  ;;  %v2470_v49 = vmax.f32 %v2214_v9, 0.0  ;;  %v1803_v58 = vmul.f32 %v7896_v29, %v1177_v38  ;;  %v1370_v61 = vpop.f32.mrb[116].mxu1  ;;  %v1179_v6 = vpop.f32.mrb[117].mxu0  ;;  %3441 = vmatpush1.bf16.msra.mxu1 %v2645_v10  ;;  %2992 = vmatmul.mubr.bf16.gmra.mrb[176].mxu0 %v6891_v24  ;;  %v6903_v10 = vld [vmem:[%s7742_s4 + $0xd4] ss:$8 sps:$4 sm:$0xff]  }
 0x1d8   : > { %v2653_v15 = vpack.c.bf16 %v2469_v25, %v2461_v31  ;;  %v1805_v43 = vmul.f32 %v7896_v29, %v1370_v61  ;;  %v1804_v17 = vmul.f32 %v7896_v29, %v1179_v6  ;;  %v1372_v35 = vpop.f32.mrb[117].mxu1  ;;  %v1181_v60 = vpop.f32.mrb[118].mxu0  ;;  %v2652_v8 = vpack.c.bf16 %v2468_v40, %v2460_v1  ;;  %3185 = vmatmul.mubr.bf16.gmra.mrb[176].mxu1 %v6891_v24  ;;  %v7899_v25 = vld [vmem:[#allocation23_spill] sm:$0xff] }
 0x1d9   : > { %v2219_v51 = vadd.f32 %v7897_v33, %v1803_v58  ;;  %v1806_v23 = vmul.f32 %v7896_v29, %v1372_v35  ;;  %v1811_v34 = vmul.f32 %v6456_v44, %v1181_v60  ;;  %v1374_v4 = vpop.f32.mrb[118].mxu1  ;;  %v1183_v55 = vpop.f32.mrb[119].mxu0  ;;  %v2654_v21 = vpack.c.bf16 %v2470_v49, %v2462_v20  ;;  %3001 = vmatprep.mubr.bf16.mxu0 %v6903_v10 }
 0x1da   : > { %v2221_v11 = vadd.f32 %v7897_v33, %v1805_v43  ;;  %v2220_v19 = vadd.f32 %v7897_v33, %v1804_v17  ;;  %v1813_v59 = vmul.f32 %v6456_v44, %v1374_v4  ;;  %v1812_v26 = vmul.f32 %v6456_v44, %v1183_v55  ;;  %v1376_v5 = vpop.f32.mrb[119].mxu1  ;;  %3249 = vmatprep.subr.bf16.mxu0 %v2652_v8 }
 0x1db   : > { %v2222_v56 = vadd.f32 %v7897_v33, %v1806_v23  ;;  %v2227_v36 = vadd.f32 %v7898_v3, %v1811_v34  ;;  %v1814_v37 = vmul.f32 %v6456_v44, %v1376_v5  ;;  %3442 = vmatprep.subr.bf16.mxu1 %v2654_v21  ;;  %3250 = vmatpush1.bf16.msra.mxu0 %v2651_v63  ;;  %v2475_v46 = vmax.f32 %v2219_v51, 0.0  ;;  %v6921_v44 = vld [vmem:[%s7742_s4 + $0xd0] ss:$8 sps:$4 sm:$0xff]   ;;  %v6933_v51 = vld [vmem:[%s7742_s4 + $0xe4] ss:$8 sps:$4 sm:$0xff]  }
 0x1dc   : > { %v2229_v53 = vadd.f32 %v7898_v3, %v1813_v59  ;;  %v2228_v62 = vadd.f32 %v7898_v3, %v1812_v26  ;;  %3443 = vmatpush1.bf16.msra.mxu1 %v2653_v15  ;;  %3194 = vmatprep.mubr.bf16.mxu1 %v6903_v10  ;;  %v2477_v27 = vmax.f32 %v2221_v11, 0.0  ;;  %v2476_v18 = vmax.f32 %v2220_v19, 0.0  ;;  %v7900_v15 = vld [vmem:[#allocation24_spill] sm:$0xff] }
 0x1dd   : > { %v2483_v52 = vmax.f32 %v2227_v36, 0.0  ;;  %v2230_v2 = vadd.f32 %v7898_v3, %v1814_v37  ;;  %v2478_v13 = vmax.f32 %v2222_v56, 0.0  ;;  %v6953_v37 = vpop.permute.xlu0 %3645 }
 0x1de   : > { %v2485_v41 = vmax.f32 %v2229_v53, 0.0  ;;  %v2484_v57 = vmax.f32 %v2228_v62, 0.0  ;;  %v1187_v9 = vpop.f32.mrb[120].mxu0 }
 0x1df   : > { %v2659_v31 = vpack.c.bf16 %v2483_v52, %v2475_v46  ;;  %v2486_v1 = vmax.f32 %v2230_v2, 0.0  ;;  %v1819_v40 = vmul.f32 %v7899_v25, %v1187_v9  ;;  %v1380_v38 = vpop.f32.mrb[120].mxu1  ;;  %v1189_v20 = vpop.f32.mrb[121].mxu0  ;;  %3002 = vmatmul.mubr.bf16.gmra.mrb[180].mxu0 %v6921_v44 }
 0x1e0   : > { %v2661_v63 = vpack.c.bf16 %v2485_v41, %v2477_v27  ;;  %v1821_v49 = vmul.f32 %v7899_v25, %v1380_v38  ;;  %v1820_v29 = vmul.f32 %v7899_v25, %v1189_v20  ;;  %v1382_v58 = vpop.f32.mrb[121].mxu1  ;;  %v1191_v61 = vpop.f32.mrb[122].mxu0  ;;  %v2660_v6 = vpack.c.bf16 %v2484_v57, %v2476_v18  ;;  %3195 = vmatmul.mubr.bf16.gmra.mrb[180].mxu1 %v6921_v44 }
 0x1e1   : > { %v2235_v43 = vadd.f32 %v7900_v15, %v1819_v40  ;;  %v1822_v17 = vmul.f32 %v7899_v25, %v1382_v58  ;;  %v1827_v35 = vmul.f32 %v6496_v54, %v1191_v61  ;;  %v1384_v60 = vpop.f32.mrb[122].mxu1  ;;  %v1193_v8 = vpop.f32.mrb[123].mxu0  ;;  %v2662_v33 = vpack.c.bf16 %v2486_v1, %v2478_v13  ;;  %3011 = vmatprep.mubr.bf16.mxu0 %v6933_v51 }
 0x1e2   : > { %v2237_v23 = vadd.f32 %v7900_v15, %v1821_v49  ;;  %v2236_v34 = vadd.f32 %v7900_v15, %v1820_v29  ;;  %v1829_v4 = vmul.f32 %v6496_v54, %v1384_v60  ;;  %v1828_v55 = vmul.f32 %v6496_v54, %v1193_v8  ;;  %v1386_v21 = vpop.f32.mrb[123].mxu1  ;;  %3251 = vmatprep.subr.bf16.mxu0 %v2660_v6 }
 0x1e3   : > { %v2238_v11 = vadd.f32 %v7900_v15, %v1822_v17  ;;  %v2243_v19 = vadd.f32 %v6516_v28, %v1827_v35  ;;  %v1830_v59 = vmul.f32 %v6496_v54, %v1386_v21  ;;  %3444 = vmatprep.subr.bf16.mxu1 %v2662_v33  ;;  %3252 = vmatpush1.bf16.msra.mxu0 %v2659_v31  ;;  %v2491_v56 = vmax.f32 %v2235_v43, 0.0  ;;  %v6951_v54 = vld [vmem:[%s7742_s4 + $0xe0] ss:$8 sps:$4 sm:$0xff]   ;;  %v6965_v43 = vld [vmem:[%s7742_s4 + $0xf4] ss:$8 sps:$4 sm:$0xff]  }
 0x1e4   : > { %v2245_v26 = vadd.f32 %v6516_v28, %v1829_v4  ;;  %v2244_v5 = vadd.f32 %v6516_v28, %v1828_v55  ;;  %3445 = vmatpush1.bf16.msra.mxu1 %v2661_v63  ;;  %3204 = vmatprep.mubr.bf16.mxu1 %v6933_v51  ;;  %v2493_v53 = vmax.f32 %v2237_v23, 0.0  ;;  %v2492_v62 = vmax.f32 %v2236_v34, 0.0  ;;  %v7902_v63 = vld [vmem:[#allocation26_spill] sm:$0xff] }
 0x1e5   : > { %v2499_v3 = vmax.f32 %v2243_v19, 0.0  ;;  %v2246_v36 = vadd.f32 %v6516_v28, %v1830_v59  ;;  %v2494_v27 = vmax.f32 %v2238_v11, 0.0  ;;  %v7901_v28 = vld [vmem:[#allocation25_spill] sm:$0xff] }
 0x1e6   : > { %v2501_v46 = vmax.f32 %v2245_v26, 0.0  ;;  %v2500_v52 = vmax.f32 %v2244_v5, 0.0  ;;  %v1197_v2 = vpop.f32.mrb[124].mxu0 }
 0x1e7   : > { %v2667_v18 = vpack.c.bf16 %v2499_v3, %v2491_v56  ;;  %v2502_v41 = vmax.f32 %v2246_v36, 0.0  ;;  %v1835_v57 = vmul.f32 %v7901_v28, %v1197_v2  ;;  %v1390_v9 = vpop.f32.mrb[124].mxu1  ;;  %v1199_v13 = vpop.f32.mrb[125].mxu0  ;;  %3012 = vmatmul.mubr.bf16.gmra.mrb[184].mxu0 %v6951_v54 }
 0x1e8   : > { %v2669_v31 = vpack.c.bf16 %v2501_v46, %v2493_v53  ;;  %v1837_v1 = vmul.f32 %v7901_v28, %v1390_v9  ;;  %v1836_v25 = vmul.f32 %v7901_v28, %v1199_v13  ;;  %v1392_v40 = vpop.f32.mrb[125].mxu1  ;;  %v1201_v38 = vpop.f32.mrb[126].mxu0  ;;  %v2668_v20 = vpack.c.bf16 %v2500_v52, %v2492_v62  ;;  %3205 = vmatmul.mubr.bf16.gmra.mrb[184].mxu1 %v6951_v54  ;;  %v5426_v9 = vld [vmem:[%s7742_s4 + $0x14] ss:$8 sps:$4 sm:$0xff]  }
 0x1e9   : > { %v2251_v49 = vadd.f32 %v7902_v63, %v1835_v57  ;;  %v1838_v29 = vmul.f32 %v7901_v28, %v1392_v40  ;;  %v1843_v58 = vmul.f32 %v6532_v22, %v1201_v38  ;;  %v1394_v61 = vpop.f32.mrb[126].mxu1  ;;  %v1203_v6 = vpop.f32.mrb[127].mxu0  ;;  %v2670_v15 = vpack.c.bf16 %v2502_v41, %v2494_v27  ;;  %3021 = vmatprep.mubr.bf16.mxu0 %v6965_v43  ;;  %v5425_v57 = vld [vmem:[%s7742_s4] ss:$8 sps:$4 sm:$0xff]   ;;  %v5428_v38 = vld [vmem:[%s7742_s4 + $0x24] ss:$8 sps:$4 sm:$0xff]  }
 0x1ea   : > { %v2253_v17 = vadd.f32 %v7902_v63, %v1837_v1  ;;  %v2252_v35 = vadd.f32 %v7902_v63, %v1836_v25  ;;  %v1845_v60 = vmul.f32 %v6532_v22, %v1394_v61  ;;  %v1844_v8 = vmul.f32 %v6532_v22, %v1203_v6  ;;  %v1396_v33 = vpop.f32.mrb[127].mxu1  ;;  %3253 = vmatprep.subr.bf16.mxu0 %v2668_v20  ;;  %v6985_v36 = vpop.permute.xlu0 %4093  ;;  %v5427_v25 = vld [vmem:[%s7742_s4 + $0x10] ss:$8 sps:$4 sm:$0xff]  }
 0x1eb   : > { %v2254_v23 = vadd.f32 %v7902_v63, %v1838_v29  ;;  %v2259_v34 = vadd.f32 %v6546_v30, %v1843_v58  ;;  %v1846_v4 = vmul.f32 %v6532_v22, %v1396_v33  ;;  %3446 = vmatprep.subr.bf16.mxu1 %v2670_v15  ;;  %3254 = vmatpush1.bf16.msra.mxu0 %v2667_v18  ;;  %v2507_v11 = vmax.f32 %v2251_v49, 0.0  ;;  %v6983_v22 = vld [vmem:[%s7742_s4 + $0xf0] ss:$8 sps:$4 sm:$0xff]   ;;  %v6987_v52 = vpop.permute.xlu1 %3650  ;;  %v5424_v18 = vld [vmem:[%s7742_s4 + $0x4] ss:$8 sps:$4 sm:$0xff]  }
 0x1ec   : > { %v2261_v55 = vadd.f32 %v6546_v30, %v1845_v60  ;;  %v2260_v21 = vadd.f32 %v6546_v30, %v1844_v8  ;;  %3447 = vmatpush1.bf16.msra.mxu1 %v2669_v31  ;;  %3214 = vmatprep.mubr.bf16.mxu1 %v6965_v43  ;;  %v2509_v26 = vmax.f32 %v2253_v17, 0.0  ;;  %v2508_v5 = vmax.f32 %v2252_v35, 0.0  ;;  %7903 = vst [vmem:[#allocation2_spill] sm:$0xff] %v6987_v52  ;;  %v5429_v49 = vld [vmem:[%s7742_s4 + $0x20] ss:$8 sps:$4 sm:$0xff]  }
 0x1ed   : > { %v2515_v19 = vmax.f32 %v2259_v34, 0.0  ;;  %v2262_v59 = vadd.f32 %v6546_v30, %v1846_v4  ;;  %v2510_v53 = vmax.f32 %v2254_v23, 0.0  ;;  %v5430_v29 = vld [vmem:[%s7742_s4 + $0x34] ss:$8 sps:$4 sm:$0xff]   ;;  %v5431_v6 = vld [vmem:[%s7742_s4 + $0x30] ss:$8 sps:$4 sm:$0xff]  }
 0x1ee   : > { %v2517_v56 = vmax.f32 %v2261_v55, 0.0  ;;  %v2516_v3 = vmax.f32 %v2260_v21, 0.0  ;;  %v6994_v41 = vpop.permute.xlu0 %3655  ;;  %v5432_v15 = vld [vmem:[%s7742_s4 + $0x44] ss:$8 sps:$4 sm:$0xff]   ;;  %v5433_v8 = vld [vmem:[%s7742_s4 + $0x40] ss:$8 sps:$4 sm:$0xff]  }
 0x1ef   : > { %v2675_v62 = vpack.c.bf16 %v2515_v19, %v2507_v11  ;;  %v2518_v46 = vmax.f32 %v2262_v59, 0.0  ;;  %3022 = vmatmul.mubr.bf16.gmra.mrb[188].mxu0 %v6983_v22  ;;  %v6996_v28 = vpop.permute.xlu1 %4098  ;;  %v5434_v23 = vld [vmem:[%s7742_s4 + $0x54] ss:$8 sps:$4 sm:$0xff]   ;;  %v5435_v55 = vld [vmem:[%s7742_s4 + $0x50] ss:$8 sps:$4 sm:$0xff]  }
 0x1f0   : > { %v2677_v30 = vpack.c.bf16 %v2517_v56, %v2509_v26  ;;  %v2676_v2 = vpack.c.bf16 %v2516_v3, %v2508_v5  ;;  %3215 = vmatmul.mubr.bf16.gmra.mrb[188].mxu1 %v6983_v22  ;;  %3257 = vmatprep.mubr.bf16.mxu0 %v5424_v18  ;;  %7904 = vst [vmem:[#allocation3_spill] sm:$0xff] %v6996_v28  ;;  %v5436_v21 = vld [vmem:[%s7742_s4 + $0x64] ss:$8 sps:$4 sm:$0xff]  }
 0x1f1   : > { %v2678_v27 = vpack.c.bf16 %v2518_v46, %v2510_v53  ;;  %3450 = vmatprep.mubr.bf16.mxu1 %v5424_v18 }
 0x1f2   : > { %3255 = vmatprep.subr.bf16.mxu0 %v2676_v2  ;;  %v7004_v13 = vpop.permute.xlu0 %4103 }
 0x1f3   : > { %3448 = vmatprep.subr.bf16.mxu1 %v2678_v27  ;;  %3256 = vmatpush1.bf16.msra.mxu0 %v2675_v62  ;;  %v7006_v31 = vpop.permute.xlu1 %3660 }
 0x1f4   : > { %3449 = vmatpush1.bf16.msra.mxu1 %v2677_v30 }
 0x1f6   : > { %v7008_v1 = vpop.permute.xlu0 %3665 }
 0x1f7   : > { %3258 = vmatmul.mubr.bf16.vlgmr.msra.gmra.mrb[192].mxu0 %v5425_v57  ;;  %v7013_v40 = vpop.permute.xlu1 %4108 }
 0x1f8   : > { %3451 = vmatmul.mubr.bf16.vlgmr.msra.gmra.mrb[192].mxu1 %v5425_v57  ;;  %3267 = vmatprep.mubr.bf16.mxu0 %v5426_v9 }
 0x1f9   : > { %3460 = vmatprep.mubr.bf16.mxu1 %v5426_v9 }
 0x1fa   : > { %v7018_v20 = vpop.permute.xlu0 %4113 }
 0x1fb   : > { %v7020_v63 = vpop.permute.xlu1 %3670 }
 0x1fe   : > { %v7028_v58 = vpop.permute.xlu0 %3675 }
 0x1ff   : > { %3268 = vmatmul.mubr.bf16.gmra.mrb[196].mxu0 %v5427_v25  ;;  %v7030_v61 = vpop.permute.xlu1 %4118 }
 0x200   : > { %3461 = vmatmul.mubr.bf16.gmra.mrb[196].mxu1 %v5427_v25  ;;  %3277 = vmatprep.mubr.bf16.mxu0 %v5428_v38 }
 0x201   : > { %3470 = vmatprep.mubr.bf16.mxu1 %v5428_v38 }
 0x202   : > { %v7038_v17 = vpop.permute.xlu0 %4123 }
 0x203   : > { %v7040_v35 = vpop.permute.xlu1 %3680 }
 0x206   : > { %v7042_v60 = vpop.permute.xlu0 %3685 }
 0x207   : > { %3278 = vmatmul.mubr.bf16.gmra.mrb[200].mxu0 %v5429_v49  ;;  %v7047_v33 = vpop.permute.xlu1 %4128 }
 0x208   : > { %3471 = vmatmul.mubr.bf16.gmra.mrb[200].mxu1 %v5429_v49  ;;  %3287 = vmatprep.mubr.bf16.mxu0 %v5430_v29  ;;  %7905 = vst [vmem:[#allocation4_spill] sm:$0xff] %v7047_v33 }
 0x209   : > { %3480 = vmatprep.mubr.bf16.mxu1 %v5430_v29 }
 0x20a   : > { %v7052_v34 = vpop.permute.xlu0 %4133 }
 0x20b   : > { %v7054_v4 = vpop.permute.xlu1 %3690 }
 0x20e   : > { %v7062_v11 = vpop.permute.xlu0 %3695 }
 0x20f   : > { %3288 = vmatmul.mubr.bf16.gmra.mrb[204].mxu0 %v5431_v6  ;;  %v7064_v19 = vpop.permute.xlu1 %4138 }
 0x210   : > { %3481 = vmatmul.mubr.bf16.gmra.mrb[204].mxu1 %v5431_v6  ;;  %3297 = vmatprep.mubr.bf16.mxu0 %v5432_v15 }
 0x211   : > { %3490 = vmatprep.mubr.bf16.mxu1 %v5432_v15 }
 0x212   : > { %v7069_v59 = vpop.permute.xlu0 %4143 }
 0x213   : > { %7906 = vst [vmem:[#allocation5_spill] sm:$0xff] %v7069_v59  ;;  %v7072_v26 = vpop.permute.xlu1 %3700 }
 0x214   : > { %7907 = vst [vmem:[#allocation7_spill] sm:$0xff] %v7072_v26 }
 0x216   : > { %v7074_v5 = vpop.permute.xlu0 %3705 }
 0x217   : > { %3298 = vmatmul.mubr.bf16.gmra.mrb[208].mxu0 %v5433_v8  ;;  %v7077_v56 = vpop.permute.xlu1 %4148 }
 0x218   : > { %3491 = vmatmul.mubr.bf16.gmra.mrb[208].mxu1 %v5433_v8  ;;  %3307 = vmatprep.mubr.bf16.mxu0 %v5434_v23  ;;  %7908 = vst [vmem:[#allocation6_spill] sm:$0xff] %v7077_v56 }
 0x219   : > { %3500 = vmatprep.mubr.bf16.mxu1 %v5434_v23 }
 0x21b   : > { %v7084_v3 = vpop.permute.xlu1 %3710 }
 0x21c   : > { %7910 = vst [vmem:[#allocation8_spill] sm:$0xff] %v7084_v3 }
 0x21f   : > { %3308 = vmatmul.mubr.bf16.gmra.mrb[212].mxu0 %v5435_v55  ;;  %v7092_v53 = vpop.permute.xlu1 %4158 }
 0x220   : > { %3501 = vmatmul.mubr.bf16.gmra.mrb[212].mxu1 %v5435_v55  ;;  %3317 = vmatprep.mubr.bf16.mxu0 %v5436_v21  ;;  %7911 = vst [vmem:[#allocation11_spill] sm:$0xff] %v7092_v53 }
 0x221   : > { %3510 = vmatprep.mubr.bf16.mxu1 %v5436_v21 }
 0x227   : > { %3318 = vmatmul.mubr.bf16.gmra.mrb[216].mxu0 %v6708_v16 }
 0x228   : > { %3511 = vmatmul.mubr.bf16.gmra.mrb[216].mxu1 %v6708_v16  ;;  %3327 = vmatprep.mubr.bf16.mxu0 %v6716_v0  ;;  %v7082_v16 = vpop.permute.xlu0 %4153 }
 0x229   : > { %3520 = vmatprep.mubr.bf16.mxu1 %v6716_v0  ;;  %7909 = vst [vmem:[#allocation9_spill] sm:$0xff] %v7082_v16 }
 0x22c   : > { %v7090_v0 = vpop.permute.xlu0 %3715 }
 0x22f   : > { %3328 = vmatmul.mubr.bf16.gmra.mrb[220].mxu0 %v6738_v12 }
 0x230   : > { %3521 = vmatmul.mubr.bf16.gmra.mrb[220].mxu1 %v6738_v12  ;;  %3337 = vmatprep.mubr.bf16.mxu0 %v6746_v14  ;;  %v7097_v12 = vpop.permute.xlu0 %4163 }
 0x231   : > { %3530 = vmatprep.mubr.bf16.mxu1 %v6746_v14  ;;  %v7100_v14 = vpop.permute.xlu1 %3720 }
 0x232   : > { %7912 = vst [vmem:[#allocation10_spill] sm:$0xff] %v7100_v14 }
 0x237   : > { %3338 = vmatmul.mubr.bf16.gmra.mrb[224].mxu0 %v6768_v48 }
 0x238   : > { %3531 = vmatmul.mubr.bf16.gmra.mrb[224].mxu1 %v6768_v48  ;;  %3347 = vmatprep.mubr.bf16.mxu0 %v6776_v42  ;;  %v7102_v48 = vpop.permute.xlu0 %3725 }
 0x239   : > { %3540 = vmatprep.mubr.bf16.mxu1 %v6776_v42  ;;  %v7105_v42 = vpop.permute.xlu1 %4168 }
 0x23a   : > { %7913 = vst [vmem:[#allocation13_spill] sm:$0xff] %v7105_v42 }
 0x23f   : > { %3348 = vmatmul.mubr.bf16.gmra.mrb[228].mxu0 %v6799_v50 }
 0x240   : > { %3541 = vmatmul.mubr.bf16.gmra.mrb[228].mxu1 %v6799_v50  ;;  %3357 = vmatprep.mubr.bf16.mxu0 %v6807_v47 }
 0x241   : > { %3550 = vmatprep.mubr.bf16.mxu1 %v6807_v47 }
 0x247   : > { %3358 = vmatmul.mubr.bf16.gmra.mrb[232].mxu0 %v6829_v7 }
 0x248   : > { %3551 = vmatmul.mubr.bf16.gmra.mrb[232].mxu1 %v6829_v7  ;;  %3367 = vmatprep.mubr.bf16.mxu0 %v6836_v32 }
 0x249   : > { %3560 = vmatprep.mubr.bf16.mxu1 %v6836_v32 }
 0x24a   : > { %v2873_v62 = vpop.f32.mrb[128].mxu0 }
 0x24b   : > { %v3803_v50 = vmul.f32 %v6953_v37, %v2873_v62  ;;  %v3066_v46 = vpop.f32.mrb[128].mxu1  ;;  %v2875_v30 = vpop.f32.mrb[129].mxu0 }
 0x24c   : > { %v3805_v47 = vmul.f32 %v6953_v37, %v3066_v46  ;;  %v3804_v2 = vmul.f32 %v6953_v37, %v2875_v30  ;;  %v3068_v27 = vpop.f32.mrb[129].mxu1  ;;  %v2877_v18 = vpop.f32.mrb[130].mxu0 }
 0x24d   : > { %v4251_v57 = vadd.f32 %v6985_v36, %v3803_v50  ;;  %v3806_v9 = vmul.f32 %v6953_v37, %v3068_v27  ;;  %v3811_v7 = vmul.f32 %v6987_v52, %v2877_v18  ;;  %v3070_v25 = vpop.f32.mrb[130].mxu1  ;;  %v2879_v38 = vpop.f32.mrb[131].mxu0 }
 0x24e   : > { %v4253_v49 = vadd.f32 %v6985_v36, %v3805_v47  ;;  %v4252_v29 = vadd.f32 %v6985_v36, %v3804_v2  ;;  %v3813_v32 = vmul.f32 %v6987_v52, %v3070_v25  ;;  %v3812_v6 = vmul.f32 %v6987_v52, %v2879_v38  ;;  %v3072_v15 = vpop.f32.mrb[131].mxu1  ;;  %v7125_v50 = vpop.permute.xlu0 %4173 }
 0x24f   : > { %v4254_v8 = vadd.f32 %v6985_v36, %v3806_v9  ;;  %v4259_v23 = vadd.f32 %v6996_v28, %v3811_v7  ;;  %v3814_v55 = vmul.f32 %v6987_v52, %v3072_v15  ;;  %v4507_v46 = vmax.f32 %v4251_v57, 0.0  ;;  %3368 = vmatmul.mubr.bf16.gmra.mrb[236].mxu0 %v6860_v45  ;;  %v7129_v2 = vpop.permute.xlu1 %3730 }
 0x250   : > { %v4261_v21 = vadd.f32 %v6996_v28, %v3813_v32  ;;  %v4260_v62 = vadd.f32 %v6996_v28, %v3812_v6  ;;  %7914 = vst [vmem:[#allocation12_spill] sm:$0xff] %v7129_v2  ;;  %v4509_v27 = vmax.f32 %v4253_v49, 0.0  ;;  %v4508_v18 = vmax.f32 %v4252_v29, 0.0  ;;  %3561 = vmatmul.mubr.bf16.gmra.mrb[236].mxu1 %v6860_v45  ;;  %3377 = vmatprep.mubr.bf16.mxu0 %v6867_v39 }
 0x251   : > { %v4515_v30 = vmax.f32 %v4259_v23, 0.0  ;;  %v4262_v47 = vadd.f32 %v6996_v28, %v3814_v55  ;;  %v4510_v38 = vmax.f32 %v4254_v8, 0.0  ;;  %3570 = vmatprep.mubr.bf16.mxu1 %v6867_v39 }
 0x252   : > { %v4517_v9 = vmax.f32 %v4261_v21, 0.0  ;;  %v4516_v7 = vmax.f32 %v4260_v62, 0.0  ;;  %v2883_v25 = vpop.f32.mrb[132].mxu0 }
 0x253   : > { %v4764_v32 = vpack.c.bf16 %v4515_v30, %v4507_v46  ;;  %v4518_v6 = vmax.f32 %v4262_v47, 0.0  ;;  %v3819_v57 = vmul.f32 %v6994_v41, %v2883_v25  ;;  %v3076_v15 = vpop.f32.mrb[132].mxu1  ;;  %v2885_v23 = vpop.f32.mrb[133].mxu0 }
 0x254   : > { %v4766_v55 = vpack.c.bf16 %v4517_v9, %v4509_v27  ;;  %v3821_v49 = vmul.f32 %v6994_v41, %v3076_v15  ;;  %v3820_v29 = vmul.f32 %v6994_v41, %v2885_v23  ;;  %v3078_v21 = vpop.f32.mrb[133].mxu1  ;;  %v2887_v62 = vpop.f32.mrb[134].mxu0  ;;  %v4765_v45 = vpack.c.bf16 %v4516_v7, %v4508_v18 }
 0x255   : > { %v4267_v28 = vadd.f32 %v7004_v13, %v3819_v57  ;;  %v3822_v8 = vmul.f32 %v6994_v41, %v3078_v21  ;;  %v3827_v46 = vmul.f32 %v7006_v31, %v2887_v62  ;;  %v3080_v30 = vpop.f32.mrb[134].mxu1  ;;  %v2889_v47 = vpop.f32.mrb[135].mxu0  ;;  %v4767_v25 = vpack.c.bf16 %v4518_v6, %v4510_v38 }
 0x256   : > { %v4269_v52 = vadd.f32 %v7004_v13, %v3821_v49  ;;  %v4268_v39 = vadd.f32 %v7004_v13, %v3820_v29  ;;  %v3829_v27 = vmul.f32 %v7006_v31, %v3080_v30  ;;  %v3828_v9 = vmul.f32 %v7006_v31, %v2889_v47  ;;  %v3082_v15 = vpop.f32.mrb[135].mxu1  ;;  %4909 = vmatprep.subr.bf16.mxu0 %v4765_v45  ;;  %v7149_v23 = vpop.permute.xlu0 %3735 }
 0x257   : > { %v4270_v18 = vadd.f32 %v7004_v13, %v3822_v8  ;;  %v4275_v7 = vadd.f32 %v7013_v40, %v3827_v46  ;;  %v3830_v57 = vmul.f32 %v7006_v31, %v3082_v15  ;;  %4950 = vmatprep.subr.bf16.mxu1 %v4767_v25  ;;  %4910 = vmatpush1.bf16.msra.mxu0 %v4764_v32  ;;  %v4523_v49 = vmax.f32 %v4267_v28, 0.0  ;;  %v7153_v62 = vpop.permute.xlu1 %4178 }
 0x258   : > { %v4277_v38 = vadd.f32 %v7013_v40, %v3829_v27  ;;  %v4276_v6 = vadd.f32 %v7013_v40, %v3828_v9  ;;  %4951 = vmatpush1.bf16.msra.mxu1 %v4766_v55  ;;  %3378 = vmatmul.mubr.bf16.gmra.mrb[240].mxu0 %v6891_v24  ;;  %7915 = vst [vmem:[#allocation15_spill] sm:$0xff] %v7153_v62  ;;  %v4525_v45 = vmax.f32 %v4269_v52, 0.0  ;;  %v4524_v8 = vmax.f32 %v4268_v39, 0.0 }
 0x259   : > { %v4531_v29 = vmax.f32 %v4275_v7, 0.0  ;;  %v4278_v21 = vadd.f32 %v7013_v40, %v3830_v57  ;;  %3571 = vmatmul.mubr.bf16.gmra.mrb[240].mxu1 %v6891_v24  ;;  %3387 = vmatprep.mubr.bf16.mxu0 %v6903_v10  ;;  %v4526_v55 = vmax.f32 %v4270_v18, 0.0 }
 0x25a   : > { %v4533_v46 = vmax.f32 %v4277_v38, 0.0  ;;  %v4532_v30 = vmax.f32 %v4276_v6, 0.0  ;;  %v2893_v32 = vpop.f32.mrb[136].mxu0  ;;  %3580 = vmatprep.mubr.bf16.mxu1 %v6903_v10 }
 0x25b   : > { %v4772_v47 = vpack.c.bf16 %v4531_v29, %v4523_v49  ;;  %v4534_v25 = vmax.f32 %v4278_v21, 0.0  ;;  %v3835_v28 = vmul.f32 %v7008_v1, %v2893_v32  ;;  %v3086_v27 = vpop.f32.mrb[136].mxu1  ;;  %v2895_v9 = vpop.f32.mrb[137].mxu0 }
 0x25c   : > { %v4774_v15 = vpack.c.bf16 %v4533_v46, %v4525_v45  ;;  %v3837_v52 = vmul.f32 %v7008_v1, %v3086_v27  ;;  %v3836_v39 = vmul.f32 %v7008_v1, %v2895_v9  ;;  %v3088_v7 = vpop.f32.mrb[137].mxu1  ;;  %v2897_v57 = vpop.f32.mrb[138].mxu0  ;;  %v4773_v24 = vpack.c.bf16 %v4532_v30, %v4524_v8 }
 0x25d   : > { %v4283_v38 = vadd.f32 %v7018_v20, %v3835_v28  ;;  %v3838_v18 = vmul.f32 %v7008_v1, %v3088_v7  ;;  %v3843_v6 = vmul.f32 %v7020_v63, %v2897_v57  ;;  %v3090_v49 = vpop.f32.mrb[138].mxu1  ;;  %v2899_v29 = vpop.f32.mrb[139].mxu0  ;;  %v4775_v21 = vpack.c.bf16 %v4534_v25, %v4526_v55 }
 0x25e   : > { %v4285_v32 = vadd.f32 %v7018_v20, %v3837_v52  ;;  %v4284_v10 = vadd.f32 %v7018_v20, %v3836_v39  ;;  %v3845_v45 = vmul.f32 %v7020_v63, %v3090_v49  ;;  %v3844_v46 = vmul.f32 %v7020_v63, %v2899_v29  ;;  %v3092_v27 = vpop.f32.mrb[139].mxu1  ;;  %4911 = vmatprep.subr.bf16.mxu0 %v4773_v24  ;;  %v7173_v9 = vpop.permute.xlu0 %4183 }
 0x25f   : > { %v4286_v8 = vadd.f32 %v7018_v20, %v3838_v18  ;;  %v4291_v30 = vadd.f32 %v7030_v61, %v3843_v6  ;;  %v3846_v28 = vmul.f32 %v7020_v63, %v3092_v27  ;;  %4952 = vmatprep.subr.bf16.mxu1 %v4775_v21  ;;  %4912 = vmatpush1.bf16.msra.mxu0 %v4772_v47  ;;  %v4539_v52 = vmax.f32 %v4283_v38, 0.0  ;;  %v7177_v57 = vpop.permute.xlu1 %3740 }
 0x260   : > { %v4293_v55 = vadd.f32 %v7030_v61, %v3845_v45  ;;  %v4292_v25 = vadd.f32 %v7030_v61, %v3844_v46  ;;  %4953 = vmatpush1.bf16.msra.mxu1 %v4774_v15  ;;  %3388 = vmatmul.mubr.bf16.gmra.mrb[244].mxu0 %v6921_v44  ;;  %7916 = vst [vmem:[#allocation14_spill] sm:$0xff] %v7177_v57  ;;  %v4541_v24 = vmax.f32 %v4285_v32, 0.0  ;;  %v4540_v18 = vmax.f32 %v4284_v10, 0.0 }
 0x261   : > { %v4547_v39 = vmax.f32 %v4291_v30, 0.0  ;;  %v4294_v7 = vadd.f32 %v7030_v61, %v3846_v28  ;;  %3581 = vmatmul.mubr.bf16.gmra.mrb[244].mxu1 %v6921_v44  ;;  %3397 = vmatprep.mubr.bf16.mxu0 %v6933_v51  ;;  %v4542_v15 = vmax.f32 %v4286_v8, 0.0 }
 0x262   : > { %v4549_v6 = vmax.f32 %v4293_v55, 0.0  ;;  %v4548_v49 = vmax.f32 %v4292_v25, 0.0  ;;  %v2903_v47 = vpop.f32.mrb[140].mxu0  ;;  %3590 = vmatprep.mubr.bf16.mxu1 %v6933_v51 }
 0x263   : > { %v4780_v29 = vpack.c.bf16 %v4547_v39, %v4539_v52  ;;  %v4550_v21 = vmax.f32 %v4294_v7, 0.0  ;;  %v3851_v38 = vmul.f32 %v7028_v58, %v2903_v47  ;;  %v3096_v45 = vpop.f32.mrb[140].mxu1  ;;  %v2905_v46 = vpop.f32.mrb[141].mxu0 }
 0x264   : > { %v4782_v27 = vpack.c.bf16 %v4549_v6, %v4541_v24  ;;  %v3853_v32 = vmul.f32 %v7028_v58, %v3096_v45  ;;  %v3852_v10 = vmul.f32 %v7028_v58, %v2905_v46  ;;  %v3098_v30 = vpop.f32.mrb[141].mxu1  ;;  %v2907_v28 = vpop.f32.mrb[142].mxu0  ;;  %v4781_v44 = vpack.c.bf16 %v4548_v49, %v4540_v18  ;;  %v5327_v18 = vld.sshfl [vmem:[%s7745_s7] sm:$0x33 pattern:$0x76325410] }
 0x265   : > { %v4299_v55 = vadd.f32 %v7038_v17, %v3851_v38  ;;  %v3854_v8 = vmul.f32 %v7028_v58, %v3098_v30  ;;  %v3859_v25 = vmul.f32 %v7040_v35, %v2907_v28  ;;  %v3100_v52 = vpop.f32.mrb[142].mxu1  ;;  %v2909_v39 = vpop.f32.mrb[143].mxu0  ;;  %v4783_v7 = vpack.c.bf16 %v4550_v21, %v4542_v15 }
 0x266   : > { %v4301_v47 = vadd.f32 %v7038_v17, %v3853_v32  ;;  %v4300_v51 = vadd.f32 %v7038_v17, %v3852_v10  ;;  %v3861_v24 = vmul.f32 %v7040_v35, %v3100_v52  ;;  %v3860_v6 = vmul.f32 %v7040_v35, %v2909_v39  ;;  %v3102_v45 = vpop.f32.mrb[143].mxu1  ;;  %4913 = vmatprep.subr.bf16.mxu0 %v4781_v44  ;;  %v7200_v32 = vpop.permute.xlu0 %3745 }
 0x267   : > { %v4302_v49 = vadd.f32 %v7038_v17, %v3854_v8  ;;  %v4307_v38 = vadd.f32 %v7047_v33, %v3859_v25  ;;  %v3862_v15 = vmul.f32 %v7040_v35, %v3102_v45  ;;  %4954 = vmatprep.subr.bf16.mxu1 %v4783_v7  ;;  %4914 = vmatpush1.bf16.msra.mxu0 %v4780_v29  ;;  %v4555_v10 = vmax.f32 %v4299_v55, 0.0  ;;  %v7206_v8 = vpop.permute.xlu1 %4188 }
 0x268   : > { %v4309_v21 = vadd.f32 %v7047_v33, %v3861_v24  ;;  %v4308_v46 = vadd.f32 %v7047_v33, %v3860_v6  ;;  %4955 = vmatpush1.bf16.msra.mxu1 %v4782_v27  ;;  %3398 = vmatmul.mubr.bf16.gmra.mrb[248].mxu0 %v6951_v54  ;;  %v7204_v44 = vcombine.high %v5327_v18, %v5327_v18  ;;  %v4557_v25 = vmax.f32 %v4301_v47, 0.0 }
 0x269   : > { %v4563_v30 = vmax.f32 %v4307_v38, 0.0  ;;  %v4310_v28 = vadd.f32 %v7047_v33, %v3862_v15  ;;  %7917 = vst [vmem:[#allocation17_spill] sm:$0xff] %v7206_v8  ;;  %v4556_v52 = vmax.f32 %v4300_v51, 0.0  ;;  %3591 = vmatmul.mubr.bf16.gmra.mrb[248].mxu1 %v6951_v54  ;;  %3407 = vmatprep.mubr.bf16.mxu0 %v6965_v43  ;;  %v4558_v27 = vmax.f32 %v4302_v49, 0.0 }
 0x26a   : > { %v4565_v29 = vmax.f32 %v4309_v21, 0.0  ;;  %v4564_v39 = vmax.f32 %v4308_v46, 0.0  ;;  %v2913_v7 = vpop.f32.mrb[144].mxu0  ;;  %3600 = vmatprep.mubr.bf16.mxu1 %v6965_v43 }
 0x26b   : > { %v4788_v55 = vpack.c.bf16 %v4563_v30, %v4555_v10  ;;  %v4566_v24 = vmax.f32 %v4310_v28, 0.0  ;;  %v3867_v6 = vmul.f32 %v7042_v60, %v2913_v7  ;;  %v3106_v45 = vpop.f32.mrb[144].mxu1  ;;  %v2915_v38 = vpop.f32.mrb[145].mxu0 }
 0x26c   : > { %v4790_v18 = vpack.c.bf16 %v4565_v29, %v4557_v25  ;;  %v3869_v47 = vmul.f32 %v7042_v60, %v3106_v45  ;;  %v3868_v51 = vmul.f32 %v7042_v60, %v2915_v38  ;;  %v3108_v15 = vpop.f32.mrb[145].mxu1  ;;  %v2917_v21 = vpop.f32.mrb[146].mxu0  ;;  %v4789_v54 = vpack.c.bf16 %v4564_v39, %v4556_v52 }
 0x26d   : > { %v4315_v46 = vadd.f32 %v7052_v34, %v3867_v6  ;;  %v3870_v49 = vmul.f32 %v7042_v60, %v3108_v15  ;;  %v3875_v10 = vmul.f32 %v7054_v4, %v2917_v21  ;;  %v3110_v30 = vpop.f32.mrb[146].mxu1  ;;  %v2919_v28 = vpop.f32.mrb[147].mxu0  ;;  %v4791_v7 = vpack.c.bf16 %v4566_v24, %v4558_v27 }
 0x26e   : > { %v4317_v33 = vadd.f32 %v7052_v34, %v3869_v47  ;;  %v4316_v43 = vadd.f32 %v7052_v34, %v3868_v51  ;;  %v3877_v25 = vmul.f32 %v7054_v4, %v3110_v30  ;;  %v3876_v29 = vmul.f32 %v7054_v4, %v2919_v28  ;;  %v3112_v45 = vpop.f32.mrb[147].mxu1  ;;  %4915 = vmatprep.subr.bf16.mxu0 %v4789_v54 }
 0x26f   : > { %v4318_v52 = vadd.f32 %v7052_v34, %v3870_v49  ;;  %v4323_v39 = vadd.f32 %v7064_v19, %v3875_v10  ;;  %v3878_v6 = vmul.f32 %v7054_v4, %v3112_v45  ;;  %4956 = vmatprep.subr.bf16.mxu1 %v4791_v7  ;;  %4916 = vmatpush1.bf16.msra.mxu0 %v4788_v55  ;;  %v4571_v38 = vmax.f32 %v4315_v46, 0.0  ;;  %v7230_v55 = vpop.permute.xlu0 %4193  ;;  %v7232_v10 = vpop.permute.xlu1 %3750 }
 0x270   : > { %v4325_v27 = vadd.f32 %v7064_v19, %v3877_v25  ;;  %v4324_v24 = vadd.f32 %v7064_v19, %v3876_v29  ;;  %4957 = vmatpush1.bf16.msra.mxu1 %v4790_v18  ;;  %3408 = vmatmul.mubr.bf16.gmra.mrb[252].mxu0 %v6983_v22  ;;  %v4573_v15 = vmax.f32 %v4317_v33, 0.0  ;;  %v4572_v21 = vmax.f32 %v4316_v43, 0.0  ;;  %7918 = vst [vmem:[#allocation16_spill] sm:$0xff] %v7232_v10 }
 0x271   : > { %v4579_v47 = vmax.f32 %v4323_v39, 0.0  ;;  %v4326_v51 = vadd.f32 %v7064_v19, %v3878_v6  ;;  %3601 = vmatmul.mubr.bf16.gmra.mrb[252].mxu1 %v6983_v22  ;;  %4941 = vmatprep.mubr.bf16.mxu0 %v7204_v44  ;;  %v4574_v30 = vmax.f32 %v4318_v52, 0.0 }
 0x272   : > { %v4581_v54 = vmax.f32 %v4325_v27, 0.0  ;;  %v4580_v49 = vmax.f32 %v4324_v24, 0.0  ;;  %4982 = vmatprep.mubr.bf16.mxu1 %v7204_v44  ;;  %v2923_v7 = vpop.f32.mrb[148].mxu0 }
 0x273   : > { %v4796_v18 = vpack.c.bf16 %v4579_v47, %v4571_v38  ;;  %v4582_v46 = vmax.f32 %v4326_v51, 0.0  ;;  %v3116_v25 = vpop.f32.mrb[148].mxu1  ;;  %v3883_v43 = vmul.f32 %v7062_v11, %v2923_v7  ;;  %v2925_v22 = vpop.f32.mrb[149].mxu0 }
 0x274   : > { %v4798_v28 = vpack.c.bf16 %v4581_v54, %v4573_v15  ;;  %v4797_v33 = vpack.c.bf16 %v4580_v49, %v4572_v21  ;;  %v3885_v29 = vmul.f32 %v7062_v11, %v3116_v25  ;;  %v3118_v45 = vpop.f32.mrb[149].mxu1  ;;  %v3884_v6 = vmul.f32 %v7062_v11, %v2925_v22  ;;  %v2927_v52 = vpop.f32.mrb[150].mxu0 }
 0x275   : > { %v4799_v39 = vpack.c.bf16 %v4582_v46, %v4574_v30  ;;  %v3886_v27 = vmul.f32 %v7062_v11, %v3118_v45  ;;  %v3120_v24 = vpop.f32.mrb[150].mxu1  ;;  %v4331_v38 = vadd.f32 %v7069_v59, %v3883_v43  ;;  %v3891_v51 = vmul.f32 %v7072_v26, %v2927_v52  ;;  %v2929_v21 = vpop.f32.mrb[151].mxu0 }
 0x276   : > { %4917 = vmatprep.subr.bf16.mxu0 %v4797_v33  ;;  %v4333_v47 = vadd.f32 %v7069_v59, %v3885_v29  ;;  %v3893_v15 = vmul.f32 %v7072_v26, %v3120_v24  ;;  %v3122_v54 = vpop.f32.mrb[151].mxu1  ;;  %v4332_v49 = vadd.f32 %v7069_v59, %v3884_v6  ;;  %v3892_v46 = vmul.f32 %v7072_v26, %v2929_v21  ;;  %v7251_v22 = vpop.permute.xlu0 %3755 }
 0x277   : > { %4958 = vmatprep.subr.bf16.mxu1 %v4799_v39  ;;  %v4334_v30 = vadd.f32 %v7069_v59, %v3886_v27  ;;  %v3894_v7 = vmul.f32 %v7072_v26, %v3122_v54  ;;  %4918 = vmatpush1.bf16.msra.mxu0 %v4796_v18  ;;  %v4339_v25 = vadd.f32 %v7077_v56, %v3891_v51  ;;  %v4587_v45 = vmax.f32 %v4331_v38, 0.0  ;;  %v7253_v52 = vpop.permute.xlu1 %4198 }
 0x278   : > { %v4341_v33 = vadd.f32 %v7077_v56, %v3893_v15  ;;  %4959 = vmatpush1.bf16.msra.mxu1 %v4798_v28  ;;  %v4340_v43 = vadd.f32 %v7077_v56, %v3892_v46  ;;  %v4589_v39 = vmax.f32 %v4333_v47, 0.0  ;;  %7919 = vst [vmem:[#allocation19_spill] sm:$0xff] %v7253_v52  ;;  %v4588_v24 = vmax.f32 %v4332_v49, 0.0 }
 0x279   : > { %v4342_v29 = vadd.f32 %v7077_v56, %v3894_v7  ;;  %v4595_v6 = vmax.f32 %v4339_v25, 0.0  ;;  %v4590_v21 = vmax.f32 %v4334_v30, 0.0 }
 0x27a   : > { %v4597_v27 = vmax.f32 %v4341_v33, 0.0  ;;  %v4596_v18 = vmax.f32 %v4340_v43, 0.0  ;;  %v2933_v51 = vpop.f32.mrb[152].mxu0 }
 0x27b   : > { %v4598_v54 = vmax.f32 %v4342_v29, 0.0  ;;  %v4804_v26 = vpack.c.bf16 %v4595_v6, %v4587_v45  ;;  %v3899_v28 = vmul.f32 %v7074_v5, %v2933_v51  ;;  %v3126_v46 = vpop.f32.mrb[152].mxu1  ;;  %v2935_v59 = vpop.f32.mrb[153].mxu0 }
 0x27c   : > { %v4806_v15 = vpack.c.bf16 %v4597_v27, %v4589_v39  ;;  %v3901_v7 = vmul.f32 %v7074_v5, %v3126_v46  ;;  %v3900_v38 = vmul.f32 %v7074_v5, %v2935_v59  ;;  %v3128_v47 = vpop.f32.mrb[153].mxu1  ;;  %v2937_v25 = vpop.f32.mrb[154].mxu0  ;;  %v4805_v33 = vpack.c.bf16 %v4596_v18, %v4588_v24 }
 0x27d   : > { %v4807_v56 = vpack.c.bf16 %v4598_v54, %v4590_v21  ;;  %v4347_v49 = vadd.f32 %v7082_v16, %v3899_v28  ;;  %v3902_v30 = vmul.f32 %v7074_v5, %v3128_v47  ;;  %v3907_v43 = vmul.f32 %v7084_v3, %v2937_v25  ;;  %v3130_v29 = vpop.f32.mrb[154].mxu1  ;;  %v2939_v45 = vpop.f32.mrb[155].mxu0 }
 0x27e   : > { %v4349_v39 = vadd.f32 %v7082_v16, %v3901_v7  ;;  %v4348_v6 = vadd.f32 %v7082_v16, %v3900_v38  ;;  %v3909_v27 = vmul.f32 %v7084_v3, %v3130_v29  ;;  %v3908_v59 = vmul.f32 %v7084_v3, %v2939_v45  ;;  %v3132_v51 = vpop.f32.mrb[155].mxu1  ;;  %4919 = vmatprep.subr.bf16.mxu0 %v4805_v33  ;;  %v7270_v46 = vpop.permute.xlu0 %4203 }
 0x27f   : > { %v4350_v24 = vadd.f32 %v7082_v16, %v3902_v30  ;;  %v4355_v21 = vadd.f32 %v7092_v53, %v3907_v43  ;;  %v3910_v18 = vmul.f32 %v7084_v3, %v3132_v51  ;;  %4960 = vmatprep.subr.bf16.mxu1 %v4807_v56  ;;  %4920 = vmatpush1.bf16.msra.mxu0 %v4804_v26  ;;  %v4603_v7 = vmax.f32 %v4347_v49, 0.0  ;;  %v7273_v25 = vpop.permute.xlu1 %3760 }
 0x280   : > { %v4357_v54 = vadd.f32 %v7092_v53, %v3909_v27  ;;  %v4356_v28 = vadd.f32 %v7092_v53, %v3908_v59  ;;  %4961 = vmatpush1.bf16.msra.mxu1 %v4806_v15  ;;  %7920 = vst [vmem:[#allocation18_spill] sm:$0xff] %v7273_v25  ;;  %v4605_v33 = vmax.f32 %v4349_v39, 0.0  ;;  %v4604_v30 = vmax.f32 %v4348_v6, 0.0 }
 0x281   : > { %v4611_v38 = vmax.f32 %v4355_v21, 0.0  ;;  %v4358_v47 = vadd.f32 %v7092_v53, %v3910_v18  ;;  %v4606_v56 = vmax.f32 %v4350_v24, 0.0 }
 0x282   : > { %v4613_v43 = vmax.f32 %v4357_v54, 0.0  ;;  %v4612_v29 = vmax.f32 %v4356_v28, 0.0  ;;  %v2943_v45 = vpop.f32.mrb[156].mxu0 }
 0x283   : > { %v4812_v26 = vpack.c.bf16 %v4611_v38, %v4603_v7  ;;  %v4614_v51 = vmax.f32 %v4358_v47, 0.0  ;;  %v3915_v27 = vmul.f32 %v7090_v0, %v2943_v45  ;;  %v3136_v59 = vpop.f32.mrb[156].mxu1  ;;  %v2945_v15 = vpop.f32.mrb[157].mxu0 }
 0x284   : > { %v4814_v3 = vpack.c.bf16 %v4613_v43, %v4605_v33  ;;  %v3917_v49 = vmul.f32 %v7090_v0, %v3136_v59  ;;  %v3916_v21 = vmul.f32 %v7090_v0, %v2945_v15  ;;  %v3138_v18 = vpop.f32.mrb[157].mxu1  ;;  %v2947_v53 = vpop.f32.mrb[158].mxu0  ;;  %v4813_v16 = vpack.c.bf16 %v4612_v29, %v4604_v30 }
 0x285   : > { %v4363_v39 = vadd.f32 %v7097_v12, %v3915_v27  ;;  %v3918_v6 = vmul.f32 %v7090_v0, %v3138_v18  ;;  %v3923_v24 = vmul.f32 %v7100_v14, %v2947_v53  ;;  %v3140_v54 = vpop.f32.mrb[158].mxu1  ;;  %v2949_v28 = vpop.f32.mrb[159].mxu0  ;;  %v4815_v7 = vpack.c.bf16 %v4614_v51, %v4606_v56 }
 0x286   : > { %v4365_v38 = vadd.f32 %v7097_v12, %v3917_v49  ;;  %v4364_v47 = vadd.f32 %v7097_v12, %v3916_v21  ;;  %v3925_v33 = vmul.f32 %v7100_v14, %v3140_v54  ;;  %v3924_v43 = vmul.f32 %v7100_v14, %v2949_v28  ;;  %v3142_v45 = vpop.f32.mrb[159].mxu1  ;;  %4921 = vmatprep.subr.bf16.mxu0 %v4813_v16  ;;  %v7290_v51 = vpop.permute.xlu0 %3765 }
 0x287   : > { %v4366_v30 = vadd.f32 %v7097_v12, %v3918_v6  ;;  %v4371_v29 = vadd.f32 %v7105_v42, %v3923_v24  ;;  %v3926_v27 = vmul.f32 %v7100_v14, %v3142_v45  ;;  %4962 = vmatprep.subr.bf16.mxu1 %v4815_v7  ;;  %4922 = vmatpush1.bf16.msra.mxu0 %v4812_v26  ;;  %v4619_v59 = vmax.f32 %v4363_v39, 0.0  ;;  %v7293_v16 = vpop.permute.xlu1 %4208 }
 0x288   : > { %v4373_v53 = vadd.f32 %v7105_v42, %v3925_v33  ;;  %v4372_v56 = vadd.f32 %v7105_v42, %v3924_v43  ;;  %4963 = vmatpush1.bf16.msra.mxu1 %v4814_v3  ;;  %7921 = vst [vmem:[#allocation20_spill] sm:$0xff] %v7293_v16  ;;  %v4621_v21 = vmax.f32 %v4365_v38, 0.0  ;;  %v4620_v18 = vmax.f32 %v4364_v47, 0.0 }
 0x289   : > { %v4627_v15 = vmax.f32 %v4371_v29, 0.0  ;;  %v4374_v49 = vadd.f32 %v7105_v42, %v3926_v27  ;;  %v4622_v28 = vmax.f32 %v4366_v30, 0.0 }
 0x28a   : > { %v4629_v6 = vmax.f32 %v4373_v53, 0.0  ;;  %v4628_v24 = vmax.f32 %v4372_v56, 0.0  ;;  %v2953_v54 = vpop.f32.mrb[160].mxu0 }
 0x28b   : > { %v4820_v26 = vpack.c.bf16 %v4627_v15, %v4619_v59  ;;  %v4630_v7 = vmax.f32 %v4374_v49, 0.0  ;;  %v3931_v33 = vmul.f32 %v7102_v48, %v2953_v54  ;;  %v3146_v43 = vpop.f32.mrb[160].mxu1  ;;  %v2955_v3 = vpop.f32.mrb[161].mxu0 }
 0x28c   : > { %v4822_v45 = vpack.c.bf16 %v4629_v6, %v4621_v21  ;;  %v3933_v39 = vmul.f32 %v7102_v48, %v3146_v43  ;;  %v3932_v29 = vmul.f32 %v7102_v48, %v2955_v3  ;;  %v3148_v27 = vpop.f32.mrb[161].mxu1  ;;  %v2957_v42 = vpop.f32.mrb[162].mxu0  ;;  %v4821_v14 = vpack.c.bf16 %v4628_v24, %v4620_v18 }
 0x28d   : > { %v4379_v38 = vadd.f32 %v7125_v50, %v3931_v33  ;;  %v3934_v47 = vmul.f32 %v7102_v48, %v3148_v27  ;;  %v3939_v30 = vmul.f32 %v7129_v2, %v2957_v42  ;;  %v3150_v53 = vpop.f32.mrb[162].mxu1  ;;  %v2959_v56 = vpop.f32.mrb[163].mxu0  ;;  %v4823_v59 = vpack.c.bf16 %v4630_v7, %v4622_v28 }
 0x28e   : > { %v4381_v15 = vadd.f32 %v7125_v50, %v3933_v39  ;;  %v4380_v49 = vadd.f32 %v7125_v50, %v3932_v29  ;;  %v3941_v21 = vmul.f32 %v7129_v2, %v3150_v53  ;;  %v3940_v6 = vmul.f32 %v7129_v2, %v2959_v56  ;;  %v3152_v54 = vpop.f32.mrb[163].mxu1  ;;  %4923 = vmatprep.subr.bf16.mxu0 %v4821_v14  ;;  %v7310_v7 = vpop.permute.xlu0 %4213 }
 0x28f   : > { %v4382_v18 = vadd.f32 %v7125_v50, %v3934_v47  ;;  %v4387_v24 = vadd.f32 %v7153_v62, %v3939_v30  ;;  %v3942_v33 = vmul.f32 %v7129_v2, %v3152_v54  ;;  %4964 = vmatprep.subr.bf16.mxu1 %v4823_v59  ;;  %4924 = vmatpush1.bf16.msra.mxu0 %v4820_v26  ;;  %v4635_v43 = vmax.f32 %v4379_v38, 0.0  ;;  %v7313_v14 = vpop.permute.xlu1 %3770 }
 0x290   : > { %v4389_v42 = vadd.f32 %v7153_v62, %v3941_v21  ;;  %v4388_v28 = vadd.f32 %v7153_v62, %v3940_v6  ;;  %4965 = vmatpush1.bf16.msra.mxu1 %v4822_v45  ;;  %7922 = vst [vmem:[#allocation21_spill] sm:$0xff] %v7313_v14  ;;  %v4637_v29 = vmax.f32 %v4381_v15, 0.0  ;;  %v4636_v27 = vmax.f32 %v4380_v49, 0.0 }
 0x291   : > { %v4643_v3 = vmax.f32 %v4387_v24, 0.0  ;;  %v4390_v39 = vadd.f32 %v7153_v62, %v3942_v33  ;;  %v4638_v56 = vmax.f32 %v4382_v18, 0.0 }
 0x292   : > { %v4645_v47 = vmax.f32 %v4389_v42, 0.0  ;;  %v4644_v30 = vmax.f32 %v4388_v28, 0.0  ;;  %v2963_v53 = vpop.f32.mrb[164].mxu0 }
 0x293   : > { %v4828_v26 = vpack.c.bf16 %v4643_v3, %v4635_v43  ;;  %v4646_v59 = vmax.f32 %v4390_v39, 0.0  ;;  %v3947_v21 = vmul.f32 %v7149_v23, %v2963_v53  ;;  %v3156_v6 = vpop.f32.mrb[164].mxu1  ;;  %v2965_v45 = vpop.f32.mrb[165].mxu0 }
 0x294   : > { %v4830_v54 = vpack.c.bf16 %v4645_v47, %v4637_v29  ;;  %v3949_v38 = vmul.f32 %v7149_v23, %v3156_v6  ;;  %v3948_v24 = vmul.f32 %v7149_v23, %v2965_v45  ;;  %v3158_v33 = vpop.f32.mrb[165].mxu1  ;;  %v2967_v62 = vpop.f32.mrb[166].mxu0  ;;  %v4829_v2 = vpack.c.bf16 %v4644_v30, %v4636_v27 }
 0x295   : > { %v4395_v15 = vadd.f32 %v7173_v9, %v3947_v21  ;;  %v3950_v49 = vmul.f32 %v7149_v23, %v3158_v33  ;;  %v3955_v18 = vmul.f32 %v7177_v57, %v2967_v62  ;;  %v3160_v42 = vpop.f32.mrb[166].mxu1  ;;  %v2969_v28 = vpop.f32.mrb[167].mxu0  ;;  %v4831_v43 = vpack.c.bf16 %v4646_v59, %v4638_v56 }
 0x296   : > { %v4397_v3 = vadd.f32 %v7173_v9, %v3949_v38  ;;  %v4396_v39 = vadd.f32 %v7173_v9, %v3948_v24  ;;  %v3957_v29 = vmul.f32 %v7177_v57, %v3160_v42  ;;  %v3956_v47 = vmul.f32 %v7177_v57, %v2969_v28  ;;  %v3162_v53 = vpop.f32.mrb[167].mxu1  ;;  %4925 = vmatprep.subr.bf16.mxu0 %v4829_v2  ;;  %v7330_v59 = vpop.permute.xlu0 %3775 }
 0x297   : > { %v4398_v27 = vadd.f32 %v7173_v9, %v3950_v49  ;;  %v4403_v30 = vadd.f32 %v7206_v8, %v3955_v18  ;;  %v3958_v21 = vmul.f32 %v7177_v57, %v3162_v53  ;;  %4966 = vmatprep.subr.bf16.mxu1 %v4831_v43  ;;  %4926 = vmatpush1.bf16.msra.mxu0 %v4828_v26  ;;  %v4651_v6 = vmax.f32 %v4395_v15, 0.0  ;;  %v7333_v2 = vpop.permute.xlu1 %4218 }
 0x298   : > { %v4405_v62 = vadd.f32 %v7206_v8, %v3957_v29  ;;  %v4404_v56 = vadd.f32 %v7206_v8, %v3956_v47  ;;  %4967 = vmatpush1.bf16.msra.mxu1 %v4830_v54  ;;  %7923 = vst [vmem:[#allocation22_spill] sm:$0xff] %v7333_v2  ;;  %v4653_v24 = vmax.f32 %v4397_v3, 0.0  ;;  %v4652_v33 = vmax.f32 %v4396_v39, 0.0 }
 0x299   : > { %v4659_v45 = vmax.f32 %v4403_v30, 0.0  ;;  %v4406_v38 = vadd.f32 %v7206_v8, %v3958_v21  ;;  %v4654_v28 = vmax.f32 %v4398_v27, 0.0 }
 0x29a   : > { %v4661_v49 = vmax.f32 %v4405_v62, 0.0  ;;  %v4660_v18 = vmax.f32 %v4404_v56, 0.0  ;;  %v2973_v42 = vpop.f32.mrb[168].mxu0 }
 0x29b   : > { %v4836_v26 = vpack.c.bf16 %v4659_v45, %v4651_v6  ;;  %v4662_v43 = vmax.f32 %v4406_v38, 0.0  ;;  %v3963_v29 = vmul.f32 %v7200_v32, %v2973_v42  ;;  %v3166_v47 = vpop.f32.mrb[168].mxu1  ;;  %v2975_v54 = vpop.f32.mrb[169].mxu0 }
 0x29c   : > { %v4838_v53 = vpack.c.bf16 %v4661_v49, %v4653_v24  ;;  %v3965_v15 = vmul.f32 %v7200_v32, %v3166_v47  ;;  %v3964_v30 = vmul.f32 %v7200_v32, %v2975_v54  ;;  %v3168_v21 = vpop.f32.mrb[169].mxu1  ;;  %v2977_v8 = vpop.f32.mrb[170].mxu0  ;;  %v4837_v57 = vpack.c.bf16 %v4660_v18, %v4652_v33 }
 0x29d   : > { %v4411_v3 = vadd.f32 %v7230_v55, %v3963_v29  ;;  %v3966_v39 = vmul.f32 %v7200_v32, %v3168_v21  ;;  %v3971_v27 = vmul.f32 %v7232_v10, %v2977_v8  ;;  %v3170_v62 = vpop.f32.mrb[170].mxu1  ;;  %v2979_v56 = vpop.f32.mrb[171].mxu0  ;;  %v4839_v6 = vpack.c.bf16 %v4662_v43, %v4654_v28 }
 0x29e   : > { %v4413_v45 = vadd.f32 %v7230_v55, %v3965_v15  ;;  %v4412_v38 = vadd.f32 %v7230_v55, %v3964_v30  ;;  %v3973_v24 = vmul.f32 %v7232_v10, %v3170_v62  ;;  %v3972_v49 = vmul.f32 %v7232_v10, %v2979_v56  ;;  %v3172_v42 = vpop.f32.mrb[171].mxu1  ;;  %4927 = vmatprep.subr.bf16.mxu0 %v4837_v57  ;;  %v7350_v43 = vpop.permute.xlu0 %4223 }
 0x29f   : > { %v4414_v33 = vadd.f32 %v7230_v55, %v3966_v39  ;;  %v4419_v18 = vadd.f32 %v7253_v52, %v3971_v27  ;;  %v3974_v29 = vmul.f32 %v7232_v10, %v3172_v42  ;;  %4968 = vmatprep.subr.bf16.mxu1 %v4839_v6  ;;  %4928 = vmatpush1.bf16.msra.mxu0 %v4836_v26  ;;  %v4667_v47 = vmax.f32 %v4411_v3, 0.0  ;;  %v7353_v57 = vpop.permute.xlu1 %3780 }
 0x2a0   : > { %v4421_v8 = vadd.f32 %v7253_v52, %v3973_v24  ;;  %v4420_v28 = vadd.f32 %v7253_v52, %v3972_v49  ;;  %4969 = vmatpush1.bf16.msra.mxu1 %v4838_v53  ;;  %7924 = vst [vmem:[#allocation23_spill] sm:$0xff] %v7353_v57  ;;  %v4669_v30 = vmax.f32 %v4413_v45, 0.0  ;;  %v4668_v21 = vmax.f32 %v4412_v38, 0.0 }
 0x2a1   : > { %v4675_v54 = vmax.f32 %v4419_v18, 0.0  ;;  %v4422_v15 = vadd.f32 %v7253_v52, %v3974_v29  ;;  %v4670_v56 = vmax.f32 %v4414_v33, 0.0 }
 0x2a2   : > { %v4677_v39 = vmax.f32 %v4421_v8, 0.0  ;;  %v4676_v27 = vmax.f32 %v4420_v28, 0.0  ;;  %v2983_v62 = vpop.f32.mrb[172].mxu0 }
 0x2a3   : > { %v4844_v26 = vpack.c.bf16 %v4675_v54, %v4667_v47  ;;  %v4678_v6 = vmax.f32 %v4422_v15, 0.0  ;;  %v3979_v24 = vmul.f32 %v7251_v22, %v2983_v62  ;;  %v3176_v49 = vpop.f32.mrb[172].mxu1  ;;  %v2985_v53 = vpop.f32.mrb[173].mxu0 }
 0x2a4   : > { %v4846_v42 = vpack.c.bf16 %v4677_v39, %v4669_v30  ;;  %v3981_v3 = vmul.f32 %v7251_v22, %v3176_v49  ;;  %v3980_v18 = vmul.f32 %v7251_v22, %v2985_v53  ;;  %v3178_v29 = vpop.f32.mrb[173].mxu1  ;;  %v2987_v52 = vpop.f32.mrb[174].mxu0  ;;  %v4845_v10 = vpack.c.bf16 %v4676_v27, %v4668_v21 }
 0x2a5   : > { %v4427_v45 = vadd.f32 %v7270_v46, %v3979_v24  ;;  %v3982_v38 = vmul.f32 %v7251_v22, %v3178_v29  ;;  %v3987_v33 = vmul.f32 %v7273_v25, %v2987_v52  ;;  %v3180_v8 = vpop.f32.mrb[174].mxu1  ;;  %v2989_v28 = vpop.f32.mrb[175].mxu0  ;;  %v4847_v47 = vpack.c.bf16 %v4678_v6, %v4670_v56 }
 0x2a6   : > { %v4429_v54 = vadd.f32 %v7270_v46, %v3981_v3  ;;  %v4428_v15 = vadd.f32 %v7270_v46, %v3980_v18  ;;  %v3989_v30 = vmul.f32 %v7273_v25, %v3180_v8  ;;  %v3988_v39 = vmul.f32 %v7273_v25, %v2989_v28  ;;  %v3182_v62 = vpop.f32.mrb[175].mxu1  ;;  %4929 = vmatprep.subr.bf16.mxu0 %v4845_v10  ;;  %v7370_v6 = vpop.permute.xlu0 %3785 }
 0x2a7   : > { %v4430_v21 = vadd.f32 %v7270_v46, %v3982_v38  ;;  %v4435_v27 = vadd.f32 %v7293_v16, %v3987_v33  ;;  %v3990_v24 = vmul.f32 %v7273_v25, %v3182_v62  ;;  %4970 = vmatprep.subr.bf16.mxu1 %v4847_v47  ;;  %4930 = vmatpush1.bf16.msra.mxu0 %v4844_v26  ;;  %v4683_v49 = vmax.f32 %v4427_v45, 0.0  ;;  %v7373_v10 = vpop.permute.xlu1 %4228 }
 0x2a8   : > { %v4437_v52 = vadd.f32 %v7293_v16, %v3989_v30  ;;  %v4436_v56 = vadd.f32 %v7293_v16, %v3988_v39  ;;  %4971 = vmatpush1.bf16.msra.mxu1 %v4846_v42  ;;  %7925 = vst [vmem:[#allocation24_spill] sm:$0xff] %v7373_v10  ;;  %v4685_v18 = vmax.f32 %v4429_v54, 0.0  ;;  %v4684_v29 = vmax.f32 %v4428_v15, 0.0 }
 0x2a9   : > { %v4691_v53 = vmax.f32 %v4435_v27, 0.0  ;;  %v4438_v3 = vadd.f32 %v7293_v16, %v3990_v24  ;;  %v4686_v28 = vmax.f32 %v4430_v21, 0.0 }
 0x2aa   : > { %v4693_v38 = vmax.f32 %v4437_v52, 0.0  ;;  %v4692_v33 = vmax.f32 %v4436_v56, 0.0  ;;  %v2993_v8 = vpop.f32.mrb[176].mxu0 }
 0x2ab   : > { %v4852_v26 = vpack.c.bf16 %v4691_v53, %v4683_v49  ;;  %v4694_v47 = vmax.f32 %v4438_v3, 0.0  ;;  %v3995_v30 = vmul.f32 %v7290_v51, %v2993_v8  ;;  %v3186_v39 = vpop.f32.mrb[176].mxu1  ;;  %v2995_v42 = vpop.f32.mrb[177].mxu0 }
 0x2ac   : > { %v4854_v62 = vpack.c.bf16 %v4693_v38, %v4685_v18  ;;  %v3997_v45 = vmul.f32 %v7290_v51, %v3186_v39  ;;  %v3996_v27 = vmul.f32 %v7290_v51, %v2995_v42  ;;  %v3188_v24 = vpop.f32.mrb[177].mxu1  ;;  %v2997_v16 = vpop.f32.mrb[178].mxu0  ;;  %v4853_v25 = vpack.c.bf16 %v4692_v33, %v4684_v29 }
 0x2ad   : > { %v4443_v54 = vadd.f32 %v7310_v7, %v3995_v30  ;;  %v3998_v15 = vmul.f32 %v7290_v51, %v3188_v24  ;;  %v4003_v21 = vmul.f32 %v7313_v14, %v2997_v16  ;;  %v3190_v52 = vpop.f32.mrb[178].mxu1  ;;  %v2999_v56 = vpop.f32.mrb[179].mxu0  ;;  %v4855_v49 = vpack.c.bf16 %v4694_v47, %v4686_v28 }
 0x2ae   : > { %v4445_v53 = vadd.f32 %v7310_v7, %v3997_v45  ;;  %v4444_v3 = vadd.f32 %v7310_v7, %v3996_v27  ;;  %v4005_v18 = vmul.f32 %v7313_v14, %v3190_v52  ;;  %v4004_v38 = vmul.f32 %v7313_v14, %v2999_v56  ;;  %v3192_v8 = vpop.f32.mrb[179].mxu1  ;;  %4931 = vmatprep.subr.bf16.mxu0 %v4853_v25  ;;  %v7390_v47 = vpop.permute.xlu0 %4233 }
 0x2af   : > { %v4446_v29 = vadd.f32 %v7310_v7, %v3998_v15  ;;  %v4451_v33 = vadd.f32 %v7333_v2, %v4003_v21  ;;  %v4006_v30 = vmul.f32 %v7313_v14, %v3192_v8  ;;  %4972 = vmatprep.subr.bf16.mxu1 %v4855_v49  ;;  %4932 = vmatpush1.bf16.msra.mxu0 %v4852_v26  ;;  %v4699_v39 = vmax.f32 %v4443_v54, 0.0  ;;  %v7393_v25 = vpop.permute.xlu1 %3790 }
 0x2b0   : > { %v4453_v16 = vadd.f32 %v7333_v2, %v4005_v18  ;;  %v4452_v28 = vadd.f32 %v7333_v2, %v4004_v38  ;;  %4973 = vmatpush1.bf16.msra.mxu1 %v4854_v62  ;;  %7926 = vst [vmem:[#allocation25_spill] sm:$0xff] %v7393_v25  ;;  %v4701_v27 = vmax.f32 %v4445_v53, 0.0  ;;  %v4700_v24 = vmax.f32 %v4444_v3, 0.0 }
 0x2b1   : > { %v4707_v42 = vmax.f32 %v4451_v33, 0.0  ;;  %v4454_v45 = vadd.f32 %v7333_v2, %v4006_v30  ;;  %v4702_v56 = vmax.f32 %v4446_v29, 0.0 }
 0x2b2   : > { %v4709_v15 = vmax.f32 %v4453_v16, 0.0  ;;  %v4708_v21 = vmax.f32 %v4452_v28, 0.0  ;;  %v3003_v52 = vpop.f32.mrb[180].mxu0 }
 0x2b3   : > { %v4860_v26 = vpack.c.bf16 %v4707_v42, %v4699_v39  ;;  %v4710_v49 = vmax.f32 %v4454_v45, 0.0  ;;  %v4011_v18 = vmul.f32 %v7330_v59, %v3003_v52  ;;  %v3196_v38 = vpop.f32.mrb[180].mxu1  ;;  %v3005_v62 = vpop.f32.mrb[181].mxu0 }
 0x2b4   : > { %v4862_v8 = vpack.c.bf16 %v4709_v15, %v4701_v27  ;;  %v4013_v54 = vmul.f32 %v7330_v59, %v3196_v38  ;;  %v4012_v33 = vmul.f32 %v7330_v59, %v3005_v62  ;;  %v3198_v30 = vpop.f32.mrb[181].mxu1  ;;  %v3007_v2 = vpop.f32.mrb[182].mxu0  ;;  %v4861_v14 = vpack.c.bf16 %v4708_v21, %v4700_v24 }
 0x2b5   : > { %v4459_v53 = vadd.f32 %v7350_v43, %v4011_v18  ;;  %v4014_v3 = vmul.f32 %v7330_v59, %v3198_v30  ;;  %v4019_v29 = vmul.f32 %v7353_v57, %v3007_v2  ;;  %v3200_v16 = vpop.f32.mrb[182].mxu1  ;;  %v3009_v28 = vpop.f32.mrb[183].mxu0  ;;  %v4863_v39 = vpack.c.bf16 %v4710_v49, %v4702_v56 }
 0x2b6   : > { %v4461_v42 = vadd.f32 %v7350_v43, %v4013_v54  ;;  %v4460_v45 = vadd.f32 %v7350_v43, %v4012_v33  ;;  %v4021_v27 = vmul.f32 %v7353_v57, %v3200_v16  ;;  %v4020_v15 = vmul.f32 %v7353_v57, %v3009_v28  ;;  %v3202_v52 = vpop.f32.mrb[183].mxu1  ;;  %4933 = vmatprep.subr.bf16.mxu0 %v4861_v14  ;;  %v7410_v49 = vpop.permute.xlu0 %3795 }
 0x2b7   : > { %v4462_v24 = vadd.f32 %v7350_v43, %v4014_v3  ;;  %v4467_v21 = vadd.f32 %v7373_v10, %v4019_v29  ;;  %v4022_v18 = vmul.f32 %v7353_v57, %v3202_v52  ;;  %4974 = vmatprep.subr.bf16.mxu1 %v4863_v39  ;;  %4934 = vmatpush1.bf16.msra.mxu0 %v4860_v26  ;;  %v4715_v38 = vmax.f32 %v4459_v53, 0.0  ;;  %v7413_v14 = vpop.permute.xlu1 %4238 }
 0x2b8   : > { %v4469_v2 = vadd.f32 %v7373_v10, %v4021_v27  ;;  %v4468_v56 = vadd.f32 %v7373_v10, %v4020_v15  ;;  %4975 = vmatpush1.bf16.msra.mxu1 %v4862_v8  ;;  %7927 = vst [vmem:[#allocation26_spill] sm:$0xff] %v7413_v14  ;;  %v4717_v33 = vmax.f32 %v4461_v42, 0.0  ;;  %v4716_v30 = vmax.f32 %v4460_v45, 0.0 }
 0x2b9   : > { %v4723_v62 = vmax.f32 %v4467_v21, 0.0  ;;  %v4470_v54 = vadd.f32 %v7373_v10, %v4022_v18  ;;  %v4718_v28 = vmax.f32 %v4462_v24, 0.0 }
 0x2ba   : > { %v4725_v3 = vmax.f32 %v4469_v2, 0.0  ;;  %v4724_v29 = vmax.f32 %v4468_v56, 0.0  ;;  %v3013_v16 = vpop.f32.mrb[184].mxu0 }
 0x2bb   : > { %v4868_v26 = vpack.c.bf16 %v4723_v62, %v4715_v38  ;;  %v4726_v39 = vmax.f32 %v4470_v54, 0.0  ;;  %v4027_v27 = vmul.f32 %v7370_v6, %v3013_v16  ;;  %v3206_v15 = vpop.f32.mrb[184].mxu1  ;;  %v3015_v8 = vpop.f32.mrb[185].mxu0 }
 0x2bc   : > { %v4870_v52 = vpack.c.bf16 %v4725_v3, %v4717_v33  ;;  %v4029_v53 = vmul.f32 %v7370_v6, %v3206_v15  ;;  %v4028_v21 = vmul.f32 %v7370_v6, %v3015_v8  ;;  %v3208_v18 = vpop.f32.mrb[185].mxu1  ;;  %v3017_v10 = vpop.f32.mrb[186].mxu0  ;;  %v4869_v57 = vpack.c.bf16 %v4724_v29, %v4716_v30 }
 0x2bd   : > { %v4475_v42 = vadd.f32 %v7390_v47, %v4027_v27  ;;  %v4030_v45 = vmul.f32 %v7370_v6, %v3208_v18  ;;  %v4035_v24 = vmul.f32 %v7393_v25, %v3017_v10  ;;  %v3210_v2 = vpop.f32.mrb[186].mxu1  ;;  %v3019_v56 = vpop.f32.mrb[187].mxu0  ;;  %v4871_v38 = vpack.c.bf16 %v4726_v39, %v4718_v28 }
 0x2be   : > { %v4477_v62 = vadd.f32 %v7390_v47, %v4029_v53  ;;  %v4476_v54 = vadd.f32 %v7390_v47, %v4028_v21  ;;  %v4037_v33 = vmul.f32 %v7393_v25, %v3210_v2  ;;  %v4036_v3 = vmul.f32 %v7393_v25, %v3019_v56  ;;  %v3212_v16 = vpop.f32.mrb[187].mxu1  ;;  %4935 = vmatprep.subr.bf16.mxu0 %v4869_v57  ;;  %v7428_v10 = vpop.permute.xlu1 %3800 }
 0x2bf   : > { %v4478_v30 = vadd.f32 %v7390_v47, %v4030_v45  ;;  %v4483_v29 = vadd.f32 %v7413_v14, %v4035_v24  ;;  %v4038_v27 = vmul.f32 %v7393_v25, %v3212_v16  ;;  %4976 = vmatprep.subr.bf16.mxu1 %v4871_v38  ;;  %4936 = vmatpush1.bf16.msra.mxu0 %v4868_v26  ;;  %v4731_v15 = vmax.f32 %v4475_v42, 0.0  ;;  %v7433_v57 = vpop.permute.xlu0 %4243 }
 0x2c0   : > { %v4485_v28 = vadd.f32 %v7413_v14, %v4037_v33  ;;  %v4484_v39 = vadd.f32 %v7413_v14, %v4036_v3  ;;  %4977 = vmatpush1.bf16.msra.mxu1 %v4870_v52  ;;  %7928 = vst [vmem:[#allocation27_spill] sm:$0xff] %v7433_v57  ;;  %v4733_v21 = vmax.f32 %v4477_v62, 0.0  ;;  %v4732_v18 = vmax.f32 %v4476_v54, 0.0 }
 0x2c1   : > { %v4739_v8 = vmax.f32 %v4483_v29, 0.0  ;;  %v4486_v53 = vadd.f32 %v7413_v14, %v4038_v27  ;;  %v4734_v56 = vmax.f32 %v4478_v30, 0.0 }
 0x2c2   : > { %v4741_v45 = vmax.f32 %v4485_v28, 0.0  ;;  %v4740_v24 = vmax.f32 %v4484_v39, 0.0  ;;  %v3023_v2 = vpop.f32.mrb[188].mxu0 }
 0x2c3   : > { %v4876_v26 = vpack.c.bf16 %v4739_v8, %v4731_v15  ;;  %v4742_v38 = vmax.f32 %v4486_v53, 0.0  ;;  %v4043_v16 = vmul.f32 %v7410_v49, %v3023_v2  ;;  %v3216_v33 = vpop.f32.mrb[188].mxu1  ;;  %v3025_v25 = vpop.f32.mrb[189].mxu0 }
 0x2c4   : > { %v4878_v3 = vpack.c.bf16 %v4741_v45, %v4733_v21  ;;  %v4045_v52 = vmul.f32 %v7410_v49, %v3216_v33  ;;  %v4044_v42 = vmul.f32 %v7410_v49, %v3025_v25  ;;  %v3218_v29 = vpop.f32.mrb[189].mxu1  ;;  %v3027_v27 = vpop.f32.mrb[190].mxu0  ;;  %v4877_v14 = vpack.c.bf16 %v4740_v24, %v4732_v18 }
 0x2c5   : > { %v4491_v62 = vadd.f32 %v7433_v57, %v4043_v16  ;;  %v4046_v54 = vmul.f32 %v7410_v49, %v3218_v29  ;;  %v4051_v30 = vmul.f32 %v7428_v10, %v3027_v27  ;;  %v3220_v28 = vpop.f32.mrb[190].mxu1  ;;  %v3029_v39 = vpop.f32.mrb[191].mxu0  ;;  %v4879_v15 = vpack.c.bf16 %v4742_v38, %v4734_v56 }
 0x2c6   : > { %v7441_v8 = vpop.permute.xlu1 %4248  ;;  %v4493_v53 = vadd.f32 %v7433_v57, %v4045_v52  ;;  %v4492_v21 = vadd.f32 %v7433_v57, %v4044_v42  ;;  %v4053_v25 = vmul.f32 %v7428_v10, %v3220_v28  ;;  %v4052_v45 = vmul.f32 %v7428_v10, %v3029_v39  ;;  %v3222_v18 = vpop.f32.mrb[191].mxu1  ;;  %4937 = vmatprep.subr.bf16.mxu0 %v4877_v14 }
 0x2c7   : > { %v4494_v24 = vadd.f32 %v7433_v57, %v4046_v54  ;;  %v4499_v2 = vadd.f32 %v7441_v8, %v4051_v30  ;;  %v4054_v16 = vmul.f32 %v7428_v10, %v3222_v18  ;;  %4978 = vmatprep.subr.bf16.mxu1 %v4879_v15  ;;  %4938 = vmatpush1.bf16.msra.mxu0 %v4876_v26  ;;  %v4747_v33 = vmax.f32 %v4491_v62, 0.0 }
 0x2c8   : > { %v4501_v56 = vadd.f32 %v7441_v8, %v4053_v25  ;;  %v4500_v38 = vadd.f32 %v7441_v8, %v4052_v45  ;;  %4979 = vmatpush1.bf16.msra.mxu1 %v4878_v3  ;;  %v4749_v29 = vmax.f32 %v4493_v53, 0.0  ;;  %v4748_v27 = vmax.f32 %v4492_v21, 0.0 }
 0x2c9   : > { %v4755_v52 = vmax.f32 %v4499_v2, 0.0  ;;  %v4502_v42 = vadd.f32 %v7441_v8, %v4054_v16  ;;  %v4750_v39 = vmax.f32 %v4494_v24, 0.0 }
 0x2ca   : > { %v4757_v14 = vmax.f32 %v4501_v56, 0.0  ;;  %v4756_v28 = vmax.f32 %v4500_v38, 0.0  ;;  %v3259_v54 = vpop.f32.mrb[192].mxu0  ;;  %v7929_v56 = vld [vmem:[#allocation2_spill] sm:$0xff] }
 0x2cb   : > { %v4884_v30 = vpack.c.bf16 %v4755_v52, %v4747_v33  ;;  %v4758_v57 = vmax.f32 %v4502_v42, 0.0  ;;  %v3807_v15 = vmul.f32 %v6953_v37, %v3259_v54  ;;  %v3452_v26 = vpop.f32.mrb[192].mxu1  ;;  %v3261_v18 = vpop.f32.mrb[193].mxu0 }
 0x2cc   : > { %v4886_v25 = vpack.c.bf16 %v4757_v14, %v4749_v29  ;;  %v3809_v45 = vmul.f32 %v6953_v37, %v3452_v26  ;;  %v3808_v3 = vmul.f32 %v6953_v37, %v3261_v18  ;;  %v3454_v62 = vpop.f32.mrb[193].mxu1  ;;  %v3263_v2 = vpop.f32.mrb[194].mxu0  ;;  %v4885_v16 = vpack.c.bf16 %v4756_v28, %v4748_v27  ;;  %v7930_v28 = vld [vmem:[#allocation3_spill] sm:$0xff] }
 0x2cd   : > { %v4255_v53 = vadd.f32 %v6985_v36, %v3807_v15  ;;  %v3810_v21 = vmul.f32 %v6953_v37, %v3454_v62  ;;  %v3815_v24 = vmul.f32 %v7929_v56, %v3263_v2  ;;  %v3456_v38 = vpop.f32.mrb[194].mxu1  ;;  %v3265_v33 = vpop.f32.mrb[195].mxu0  ;;  %v4887_v52 = vpack.c.bf16 %v4758_v57, %v4750_v39 }
 0x2ce   : > { %v4257_v42 = vadd.f32 %v6985_v36, %v3809_v45  ;;  %v4256_v29 = vadd.f32 %v6985_v36, %v3808_v3  ;;  %v3817_v14 = vmul.f32 %v7929_v56, %v3456_v38  ;;  %v3816_v54 = vmul.f32 %v7929_v56, %v3265_v33  ;;  %v3458_v26 = vpop.f32.mrb[195].mxu1  ;;  %4939 = vmatprep.subr.bf16.mxu0 %v4885_v16 }
 0x2cf   : > { %v4258_v27 = vadd.f32 %v6985_v36, %v3810_v21  ;;  %v4263_v15 = vadd.f32 %v7930_v28, %v3815_v24  ;;  %v3818_v37 = vmul.f32 %v7929_v56, %v3458_v26  ;;  %4980 = vmatprep.subr.bf16.mxu1 %v4887_v52  ;;  %4940 = vmatpush1.bf16.msra.mxu0 %v4884_v30  ;;  %v4511_v18 = vmax.f32 %v4255_v53, 0.0  ;;  %v5437_v21 = vld.sshfl [vmem:[%s7745_s7] sm:$0x33 pattern:$0x76325410] }
 0x2d0   : > { %v4265_v57 = vadd.f32 %v7930_v28, %v3817_v14  ;;  %v4264_v39 = vadd.f32 %v7930_v28, %v3816_v54  ;;  %4981 = vmatpush1.bf16.msra.mxu1 %v4886_v25  ;;  %v4513_v62 = vmax.f32 %v4257_v42, 0.0  ;;  %v4512_v2 = vmax.f32 %v4256_v29, 0.0 }
 0x2d1   : > { %v4519_v45 = vmax.f32 %v4263_v15, 0.0  ;;  %v4266_v3 = vadd.f32 %v7930_v28, %v3818_v37  ;;  %v4514_v30 = vmax.f32 %v4258_v27, 0.0 }
 0x2d2   : > { %v4521_v16 = vmax.f32 %v4265_v57, 0.0  ;;  %v4520_v38 = vmax.f32 %v4264_v39, 0.0  ;;  %v3269_v36 = vpop.f32.mrb[196].mxu0  ;;  %4942 = vmatmul.mubr.bf16.vlgmr.msra.gmra.mrb[0].mxu0 %v5437_v21 }
 0x2d3   : > { %v4768_v56 = vpack.c.bf16 %v4519_v45, %v4511_v18  ;;  %v4522_v24 = vmax.f32 %v4266_v3, 0.0  ;;  %v3823_v33 = vmul.f32 %v6994_v41, %v3269_v36  ;;  %v3462_v25 = vpop.f32.mrb[196].mxu1  ;;  %4983 = vmatmul.mubr.bf16.vlgmr.msra.gmra.mrb[0].mxu1 %v5437_v21  ;;  %v3271_v53 = vpop.f32.mrb[197].mxu0  ;;  %5023 = vmatprep.mubr.bf16.mxu0 %v7204_v44 }
 0x2d4   : > { %v4770_v52 = vpack.c.bf16 %v4521_v16, %v4513_v62  ;;  %v3825_v42 = vmul.f32 %v6994_v41, %v3462_v25  ;;  %v3824_v29 = vmul.f32 %v6994_v41, %v3271_v53  ;;  %v3464_v14 = vpop.f32.mrb[197].mxu1  ;;  %v3273_v54 = vpop.f32.mrb[198].mxu0  ;;  %v4769_v26 = vpack.c.bf16 %v4520_v38, %v4512_v2  ;;  %5064 = vmatprep.mubr.bf16.mxu1 %v7204_v44 }
 0x2d5   : > { %v4271_v27 = vadd.f32 %v7004_v13, %v3823_v33  ;;  %v3826_v28 = vmul.f32 %v6994_v41, %v3464_v14  ;;  %v3831_v15 = vmul.f32 %v7006_v31, %v3273_v54  ;;  %v3466_v37 = vpop.f32.mrb[198].mxu1  ;;  %v3275_v57 = vpop.f32.mrb[199].mxu0  ;;  %v4771_v39 = vpack.c.bf16 %v4522_v24, %v4514_v30 }
 0x2d6   : > { %v4273_v18 = vadd.f32 %v7004_v13, %v3825_v42  ;;  %v4272_v45 = vadd.f32 %v7004_v13, %v3824_v29  ;;  %v3833_v3 = vmul.f32 %v7006_v31, %v3466_v37  ;;  %v3832_v62 = vmul.f32 %v7006_v31, %v3275_v57  ;;  %v3468_v2 = vpop.f32.mrb[199].mxu1  ;;  %4991 = vmatprep.subr.bf16.mxu0 %v4769_v26 }
 0x2d7   : > { %v4274_v44 = vadd.f32 %v7004_v13, %v3826_v28  ;;  %v4279_v16 = vadd.f32 %v7013_v40, %v3831_v15  ;;  %v3834_v41 = vmul.f32 %v7006_v31, %v3468_v2  ;;  %5032 = vmatprep.subr.bf16.mxu1 %v4771_v39  ;;  %4992 = vmatpush1.bf16.msra.mxu0 %v4768_v56  ;;  %v4527_v21 = vmax.f32 %v4271_v27, 0.0 }
 0x2d8   : > { %v4281_v38 = vadd.f32 %v7013_v40, %v3833_v3  ;;  %v4280_v36 = vadd.f32 %v7013_v40, %v3832_v62  ;;  %5033 = vmatpush1.bf16.msra.mxu1 %v4770_v52  ;;  %v4529_v33 = vmax.f32 %v4273_v18, 0.0  ;;  %v4528_v25 = vmax.f32 %v4272_v45, 0.0 }
 0x2d9   : > { %v4535_v30 = vmax.f32 %v4279_v16, 0.0  ;;  %v4282_v24 = vadd.f32 %v7013_v40, %v3834_v41  ;;  %v4530_v29 = vmax.f32 %v4274_v44, 0.0 }
 0x2da   : > { %v4537_v53 = vmax.f32 %v4281_v38, 0.0  ;;  %v4536_v42 = vmax.f32 %v4280_v36, 0.0  ;;  %v3279_v13 = vpop.f32.mrb[200].mxu0 }
 0x2db   : > { %v4776_v14 = vpack.c.bf16 %v4535_v30, %v4527_v21  ;;  %v4538_v54 = vmax.f32 %v4282_v24, 0.0  ;;  %v3839_v31 = vmul.f32 %v7008_v1, %v3279_v13  ;;  %v3472_v56 = vpop.f32.mrb[200].mxu1  ;;  %v3281_v26 = vpop.f32.mrb[201].mxu0 }
 0x2dc   : > { %v4778_v28 = vpack.c.bf16 %v4537_v53, %v4529_v33  ;;  %v3841_v15 = vmul.f32 %v7008_v1, %v3472_v56  ;;  %v3840_v52 = vmul.f32 %v7008_v1, %v3281_v26  ;;  %v3474_v27 = vpop.f32.mrb[201].mxu1  ;;  %v3283_v37 = vpop.f32.mrb[202].mxu0  ;;  %v4777_v40 = vpack.c.bf16 %v4536_v42, %v4528_v25 }
 0x2dd   : > { %v4287_v57 = vadd.f32 %v7018_v20, %v3839_v31  ;;  %v3842_v39 = vmul.f32 %v7008_v1, %v3474_v27  ;;  %v3847_v18 = vmul.f32 %v7020_v63, %v3283_v37  ;;  %v3476_v45 = vpop.f32.mrb[202].mxu1  ;;  %v3285_v3 = vpop.f32.mrb[203].mxu0  ;;  %v4779_v62 = vpack.c.bf16 %v4538_v54, %v4530_v29 }
 0x2de   : > { %v4289_v2 = vadd.f32 %v7018_v20, %v3841_v15  ;;  %v4288_v44 = vadd.f32 %v7018_v20, %v3840_v52  ;;  %v3849_v16 = vmul.f32 %v7020_v63, %v3476_v45  ;;  %v3848_v41 = vmul.f32 %v7020_v63, %v3285_v3  ;;  %v3478_v38 = vpop.f32.mrb[203].mxu1  ;;  %4993 = vmatprep.subr.bf16.mxu0 %v4777_v40 }
 0x2df   : > { %v4290_v36 = vadd.f32 %v7018_v20, %v3842_v39  ;;  %v4295_v21 = vadd.f32 %v7030_v61, %v3847_v18  ;;  %v3850_v1 = vmul.f32 %v7020_v63, %v3478_v38  ;;  %5034 = vmatprep.subr.bf16.mxu1 %v4779_v62  ;;  %4994 = vmatpush1.bf16.msra.mxu0 %v4776_v14  ;;  %v4543_v33 = vmax.f32 %v4287_v57, 0.0 }
 0x2e0   : > { %v4297_v30 = vadd.f32 %v7030_v61, %v3849_v16  ;;  %v4296_v24 = vadd.f32 %v7030_v61, %v3848_v41  ;;  %5035 = vmatpush1.bf16.msra.mxu1 %v4778_v28  ;;  %v4545_v42 = vmax.f32 %v4289_v2, 0.0  ;;  %v4544_v13 = vmax.f32 %v4288_v44, 0.0 }
 0x2e1   : > { %v4551_v25 = vmax.f32 %v4295_v21, 0.0  ;;  %v4298_v53 = vadd.f32 %v7030_v61, %v3850_v1  ;;  %v4546_v31 = vmax.f32 %v4290_v36, 0.0  ;;  %v7931_v21 = vld [vmem:[#allocation4_spill] sm:$0xff] }
 0x2e2   : > { %v4553_v29 = vmax.f32 %v4297_v30, 0.0  ;;  %v4552_v54 = vmax.f32 %v4296_v24, 0.0  ;;  %v3289_v20 = vpop.f32.mrb[204].mxu0 }
 0x2e3   : > { %v4784_v56 = vpack.c.bf16 %v4551_v25, %v4543_v33  ;;  %v4554_v26 = vmax.f32 %v4298_v53, 0.0  ;;  %v3855_v63 = vmul.f32 %v7028_v58, %v3289_v20  ;;  %v3482_v14 = vpop.f32.mrb[204].mxu1  ;;  %v3291_v15 = vpop.f32.mrb[205].mxu0 }
 0x2e4   : > { %v4786_v52 = vpack.c.bf16 %v4553_v29, %v4545_v42  ;;  %v3857_v27 = vmul.f32 %v7028_v58, %v3482_v14  ;;  %v3856_v28 = vmul.f32 %v7028_v58, %v3291_v15  ;;  %v3484_v37 = vpop.f32.mrb[205].mxu1  ;;  %v3293_v40 = vpop.f32.mrb[206].mxu0  ;;  %v4785_v61 = vpack.c.bf16 %v4552_v54, %v4544_v13 }
 0x2e5   : > { %v4303_v57 = vadd.f32 %v7038_v17, %v3855_v63  ;;  %v3858_v39 = vmul.f32 %v7028_v58, %v3484_v37  ;;  %v3863_v18 = vmul.f32 %v7040_v35, %v3293_v40  ;;  %v3486_v45 = vpop.f32.mrb[206].mxu1  ;;  %v3295_v3 = vpop.f32.mrb[207].mxu0  ;;  %v4787_v62 = vpack.c.bf16 %v4554_v26, %v4546_v31 }
 0x2e6   : > { %v4305_v2 = vadd.f32 %v7038_v17, %v3857_v27  ;;  %v4304_v44 = vadd.f32 %v7038_v17, %v3856_v28  ;;  %v3865_v16 = vmul.f32 %v7040_v35, %v3486_v45  ;;  %v3864_v41 = vmul.f32 %v7040_v35, %v3295_v3  ;;  %v3488_v38 = vpop.f32.mrb[207].mxu1  ;;  %4995 = vmatprep.subr.bf16.mxu0 %v4785_v61 }
 0x2e7   : > { %v4306_v36 = vadd.f32 %v7038_v17, %v3858_v39  ;;  %v4311_v1 = vadd.f32 %v7931_v21, %v3863_v18  ;;  %v3866_v58 = vmul.f32 %v7040_v35, %v3488_v38  ;;  %5036 = vmatprep.subr.bf16.mxu1 %v4787_v62  ;;  %4996 = vmatpush1.bf16.msra.mxu0 %v4784_v56  ;;  %v4559_v33 = vmax.f32 %v4303_v57, 0.0 }
 0x2e8   : > { %v4313_v30 = vadd.f32 %v7931_v21, %v3865_v16  ;;  %v4312_v24 = vadd.f32 %v7931_v21, %v3864_v41  ;;  %5037 = vmatpush1.bf16.msra.mxu1 %v4786_v52  ;;  %v4561_v42 = vmax.f32 %v4305_v2, 0.0  ;;  %v4560_v13 = vmax.f32 %v4304_v44, 0.0 }
 0x2e9   : > { %v4567_v25 = vmax.f32 %v4311_v1, 0.0  ;;  %v4314_v53 = vadd.f32 %v7931_v21, %v3866_v58  ;;  %v4562_v20 = vmax.f32 %v4306_v36, 0.0 }
 0x2ea   : > { %v4569_v29 = vmax.f32 %v4313_v30, 0.0  ;;  %v4568_v54 = vmax.f32 %v4312_v24, 0.0  ;;  %v3299_v17 = vpop.f32.mrb[208].mxu0 }
 0x2eb   : > { %v4792_v31 = vpack.c.bf16 %v4567_v25, %v4559_v33  ;;  %v4570_v26 = vmax.f32 %v4314_v53, 0.0  ;;  %v3871_v35 = vmul.f32 %v7042_v60, %v3299_v17  ;;  %v3492_v56 = vpop.f32.mrb[208].mxu1  ;;  %v3301_v63 = vpop.f32.mrb[209].mxu0 }
 0x2ec   : > { %v4794_v14 = vpack.c.bf16 %v4569_v29, %v4561_v42  ;;  %v3873_v15 = vmul.f32 %v7042_v60, %v3492_v56  ;;  %v3872_v52 = vmul.f32 %v7042_v60, %v3301_v63  ;;  %v3494_v27 = vpop.f32.mrb[209].mxu1  ;;  %v3303_v28 = vpop.f32.mrb[210].mxu0  ;;  %v4793_v37 = vpack.c.bf16 %v4568_v54, %v4560_v13  ;;  %v7932_v63 = vld [vmem:[#allocation5_spill] sm:$0xff] }
 0x2ed   : > { %v4319_v40 = vadd.f32 %v7052_v34, %v3871_v35  ;;  %v3874_v61 = vmul.f32 %v7042_v60, %v3494_v27  ;;  %v3879_v57 = vmul.f32 %v7054_v4, %v3303_v28  ;;  %v3496_v39 = vpop.f32.mrb[210].mxu1  ;;  %v3305_v18 = vpop.f32.mrb[211].mxu0  ;;  %v4795_v45 = vpack.c.bf16 %v4570_v26, %v4562_v20 }
 0x2ee   : > { %v4321_v3 = vadd.f32 %v7052_v34, %v3873_v15  ;;  %v4320_v62 = vadd.f32 %v7052_v34, %v3872_v52  ;;  %v3881_v2 = vmul.f32 %v7054_v4, %v3496_v39  ;;  %v3880_v44 = vmul.f32 %v7054_v4, %v3305_v18  ;;  %v3498_v16 = vpop.f32.mrb[211].mxu1  ;;  %4997 = vmatprep.subr.bf16.mxu0 %v4793_v37  ;;  %v7933_v52 = vld [vmem:[#allocation7_spill] sm:$0xff] }
 0x2ef   : > { %v4322_v41 = vadd.f32 %v7052_v34, %v3874_v61  ;;  %v4327_v38 = vadd.f32 %v7064_v19, %v3879_v57  ;;  %v3882_v60 = vmul.f32 %v7054_v4, %v3498_v16  ;;  %5038 = vmatprep.subr.bf16.mxu1 %v4795_v45  ;;  %4998 = vmatpush1.bf16.msra.mxu0 %v4792_v31  ;;  %v4575_v1 = vmax.f32 %v4319_v40, 0.0 }
 0x2f0   : > { %v4329_v36 = vadd.f32 %v7064_v19, %v3881_v2  ;;  %v4328_v21 = vadd.f32 %v7064_v19, %v3880_v44  ;;  %5039 = vmatpush1.bf16.msra.mxu1 %v4794_v14  ;;  %v4577_v24 = vmax.f32 %v4321_v3, 0.0  ;;  %v4576_v33 = vmax.f32 %v4320_v62, 0.0  ;;  %v7934_v62 = vld [vmem:[#allocation6_spill] sm:$0xff] }
 0x2f1   : > { %v4583_v58 = vmax.f32 %v4327_v38, 0.0  ;;  %v4330_v30 = vadd.f32 %v7064_v19, %v3882_v60  ;;  %v4578_v42 = vmax.f32 %v4322_v41, 0.0 }
 0x2f2   : > { %v4585_v25 = vmax.f32 %v4329_v36, 0.0  ;;  %v4584_v53 = vmax.f32 %v4328_v21, 0.0  ;;  %v3309_v34 = vpop.f32.mrb[212].mxu0 }
 0x2f3   : > { %v4800_v13 = vpack.c.bf16 %v4583_v58, %v4575_v1  ;;  %v4586_v29 = vmax.f32 %v4330_v30, 0.0  ;;  %v3887_v4 = vmul.f32 %v7062_v11, %v3309_v34  ;;  %v3502_v54 = vpop.f32.mrb[212].mxu1  ;;  %v3311_v17 = vpop.f32.mrb[213].mxu0 }
 0x2f4   : > { %v4802_v20 = vpack.c.bf16 %v4585_v25, %v4577_v24  ;;  %v3889_v31 = vmul.f32 %v7062_v11, %v3502_v54  ;;  %v3888_v26 = vmul.f32 %v7062_v11, %v3311_v17  ;;  %v3504_v35 = vpop.f32.mrb[213].mxu1  ;;  %v3313_v56 = vpop.f32.mrb[214].mxu0  ;;  %v4801_v19 = vpack.c.bf16 %v4584_v53, %v4576_v33 }
 0x2f5   : > { %v4335_v14 = vadd.f32 %v7932_v63, %v3887_v4  ;;  %v3890_v15 = vmul.f32 %v7062_v11, %v3504_v35  ;;  %v3895_v27 = vmul.f32 %v7933_v52, %v3313_v56  ;;  %v3506_v28 = vpop.f32.mrb[214].mxu1  ;;  %v3315_v37 = vpop.f32.mrb[215].mxu0  ;;  %v4803_v40 = vpack.c.bf16 %v4586_v29, %v4578_v42  ;;  %v7936_v56 = vld [vmem:[#allocation8_spill] sm:$0xff] }
 0x2f6   : > { %v4337_v61 = vadd.f32 %v7932_v63, %v3889_v31  ;;  %v4336_v57 = vadd.f32 %v7932_v63, %v3888_v26  ;;  %v3897_v39 = vmul.f32 %v7933_v52, %v3506_v28  ;;  %v3896_v18 = vmul.f32 %v7933_v52, %v3315_v37  ;;  %v3508_v45 = vpop.f32.mrb[215].mxu1  ;;  %4999 = vmatprep.subr.bf16.mxu0 %v4801_v19  ;;  %v7935_v31 = vld [vmem:[#allocation9_spill] sm:$0xff] }
 0x2f7   : > { %v4338_v3 = vadd.f32 %v7932_v63, %v3890_v15  ;;  %v4343_v2 = vadd.f32 %v7934_v62, %v3895_v27  ;;  %v3898_v11 = vmul.f32 %v7933_v52, %v3508_v45  ;;  %5040 = vmatprep.subr.bf16.mxu1 %v4803_v40  ;;  %5000 = vmatpush1.bf16.msra.mxu0 %v4800_v13  ;;  %v4591_v41 = vmax.f32 %v4335_v14, 0.0 }
 0x2f8   : > { %v4345_v44 = vadd.f32 %v7934_v62, %v3897_v39  ;;  %v4344_v16 = vadd.f32 %v7934_v62, %v3896_v18  ;;  %5041 = vmatpush1.bf16.msra.mxu1 %v4802_v20  ;;  %v4593_v36 = vmax.f32 %v4337_v61, 0.0  ;;  %v4592_v21 = vmax.f32 %v4336_v57, 0.0  ;;  %v7937_v57 = vld [vmem:[#allocation11_spill] sm:$0xff] }
 0x2f9   : > { %v4599_v38 = vmax.f32 %v4343_v2, 0.0  ;;  %v4346_v60 = vadd.f32 %v7934_v62, %v3898_v11  ;;  %v4594_v24 = vmax.f32 %v4338_v3, 0.0 }
 0x2fa   : > { %v4601_v1 = vmax.f32 %v4345_v44, 0.0  ;;  %v4600_v58 = vmax.f32 %v4344_v16, 0.0  ;;  %v3319_v30 = vpop.f32.mrb[216].mxu0 }
 0x2fb   : > { %v4808_v33 = vpack.c.bf16 %v4599_v38, %v4591_v41  ;;  %v4602_v25 = vmax.f32 %v4346_v60, 0.0  ;;  %v3903_v53 = vmul.f32 %v7074_v5, %v3319_v30  ;;  %v3512_v34 = vpop.f32.mrb[216].mxu1  ;;  %v3321_v42 = vpop.f32.mrb[217].mxu0 }
 0x2fc   : > { %v4810_v13 = vpack.c.bf16 %v4601_v1, %v4593_v36  ;;  %v3905_v29 = vmul.f32 %v7074_v5, %v3512_v34  ;;  %v3904_v4 = vmul.f32 %v7074_v5, %v3321_v42  ;;  %v3514_v54 = vpop.f32.mrb[217].mxu1  ;;  %v3323_v17 = vpop.f32.mrb[218].mxu0  ;;  %v4809_v20 = vpack.c.bf16 %v4600_v58, %v4592_v21 }
 0x2fd   : > { %v4351_v26 = vadd.f32 %v7935_v31, %v3903_v53  ;;  %v3906_v35 = vmul.f32 %v7074_v5, %v3514_v54  ;;  %v3911_v19 = vmul.f32 %v7936_v56, %v3323_v17  ;;  %v3516_v63 = vpop.f32.mrb[218].mxu1  ;;  %v3325_v14 = vpop.f32.mrb[219].mxu0  ;;  %v4811_v15 = vpack.c.bf16 %v4602_v25, %v4594_v24 }
 0x2fe   : > { %v4353_v52 = vadd.f32 %v7935_v31, %v3905_v29  ;;  %v4352_v27 = vadd.f32 %v7935_v31, %v3904_v4  ;;  %v3913_v28 = vmul.f32 %v7936_v56, %v3516_v63  ;;  %v3912_v37 = vmul.f32 %v7936_v56, %v3325_v14  ;;  %v3518_v40 = vpop.f32.mrb[219].mxu1  ;;  %5001 = vmatprep.subr.bf16.mxu0 %v4809_v20  ;;  %v7938_v4 = vld [vmem:[#allocation10_spill] sm:$0xff] }
 0x2ff   : > { %v4354_v61 = vadd.f32 %v7935_v31, %v3906_v35  ;;  %v4359_v39 = vadd.f32 %v7937_v57, %v3911_v19  ;;  %v3914_v5 = vmul.f32 %v7936_v56, %v3518_v40  ;;  %5042 = vmatprep.subr.bf16.mxu1 %v4811_v15  ;;  %5002 = vmatpush1.bf16.msra.mxu0 %v4808_v33  ;;  %v4607_v3 = vmax.f32 %v4351_v26, 0.0  ;;  %v7939_v15 = vld [vmem:[#allocation13_spill] sm:$0xff] }
 0x300   : > { %v4361_v18 = vadd.f32 %v7937_v57, %v3913_v28  ;;  %v4360_v45 = vadd.f32 %v7937_v57, %v3912_v37  ;;  %5043 = vmatpush1.bf16.msra.mxu1 %v4810_v13  ;;  %v4609_v11 = vmax.f32 %v4353_v52, 0.0  ;;  %v4608_v44 = vmax.f32 %v4352_v27, 0.0 }
 0x301   : > { %v4615_v62 = vmax.f32 %v4359_v39, 0.0  ;;  %v4362_v2 = vadd.f32 %v7937_v57, %v3914_v5  ;;  %v4610_v60 = vmax.f32 %v4354_v61, 0.0 }
 0x302   : > { %v4617_v16 = vmax.f32 %v4361_v18, 0.0  ;;  %v4616_v41 = vmax.f32 %v4360_v45, 0.0  ;;  %v3329_v38 = vpop.f32.mrb[220].mxu0 }
 0x303   : > { %v4816_v36 = vpack.c.bf16 %v4615_v62, %v4607_v3  ;;  %v4618_v21 = vmax.f32 %v4362_v2, 0.0  ;;  %v3919_v1 = vmul.f32 %v7090_v0, %v3329_v38  ;;  %v3522_v58 = vpop.f32.mrb[220].mxu1  ;;  %v3331_v30 = vpop.f32.mrb[221].mxu0 }
 0x304   : > { %v4818_v24 = vpack.c.bf16 %v4617_v16, %v4609_v11  ;;  %v3921_v33 = vmul.f32 %v7090_v0, %v3522_v58  ;;  %v3920_v25 = vmul.f32 %v7090_v0, %v3331_v30  ;;  %v3524_v53 = vpop.f32.mrb[221].mxu1  ;;  %v3333_v34 = vpop.f32.mrb[222].mxu0  ;;  %v4817_v42 = vpack.c.bf16 %v4616_v41, %v4608_v44  ;;  %v7940_v30 = vld [vmem:[#allocation12_spill] sm:$0xff] }
 0x305   : > { %v4367_v13 = vadd.f32 %v7097_v12, %v3919_v1  ;;  %v3922_v29 = vmul.f32 %v7090_v0, %v3524_v53  ;;  %v3927_v54 = vmul.f32 %v7938_v4, %v3333_v34  ;;  %v3526_v17 = vpop.f32.mrb[222].mxu1  ;;  %v3335_v20 = vpop.f32.mrb[223].mxu0  ;;  %v4819_v31 = vpack.c.bf16 %v4618_v21, %v4610_v60 }
 0x306   : > { %v4369_v26 = vadd.f32 %v7097_v12, %v3921_v33  ;;  %v4368_v35 = vadd.f32 %v7097_v12, %v3920_v25  ;;  %v3929_v56 = vmul.f32 %v7938_v4, %v3526_v17  ;;  %v3928_v19 = vmul.f32 %v7938_v4, %v3335_v20  ;;  %v3528_v63 = vpop.f32.mrb[223].mxu1  ;;  %5003 = vmatprep.subr.bf16.mxu0 %v4817_v42  ;;  %v7941_v17 = vld [vmem:[#allocation15_spill] sm:$0xff] }
 0x307   : > { %v4370_v14 = vadd.f32 %v7097_v12, %v3922_v29  ;;  %v4375_v52 = vadd.f32 %v7939_v15, %v3927_v54  ;;  %v3930_v0 = vmul.f32 %v7938_v4, %v3528_v63  ;;  %5044 = vmatprep.subr.bf16.mxu1 %v4819_v31  ;;  %5004 = vmatpush1.bf16.msra.mxu0 %v4816_v36  ;;  %v4623_v37 = vmax.f32 %v4367_v13, 0.0 }
 0x308   : > { %v4377_v27 = vadd.f32 %v7939_v15, %v3929_v56  ;;  %v4376_v28 = vadd.f32 %v7939_v15, %v3928_v19  ;;  %5045 = vmatpush1.bf16.msra.mxu1 %v4818_v24  ;;  %v4625_v57 = vmax.f32 %v4369_v26, 0.0  ;;  %v4624_v39 = vmax.f32 %v4368_v35, 0.0 }
 0x309   : > { %v4631_v40 = vmax.f32 %v4375_v52, 0.0  ;;  %v4378_v61 = vadd.f32 %v7939_v15, %v3930_v0  ;;  %v4626_v45 = vmax.f32 %v4370_v14, 0.0 }
 0x30a   : > { %v4633_v5 = vmax.f32 %v4377_v27, 0.0  ;;  %v4632_v18 = vmax.f32 %v4376_v28, 0.0  ;;  %v3339_v12 = vpop.f32.mrb[224].mxu0 }
 0x30b   : > { %v4824_v3 = vpack.c.bf16 %v4631_v40, %v4623_v37  ;;  %v4634_v62 = vmax.f32 %v4378_v61, 0.0  ;;  %v3935_v2 = vmul.f32 %v7102_v48, %v3339_v12  ;;  %v3532_v11 = vpop.f32.mrb[224].mxu1  ;;  %v3341_v44 = vpop.f32.mrb[225].mxu0 }
 0x30c   : > { %v4826_v16 = vpack.c.bf16 %v4633_v5, %v4625_v57  ;;  %v3937_v41 = vmul.f32 %v7102_v48, %v3532_v11  ;;  %v3936_v38 = vmul.f32 %v7102_v48, %v3341_v44  ;;  %v3534_v60 = vpop.f32.mrb[225].mxu1  ;;  %v3343_v36 = vpop.f32.mrb[226].mxu0  ;;  %v4825_v21 = vpack.c.bf16 %v4632_v18, %v4624_v39 }
 0x30d   : > { %v4383_v1 = vadd.f32 %v7125_v50, %v3935_v2  ;;  %v3938_v58 = vmul.f32 %v7102_v48, %v3534_v60  ;;  %v3943_v24 = vmul.f32 %v7940_v30, %v3343_v36  ;;  %v3536_v33 = vpop.f32.mrb[226].mxu1  ;;  %v3345_v25 = vpop.f32.mrb[227].mxu0  ;;  %v4827_v53 = vpack.c.bf16 %v4634_v62, %v4626_v45  ;;  %v7942_v2 = vld [vmem:[#allocation14_spill] sm:$0xff] }
 0x30e   : > { %v4385_v34 = vadd.f32 %v7125_v50, %v3937_v41  ;;  %v4384_v42 = vadd.f32 %v7125_v50, %v3936_v38  ;;  %v3945_v13 = vmul.f32 %v7940_v30, %v3536_v33  ;;  %v3944_v29 = vmul.f32 %v7940_v30, %v3345_v25  ;;  %v3538_v4 = vpop.f32.mrb[227].mxu1  ;;  %5005 = vmatprep.subr.bf16.mxu0 %v4825_v21 }
 0x30f   : > { %v4386_v54 = vadd.f32 %v7125_v50, %v3938_v58  ;;  %v4391_v20 = vadd.f32 %v7941_v17, %v3943_v24  ;;  %v3946_v48 = vmul.f32 %v7940_v30, %v3538_v4  ;;  %5046 = vmatprep.subr.bf16.mxu1 %v4827_v53  ;;  %5006 = vmatpush1.bf16.msra.mxu0 %v4824_v3  ;;  %v4639_v35 = vmax.f32 %v4383_v1, 0.0  ;;  %v7943_v30 = vld [vmem:[#allocation17_spill] sm:$0xff] }
 0x310   : > { %v4393_v31 = vadd.f32 %v7941_v17, %v3945_v13  ;;  %v4392_v26 = vadd.f32 %v7941_v17, %v3944_v29  ;;  %5047 = vmatpush1.bf16.msra.mxu1 %v4826_v16  ;;  %v4641_v63 = vmax.f32 %v4385_v34, 0.0  ;;  %v4640_v14 = vmax.f32 %v4384_v42, 0.0 }
 0x311   : > { %v4647_v56 = vmax.f32 %v4391_v20, 0.0  ;;  %v4394_v19 = vadd.f32 %v7941_v17, %v3946_v48  ;;  %v4642_v0 = vmax.f32 %v4386_v54, 0.0 }
 0x312   : > { %v4649_v15 = vmax.f32 %v4393_v31, 0.0  ;;  %v4648_v52 = vmax.f32 %v4392_v26, 0.0  ;;  %v3349_v50 = vpop.f32.mrb[228].mxu0 }
 0x313   : > { %v4832_v27 = vpack.c.bf16 %v4647_v56, %v4639_v35  ;;  %v4650_v28 = vmax.f32 %v4394_v19, 0.0  ;;  %v3951_v37 = vmul.f32 %v7149_v23, %v3349_v50  ;;  %v3542_v40 = vpop.f32.mrb[228].mxu1  ;;  %v3351_v61 = vpop.f32.mrb[229].mxu0 }
 0x314   : > { %v4834_v57 = vpack.c.bf16 %v4649_v15, %v4641_v63  ;;  %v3953_v39 = vmul.f32 %v7149_v23, %v3542_v40  ;;  %v3952_v5 = vmul.f32 %v7149_v23, %v3351_v61  ;;  %v3544_v18 = vpop.f32.mrb[229].mxu1  ;;  %v3353_v12 = vpop.f32.mrb[230].mxu0  ;;  %v4833_v45 = vpack.c.bf16 %v4648_v52, %v4640_v14 }
 0x315   : > { %v4399_v3 = vadd.f32 %v7173_v9, %v3951_v37  ;;  %v3954_v62 = vmul.f32 %v7149_v23, %v3544_v18  ;;  %v3959_v11 = vmul.f32 %v7942_v2, %v3353_v12  ;;  %v3546_v44 = vpop.f32.mrb[230].mxu1  ;;  %v3355_v16 = vpop.f32.mrb[231].mxu0  ;;  %v4835_v41 = vpack.c.bf16 %v4650_v28, %v4642_v0 }
 0x316   : > { %v4401_v38 = vadd.f32 %v7173_v9, %v3953_v39  ;;  %v4400_v60 = vadd.f32 %v7173_v9, %v3952_v5  ;;  %v3961_v36 = vmul.f32 %v7942_v2, %v3546_v44  ;;  %v3960_v21 = vmul.f32 %v7942_v2, %v3355_v16  ;;  %v3548_v1 = vpop.f32.mrb[231].mxu1  ;;  %5007 = vmatprep.subr.bf16.mxu0 %v4833_v45 }
 0x317   : > { %v4402_v58 = vadd.f32 %v7173_v9, %v3954_v62  ;;  %v4407_v24 = vadd.f32 %v7943_v30, %v3959_v11  ;;  %v3962_v23 = vmul.f32 %v7942_v2, %v3548_v1  ;;  %5048 = vmatprep.subr.bf16.mxu1 %v4835_v41  ;;  %5008 = vmatpush1.bf16.msra.mxu0 %v4832_v27  ;;  %v4655_v53 = vmax.f32 %v4399_v3, 0.0  ;;  %v7944_v27 = vld [vmem:[#allocation16_spill] sm:$0xff]  ;;  %v7945_v3 = vld [vmem:[#allocation19_spill] sm:$0xff] }
 0x318   : > { %v4409_v33 = vadd.f32 %v7943_v30, %v3961_v36  ;;  %v4408_v25 = vadd.f32 %v7943_v30, %v3960_v21  ;;  %5049 = vmatpush1.bf16.msra.mxu1 %v4834_v57  ;;  %v4657_v13 = vmax.f32 %v4401_v38, 0.0  ;;  %v4656_v29 = vmax.f32 %v4400_v60, 0.0 }
 0x319   : > { %v4663_v34 = vmax.f32 %v4407_v24, 0.0  ;;  %v4410_v42 = vadd.f32 %v7943_v30, %v3962_v23  ;;  %v4658_v17 = vmax.f32 %v4402_v58, 0.0 }
 0x31a   : > { %v4665_v4 = vmax.f32 %v4409_v33, 0.0  ;;  %v4664_v54 = vmax.f32 %v4408_v25, 0.0  ;;  %v3359_v9 = vpop.f32.mrb[232].mxu0 }
 0x31b   : > { %v4840_v20 = vpack.c.bf16 %v4663_v34, %v4655_v53  ;;  %v4666_v48 = vmax.f32 %v4410_v42, 0.0  ;;  %v3967_v31 = vmul.f32 %v7200_v32, %v3359_v9  ;;  %v3552_v26 = vpop.f32.mrb[232].mxu1  ;;  %v3361_v35 = vpop.f32.mrb[233].mxu0  ;;  %v7946_v9 = vld [vmem:[#allocation18_spill] sm:$0xff] }
 0x31c   : > { %v4842_v56 = vpack.c.bf16 %v4665_v4, %v4657_v13  ;;  %v3969_v19 = vmul.f32 %v7200_v32, %v3552_v26  ;;  %v3968_v63 = vmul.f32 %v7200_v32, %v3361_v35  ;;  %v3554_v14 = vpop.f32.mrb[233].mxu1  ;;  %v3363_v15 = vpop.f32.mrb[234].mxu0  ;;  %v4841_v52 = vpack.c.bf16 %v4664_v54, %v4656_v29 }
 0x31d   : > { %v4415_v50 = vadd.f32 %v7230_v55, %v3967_v31  ;;  %v3970_v0 = vmul.f32 %v7200_v32, %v3554_v14  ;;  %v3975_v28 = vmul.f32 %v7944_v27, %v3363_v15  ;;  %v3556_v37 = vpop.f32.mrb[234].mxu1  ;;  %v3365_v40 = vpop.f32.mrb[235].mxu0  ;;  %v4843_v61 = vpack.c.bf16 %v4666_v48, %v4658_v17  ;;  %v7947_v15 = vld [vmem:[#allocation20_spill] sm:$0xff] }
 0x31e   : > { %v4417_v57 = vadd.f32 %v7230_v55, %v3969_v19  ;;  %v4416_v39 = vadd.f32 %v7230_v55, %v3968_v63  ;;  %v3977_v5 = vmul.f32 %v7944_v27, %v3556_v37  ;;  %v3976_v18 = vmul.f32 %v7944_v27, %v3365_v40  ;;  %v3558_v12 = vpop.f32.mrb[235].mxu1  ;;  %5009 = vmatprep.subr.bf16.mxu0 %v4841_v52 }
 0x31f   : > { %v4418_v45 = vadd.f32 %v7230_v55, %v3970_v0  ;;  %v4423_v62 = vadd.f32 %v7945_v3, %v3975_v28  ;;  %v3978_v32 = vmul.f32 %v7944_v27, %v3558_v12  ;;  %5050 = vmatprep.subr.bf16.mxu1 %v4843_v61  ;;  %5010 = vmatpush1.bf16.msra.mxu0 %v4840_v20  ;;  %v4671_v44 = vmax.f32 %v4415_v50, 0.0 }
 0x320   : > { %v4425_v2 = vadd.f32 %v7945_v3, %v3977_v5  ;;  %v4424_v11 = vadd.f32 %v7945_v3, %v3976_v18  ;;  %5051 = vmatpush1.bf16.msra.mxu1 %v4842_v56  ;;  %v4673_v38 = vmax.f32 %v4417_v57, 0.0  ;;  %v4672_v60 = vmax.f32 %v4416_v39, 0.0 }
 0x321   : > { %v4679_v16 = vmax.f32 %v4423_v62, 0.0  ;;  %v4426_v41 = vadd.f32 %v7945_v3, %v3978_v32  ;;  %v4674_v1 = vmax.f32 %v4418_v45, 0.0 }
 0x322   : > { %v4681_v36 = vmax.f32 %v4425_v2, 0.0  ;;  %v4680_v21 = vmax.f32 %v4424_v11, 0.0  ;;  %v3369_v55 = vpop.f32.mrb[236].mxu0 }
 0x323   : > { %v4848_v58 = vpack.c.bf16 %v4679_v16, %v4671_v44  ;;  %v4682_v30 = vmax.f32 %v4426_v41, 0.0  ;;  %v3983_v24 = vmul.f32 %v7251_v22, %v3369_v55  ;;  %v3562_v23 = vpop.f32.mrb[236].mxu1  ;;  %v3371_v33 = vpop.f32.mrb[237].mxu0 }
 0x324   : > { %v4850_v25 = vpack.c.bf16 %v4681_v36, %v4673_v38  ;;  %v3985_v53 = vmul.f32 %v7251_v22, %v3562_v23  ;;  %v3984_v34 = vmul.f32 %v7251_v22, %v3371_v33  ;;  %v3564_v42 = vpop.f32.mrb[237].mxu1  ;;  %v3373_v13 = vpop.f32.mrb[238].mxu0  ;;  %v4849_v29 = vpack.c.bf16 %v4680_v21, %v4672_v60  ;;  %v7948_v36 = vld [vmem:[#allocation21_spill] sm:$0xff] }
 0x325   : > { %v4431_v4 = vadd.f32 %v7270_v46, %v3983_v24  ;;  %v3986_v54 = vmul.f32 %v7251_v22, %v3564_v42  ;;  %v3991_v17 = vmul.f32 %v7946_v9, %v3373_v13  ;;  %v3566_v20 = vpop.f32.mrb[238].mxu1  ;;  %v3375_v48 = vpop.f32.mrb[239].mxu0  ;;  %v4851_v31 = vpack.c.bf16 %v4682_v30, %v4674_v1 }
 0x326   : > { %v4433_v26 = vadd.f32 %v7270_v46, %v3985_v53  ;;  %v4432_v35 = vadd.f32 %v7270_v46, %v3984_v34  ;;  %v3993_v56 = vmul.f32 %v7946_v9, %v3566_v20  ;;  %v3992_v19 = vmul.f32 %v7946_v9, %v3375_v48  ;;  %v3568_v63 = vpop.f32.mrb[239].mxu1  ;;  %5011 = vmatprep.subr.bf16.mxu0 %v4849_v29  ;;  %v7949_v34 = vld [vmem:[#allocation22_spill] sm:$0xff] }
 0x327   : > { %v4434_v14 = vadd.f32 %v7270_v46, %v3986_v54  ;;  %v4439_v52 = vadd.f32 %v7947_v15, %v3991_v17  ;;  %v3994_v22 = vmul.f32 %v7946_v9, %v3568_v63  ;;  %5052 = vmatprep.subr.bf16.mxu1 %v4851_v31  ;;  %5012 = vmatpush1.bf16.msra.mxu0 %v4848_v58  ;;  %v4687_v27 = vmax.f32 %v4431_v4, 0.0 }
 0x328   : > { %v4441_v50 = vadd.f32 %v7947_v15, %v3993_v56  ;;  %v4440_v0 = vadd.f32 %v7947_v15, %v3992_v19  ;;  %5053 = vmatpush1.bf16.msra.mxu1 %v4850_v25  ;;  %v4689_v40 = vmax.f32 %v4433_v26, 0.0  ;;  %v4688_v61 = vmax.f32 %v4432_v35, 0.0 }
 0x329   : > { %v4695_v28 = vmax.f32 %v4439_v52, 0.0  ;;  %v4442_v37 = vadd.f32 %v7947_v15, %v3994_v22  ;;  %v4690_v5 = vmax.f32 %v4434_v14, 0.0 }
 0x32a   : > { %v4697_v57 = vmax.f32 %v4441_v50, 0.0  ;;  %v4696_v39 = vmax.f32 %v4440_v0, 0.0 }
 0x32b   : > { %v3379_v46 = vpop.f32.mrb[240].mxu0  ;;  %v4856_v18 = vpack.c.bf16 %v4695_v28, %v4687_v27  ;;  %v4698_v12 = vmax.f32 %v4442_v37, 0.0 }
 0x32c   : > { %v3999_v45 = vmul.f32 %v7290_v51, %v3379_v46  ;;  %v3572_v3 = vpop.f32.mrb[240].mxu1  ;;  %v3381_v62 = vpop.f32.mrb[241].mxu0  ;;  %v4858_v32 = vpack.c.bf16 %v4697_v57, %v4689_v40  ;;  %v4857_v41 = vpack.c.bf16 %v4696_v39, %v4688_v61  ;;  %v7950_v40 = vld [vmem:[#allocation23_spill] sm:$0xff] }
 0x32d   : > { %v4001_v2 = vmul.f32 %v7290_v51, %v3572_v3  ;;  %v4000_v11 = vmul.f32 %v7290_v51, %v3381_v62  ;;  %v3574_v44 = vpop.f32.mrb[241].mxu1  ;;  %v3383_v16 = vpop.f32.mrb[242].mxu0  ;;  %v4859_v58 = vpack.c.bf16 %v4698_v12, %v4690_v5 }
 0x32e   : > { %v4447_v38 = vadd.f32 %v7310_v7, %v3999_v45  ;;  %v4002_v60 = vmul.f32 %v7290_v51, %v3574_v44  ;;  %v4007_v21 = vmul.f32 %v7948_v36, %v3383_v16  ;;  %v3576_v55 = vpop.f32.mrb[242].mxu1  ;;  %v3385_v1 = vpop.f32.mrb[243].mxu0  ;;  %5013 = vmatprep.subr.bf16.mxu0 %v4857_v41 }
 0x32f   : > { %v4449_v30 = vadd.f32 %v7310_v7, %v4001_v2  ;;  %v4448_v24 = vadd.f32 %v7310_v7, %v4000_v11  ;;  %v4009_v23 = vmul.f32 %v7948_v36, %v3576_v55  ;;  %v4008_v33 = vmul.f32 %v7948_v36, %v3385_v1  ;;  %v3578_v25 = vpop.f32.mrb[243].mxu1  ;;  %5054 = vmatprep.subr.bf16.mxu1 %v4859_v58 }
 0x330   : > { %v4450_v53 = vadd.f32 %v7310_v7, %v4002_v60  ;;  %v4455_v42 = vadd.f32 %v7949_v34, %v4007_v21  ;;  %v4010_v51 = vmul.f32 %v7948_v36, %v3578_v25  ;;  %5014 = vmatpush1.bf16.msra.mxu0 %v4856_v18  ;;  %5055 = vmatpush1.bf16.msra.mxu1 %v4858_v32  ;;  %v4703_v4 = vmax.f32 %v4447_v38, 0.0  ;;  %v7951_v32 = vld [vmem:[#allocation24_spill] sm:$0xff] }
 0x331   : > { %v4457_v13 = vadd.f32 %v7949_v34, %v4009_v23  ;;  %v4456_v29 = vadd.f32 %v7949_v34, %v4008_v33  ;;  %v4705_v17 = vmax.f32 %v4449_v30, 0.0  ;;  %v4704_v20 = vmax.f32 %v4448_v24, 0.0 }
 0x332   : > { %v4711_v54 = vmax.f32 %v4455_v42, 0.0  ;;  %v4458_v9 = vadd.f32 %v7949_v34, %v4010_v51  ;;  %v4706_v26 = vmax.f32 %v4450_v53, 0.0 }
 0x333   : > { %v4713_v48 = vmax.f32 %v4457_v13, 0.0  ;;  %v4712_v31 = vmax.f32 %v4456_v29, 0.0  ;;  %v3389_v7 = vpop.f32.mrb[244].mxu0 }
 0x334   : > { %v4864_v35 = vpack.c.bf16 %v4711_v54, %v4703_v4  ;;  %v4714_v56 = vmax.f32 %v4458_v9, 0.0  ;;  %v4015_v19 = vmul.f32 %v7330_v59, %v3389_v7  ;;  %v3582_v63 = vpop.f32.mrb[244].mxu1  ;;  %v3391_v14 = vpop.f32.mrb[245].mxu0  ;;  %v7952_v54 = vld [vmem:[#allocation25_spill] sm:$0xff] }
 0x335   : > { %v4866_v15 = vpack.c.bf16 %v4713_v48, %v4705_v17  ;;  %v4017_v52 = vmul.f32 %v7330_v59, %v3582_v63  ;;  %v4016_v22 = vmul.f32 %v7330_v59, %v3391_v14  ;;  %v3584_v50 = vpop.f32.mrb[245].mxu1  ;;  %v3393_v0 = vpop.f32.mrb[246].mxu0  ;;  %v4865_v27 = vpack.c.bf16 %v4712_v31, %v4704_v20  ;;  %v7953_v63 = vld [vmem:[#allocation26_spill] sm:$0xff] }
 0x336   : > { %v4463_v28 = vadd.f32 %v7350_v43, %v4015_v19  ;;  %v4018_v37 = vmul.f32 %v7330_v59, %v3584_v50  ;;  %v4023_v61 = vmul.f32 %v7950_v40, %v3393_v0  ;;  %v3586_v57 = vpop.f32.mrb[246].mxu1  ;;  %v3395_v39 = vpop.f32.mrb[247].mxu0  ;;  %v4867_v46 = vpack.c.bf16 %v4714_v56, %v4706_v26 }
 0x337   : > { %v4465_v5 = vadd.f32 %v7350_v43, %v4017_v52  ;;  %v4464_v18 = vadd.f32 %v7350_v43, %v4016_v22  ;;  %v4025_v12 = vmul.f32 %v7950_v40, %v3586_v57  ;;  %v4024_v45 = vmul.f32 %v7950_v40, %v3395_v39  ;;  %v3588_v3 = vpop.f32.mrb[247].mxu1  ;;  %5015 = vmatprep.subr.bf16.mxu0 %v4865_v27 }
 0x338   : > { %v4466_v62 = vadd.f32 %v7350_v43, %v4018_v37  ;;  %v4471_v2 = vadd.f32 %v7951_v32, %v4023_v61  ;;  %v4026_v59 = vmul.f32 %v7950_v40, %v3588_v3  ;;  %5056 = vmatprep.subr.bf16.mxu1 %v4867_v46  ;;  %5016 = vmatpush1.bf16.msra.mxu0 %v4864_v35  ;;  %v4719_v16 = vmax.f32 %v4463_v28, 0.0 }
 0x339   : > { %v4473_v11 = vadd.f32 %v7951_v32, %v4025_v12  ;;  %v4472_v44 = vadd.f32 %v7951_v32, %v4024_v45  ;;  %5057 = vmatpush1.bf16.msra.mxu1 %v4866_v15  ;;  %v4721_v60 = vmax.f32 %v4465_v5, 0.0  ;;  %v4720_v36 = vmax.f32 %v4464_v18, 0.0 }
 0x33a   : > { %v4727_v41 = vmax.f32 %v4471_v2, 0.0  ;;  %v4474_v38 = vadd.f32 %v7951_v32, %v4026_v59  ;;  %v4722_v1 = vmax.f32 %v4466_v62, 0.0  ;;  %v7954_v59 = vld [vmem:[#allocation27_spill] sm:$0xff] }
 0x33b   : > { %v4729_v21 = vmax.f32 %v4473_v11, 0.0  ;;  %v4728_v55 = vmax.f32 %v4472_v44, 0.0  ;;  %v3399_v43 = vpop.f32.mrb[248].mxu0 }
 0x33c   : > { %v4872_v58 = vpack.c.bf16 %v4727_v41, %v4719_v16  ;;  %v4730_v30 = vmax.f32 %v4474_v38, 0.0  ;;  %v4031_v24 = vmul.f32 %v7370_v6, %v3399_v43  ;;  %v3592_v23 = vpop.f32.mrb[248].mxu1  ;;  %v3401_v33 = vpop.f32.mrb[249].mxu0 }
 0x33d   : > { %v4874_v25 = vpack.c.bf16 %v4729_v21, %v4721_v60  ;;  %v4033_v53 = vmul.f32 %v7370_v6, %v3592_v23  ;;  %v4032_v34 = vmul.f32 %v7370_v6, %v3401_v33  ;;  %v3594_v42 = vpop.f32.mrb[249].mxu1  ;;  %v3403_v51 = vpop.f32.mrb[250].mxu0  ;;  %v4873_v13 = vpack.c.bf16 %v4728_v55, %v4720_v36 }
 0x33e   : > { %v4479_v29 = vadd.f32 %v7390_v47, %v4031_v24  ;;  %v4034_v4 = vmul.f32 %v7370_v6, %v3594_v42  ;;  %v4039_v9 = vmul.f32 %v7952_v54, %v3403_v51  ;;  %v3596_v17 = vpop.f32.mrb[250].mxu1  ;;  %v3405_v20 = vpop.f32.mrb[251].mxu0  ;;  %v4875_v48 = vpack.c.bf16 %v4730_v30, %v4722_v1 }
 0x33f   : > { %v4481_v31 = vadd.f32 %v7390_v47, %v4033_v53  ;;  %v4480_v7 = vadd.f32 %v7390_v47, %v4032_v34  ;;  %v4041_v26 = vmul.f32 %v7952_v54, %v3596_v17  ;;  %v4040_v35 = vmul.f32 %v7952_v54, %v3405_v20  ;;  %v3598_v56 = vpop.f32.mrb[251].mxu1  ;;  %5017 = vmatprep.subr.bf16.mxu0 %v4873_v13  ;;  %v4896_v20 = vpop.permute.xlu0 %4895 }
 0x340   : > { %v4482_v19 = vadd.f32 %v7390_v47, %v4034_v4  ;;  %v4487_v14 = vadd.f32 %v7953_v63, %v4039_v9  ;;  %v4042_v6 = vmul.f32 %v7952_v54, %v3598_v56  ;;  %5058 = vmatprep.subr.bf16.mxu1 %v4875_v48  ;;  %5018 = vmatpush1.bf16.msra.mxu0 %v4872_v58  ;;  %v4735_v22 = vmax.f32 %v4479_v29, 0.0 }
 0x341   : > { %v4489_v15 = vadd.f32 %v7953_v63, %v4041_v26  ;;  %v4488_v52 = vadd.f32 %v7953_v63, %v4040_v35  ;;  %5059 = vmatpush1.bf16.msra.mxu1 %v4874_v25  ;;  %v4737_v27 = vmax.f32 %v4481_v31, 0.0  ;;  %v4736_v28 = vmax.f32 %v4480_v7, 0.0 }
 0x342   : > { %v4743_v50 = vmax.f32 %v4487_v14, 0.0  ;;  %v4490_v0 = vadd.f32 %v7953_v63, %v4042_v6  ;;  %v4738_v61 = vmax.f32 %v4482_v19, 0.0  ;;  %v5439_v14 = vld [vmem:[%s5562_s24] sm:$0xff] }
 0x343   : > { %v4745_v37 = vmax.f32 %v4489_v15, 0.0  ;;  %v4744_v40 = vmax.f32 %v4488_v52, 0.0  ;;  %v3409_v47 = vpop.f32.mrb[252].mxu0 }
 0x344   : > { %v4880_v57 = vpack.c.bf16 %v4743_v50, %v4735_v22  ;;  %v4746_v39 = vmax.f32 %v4490_v0, 0.0  ;;  %v4047_v46 = vmul.f32 %v7410_v49, %v3409_v47  ;;  %v3602_v5 = vpop.f32.mrb[252].mxu1  ;;  %v3411_v18 = vpop.f32.mrb[253].mxu0  ;;  %v5440_v50 = vld [vmem:[%s5562_s24 + $0x10] sm:$0xff] }
 0x345   : > { %v4882_v12 = vpack.c.bf16 %v4745_v37, %v4737_v27  ;;  %v4049_v45 = vmul.f32 %v7410_v49, %v3602_v5  ;;  %v4048_v3 = vmul.f32 %v7410_v49, %v3411_v18  ;;  %v3604_v62 = vpop.f32.mrb[253].mxu1  ;;  %v3413_v32 = vpop.f32.mrb[254].mxu0  ;;  %v4881_v2 = vpack.c.bf16 %v4744_v40, %v4736_v28  ;;  %v5441_v27 = vld [vmem:[%s5562_s24 + $0x8] sm:$0xff]  ;;  %v5442_v40 = vld [vmem:[%s5562_s24 + $0x18] sm:$0xff] }
 0x346   : > { %v4495_v11 = vadd.f32 %v7954_v59, %v4047_v46  ;;  %v4050_v44 = vmul.f32 %v7410_v49, %v3604_v62  ;;  %v4055_v16 = vmul.f32 %v7428_v10, %v3413_v32  ;;  %v3606_v41 = vpop.f32.mrb[254].mxu1  ;;  %v3415_v38 = vpop.f32.mrb[255].mxu0  ;;  %v4883_v60 = vpack.c.bf16 %v4746_v39, %v4738_v61  ;;  %v5443_v32 = vld [vmem:[%s5562_s24 + $0x20] sm:$0xff] }
 0x347   : > { %v4497_v36 = vadd.f32 %v7954_v59, %v4049_v45  ;;  %v4496_v21 = vadd.f32 %v7954_v59, %v4048_v3  ;;  %v4057_v55 = vmul.f32 %v7428_v10, %v3606_v41  ;;  %v4056_v43 = vmul.f32 %v7428_v10, %v3415_v38  ;;  %v3608_v1 = vpop.f32.mrb[255].mxu1  ;;  %5019 = vmatprep.subr.bf16.mxu0 %v4881_v2  ;;  %v5445_v38 = vld [vmem:[%s5562_s24 + $0x28] sm:$0xff] }
 0x348   : > { %v4498_v58 = vadd.f32 %v7954_v59, %v4050_v44  ;;  %v4503_v30 = vadd.f32 %v7441_v8, %v4055_v16  ;;  %v4058_v49 = vmul.f32 %v7428_v10, %v3608_v1  ;;  %5060 = vmatprep.subr.bf16.mxu1 %v4883_v60  ;;  %5020 = vmatpush1.bf16.msra.mxu0 %v4880_v57  ;;  %v4751_v33 = vmax.f32 %v4495_v11, 0.0  ;;  %v5444_v16 = vld [vmem:[%s5562_s24 + $0x30] sm:$0xff] }
 0x349   : > { %v4505_v24 = vadd.f32 %v7441_v8, %v4057_v55  ;;  %v4504_v23 = vadd.f32 %v7441_v8, %v4056_v43  ;;  %5061 = vmatpush1.bf16.msra.mxu1 %v4882_v12  ;;  %v4753_v34 = vmax.f32 %v4497_v36, 0.0  ;;  %v4752_v42 = vmax.f32 %v4496_v21, 0.0  ;;  %v5446_v21 = vld [vmem:[%s5562_s24 + $0x38] sm:$0xff] }
 0x34a   : > { %v4759_v25 = vmax.f32 %v4503_v30, 0.0  ;;  %v4506_v53 = vadd.f32 %v7441_v8, %v4058_v49  ;;  %v4754_v29 = vmax.f32 %v4498_v58, 0.0  ;;  %v5438_v8 = vld.sshfl [vmem:[%s7745_s7] sm:$0x33 pattern:$0x76325410] }
 0x34b   : > { %v4761_v51 = vmax.f32 %v4505_v24, 0.0  ;;  %v4760_v13 = vmax.f32 %v4504_v23, 0.0 }
 0x34c   : > { %v4888_v4 = vpack.c.bf16 %v4759_v25, %v4751_v33  ;;  %v4762_v54 = vmax.f32 %v4506_v53, 0.0 }
 0x34d   : > { %v4890_v9 = vpack.c.bf16 %v4761_v51, %v4753_v34  ;;  %v4889_v10 = vpack.c.bf16 %v4760_v13, %v4752_v42 }
 0x34e   : > { %v4891_v17 = vpack.c.bf16 %v4762_v54, %v4754_v29 }
 0x34f   : > { %5021 = vmatprep.subr.bf16.mxu0 %v4889_v10 }
 0x350   : > { %5062 = vmatprep.subr.bf16.mxu1 %v4891_v17  ;;  %5022 = vmatpush1.bf16.msra.mxu0 %v4888_v4 }
 0x351   : > { %5063 = vmatpush1.bf16.msra.mxu1 %v4890_v9 }
 0x353   : > { %5024 = vmatmul.mubr.bf16.vlgmr.msra.gmra.mrb[4].mxu0 %v5438_v8 }
 0x354   : > { %5065 = vmatmul.mubr.bf16.vlgmr.msra.gmra.mrb[4].mxu1 %v5438_v8 }
 0x3a5   : > { %v4943_v48 = vpop.f32.mrb[0].mxu0 }
 0x3a6   : > { %v4944_v31 = vadd.f32 %v4943_v48, %v4896_v20  ;;  %v4984_v7 = vpop.f32.mrb[0].mxu1  ;;  %v4945_v26 = vpop.f32.mrb[1].mxu0 }
 0x3a7   : > { %v4985_v35 = vadd.f32 %v4984_v7, %v4896_v20  ;;  %v4946_v56 = vadd.f32 %v4945_v26, %v4896_v20  ;;  %v4986_v19 = vpop.f32.mrb[1].mxu1  ;;  %v4947_v63 = vpop.f32.mrb[2].mxu0 }
 0x3a8   : > { %v5073_v6 = vadd.f32 %v5439_v14, %v4944_v31  ;;  %v4987_v15 = vadd.f32 %v4986_v19, %v4896_v20  ;;  %v4988_v52 = vpop.f32.mrb[2].mxu1  ;;  %v4948_v22 = vpop.f32.mrb[3].mxu0 }
 0x3a9   : > { %v5075_v0 = vadd.f32 %v5440_v50, %v4985_v35  ;;  %v5074_v28 = vadd.f32 %v5441_v27, %v4946_v56  ;;  %v4989_v37 = vpop.f32.mrb[3].mxu1 }
 0x3aa   : > { %v5076_v47 = vadd.f32 %v5442_v40, %v4987_v15 }
 0x3ab   : > { %v5089_v61 = vcombine.low %v5073_v6, %v5074_v28 }
 0x3ac   : > { %v5090_v57 = vcombine.low %v5075_v0, %v5076_v47 }
 0x3ad   : > { %5097 = vst [vmem:[%s390_s15] sm:$0x77] %v5089_v61 }
 0x3ae   : > { %5098 = vst [vmem:[%s390_s15 + $0x8] sm:$0x77] %v5090_v57 }
 0x426   : > { %v5025_v39 = vpop.f32.mrb[4].mxu0 }
 0x427   : > { %v5026_v46 = vadd.f32 %v5025_v39, %v4896_v20  ;;  %v5066_v5 = vpop.f32.mrb[4].mxu1  ;;  %v5027_v18 = vpop.f32.mrb[5].mxu0 }
 0x428   : > { %v5067_v12 = vadd.f32 %v5066_v5, %v4896_v20  ;;  %v5028_v45 = vadd.f32 %v5027_v18, %v4896_v20  ;;  %v5068_v3 = vpop.f32.mrb[5].mxu1  ;;  %v5029_v62 = vpop.f32.mrb[6].mxu0 }
 0x429   : > { %v5077_v2 = vadd.f32 %v5443_v32, %v5026_v46  ;;  %v5069_v59 = vadd.f32 %v5068_v3, %v4896_v20  ;;  %v5070_v11 = vpop.f32.mrb[6].mxu1  ;;  %v5030_v44 = vpop.f32.mrb[7].mxu0 }
 0x42a   : > { %v5079_v41 = vadd.f32 %v5444_v16, %v5067_v12  ;;  %v5078_v60 = vadd.f32 %v5445_v38, %v5028_v45  ;;  %v5071_v36 = vpop.f32.mrb[7].mxu1 }
 0x42b   : > { %v5080_v55 = vadd.f32 %v5446_v21, %v5069_v59 }
 0x42c   : > { %v5091_v43 = vcombine.low %v5077_v2, %v5078_v60 }
 0x42d   : > { %v5092_v1 = vcombine.low %v5079_v41, %v5080_v55 }
 0x42e   : > { %5099 = vst [vmem:[%s390_s15 + $0x10] sm:$0x77] %v5091_v43 }
 0x42f   : > { %5100 = vst [vmem:[%s390_s15 + $0x18] sm:$0x77] %v5092_v1 }
 0x430 PF: > { %s19_s11 = sadd.s32 1, %s5469_s11   ;;  %s7955_s30 = smov %s5465_s10 }
 0x431   : > { %p16_p5 = scmp.ge.s32.totalorder %s19_s11, 4   ;;  %s7956_s10 = smov %s7958_s12 }
 0x433   :  { %18 = sbr.rel (!%p16_p5) target bundleno = 2 (0x2), region = 89 }

</bundles_post_ra>
